<compile_context>
chip_gen: v6e
topology: v6e:2x2x1
jax: 0.10.0
libtpu: 0.0.40
codegen_flags: <defaults>
</compile_context>

<pallas_src>
import functools
import math

import jax
import jax.numpy as jnp
from jax.experimental import pallas as pl
from jax.experimental.pallas import tpu as pltpu


# ------------------------------ fused PEG kernel --------------------------------
def _peg_dwconv_kernel(x_ref, w_ref, b_ref, o_ref, xp_ref, *, h, pad):
    """Depthwise 3x3 conv (pad=1) + bias + residual on one (image, channel-tile).

    x_ref : (1, N, tc)          tokens of one image / one channel tile (N = h*h)
    w_ref : (9, tc)             tap-major depthwise weights, tap k = 3*(di+1)+(dj+1)
    b_ref : (1, tc)             conv bias
    o_ref : (1, N, tc)          output tokens
    xp_ref: (N + 2*pad, tc)     zero-haloed staging scratch (dtype == x.dtype)
    """
    n_tok = x_ref.shape[1]
    tc = x_ref.shape[2]

    # Zero only the halo rows; the body rows are overwritten right below.
    halo_zeros = jnp.zeros((pad, tc), dtype=xp_ref.dtype)
    xp_ref[0:pad, :] = halo_zeros
    xp_ref[pad + n_tok:pad + n_tok + pad, :] = halo_zeros

    # Stage the tile behind the (pack-aligned) halo so all 9 taps are static
    # ref slices and the row padding is free zeros.
    xp_ref[pad:pad + n_tok, :] = x_ref[0]

    # Hoisted parameter loads (f32 accumulation regardless of activation dtype).
    w = w_ref[...].astype(jnp.float32)                 # (9, tc)
    b = b_ref[...].astype(jnp.float32)                 # (1, tc)

    # Column masks: the token axis is row-major over the h x h image, so a tap
    # with dj = -1/+1 must not read across the image-row boundary.
    col = jax.lax.broadcasted_iota(jnp.int32, (n_tok, 1), 0) % h
    not_first_col = col > 0                            # valid source for dj == -1
    not_last_col = col < (h - 1)                       # valid source for dj == +1

    def tap(di, dj):
        s = pad + di * h + dj                          # static slice start
        return xp_ref[s:s + n_tok, :].astype(jnp.float32)

    x_body = tap(0, 0)                                 # unshifted tile == residual
    acc = x_body + b                                   # residual + conv bias

    # dj == 0 group: no column mask needed (row padding handled by halo zeros).
    acc = acc + (tap(-1, 0) * w[1:2, :] + x_body * w[4:5, :] + tap(1, 0) * w[7:8, :])

    # dj == -1 group: accumulate the three row taps unmasked, mask once.
    g_m = tap(-1, -1) * w[0:1, :] + tap(0, -1) * w[3:4, :] + tap(1, -1) * w[6:7, :]
    acc = acc + jnp.where(not_first_col, g_m, 0.0)

    # dj == +1 group.
    g_p = tap(-1, 1) * w[2:3, :] + tap(0, 1) * w[5:6, :] + tap(1, 1) * w[8:9, :]
    acc = acc + jnp.where(not_last_col, g_p, 0.0)

    o_ref[0] = acc.astype(o_ref.dtype)


def _pick_channel_tile(c, cap):
    """Largest multiple-of-128 divisor of c that is <= cap (lane-dense blocks)."""
    best = 0
    t = 128
    while t <= min(c, cap):
        if c % t == 0:
            best = t
        t += 128
    return best if best > 0 else c                     # fallback: full C (masked stores)


def pos_inject_forward(x, w_tap_major, bias, *, channel_tile=512):
    """PosInjectLayer forward.  x: (B, N, C) tokens, N a perfect square.

    w_tap_major: (9, C)  == torch Conv2d weight (C, 1, 3, 3) laid out tap-major,
                 w_tap_major[3*ki + kj, c] = torch_w[c, 0, ki, kj].
    bias:        (1, C)
    """
    B, N, C = x.shape
    h = int(math.isqrt(N))
    assert h * h == N, "num_tokens must be a perfect square"

    tc = _pick_channel_tile(C, channel_tile)
    itemsize = x.dtype.itemsize
    pack = max(8, 32 // max(itemsize, 1))              # sublane packing: 8 f32, 16 bf16
    pad = -(-(h + 1) // pack) * pack                   # pack-aligned halo >= h+1 tokens

    grid = (C // tc, B)                                # batch fastest: weights stay resident

    # Explicit VMEM budget: double-buffered in/out blocks + halo scratch + f32
    # temporaries.  v5e scoped default is only 16 MiB; keep <= 64 MiB for v7x.
    block_bytes = N * tc * itemsize
    vmem_est = (4 * block_bytes                        # x + out blocks, double-buffered
                + (N + 2 * pad) * tc * itemsize        # halo scratch
                + 6 * N * tc * 4                       # f32 temporaries (acc, groups, taps)
                + 10 * tc * 4                          # weights + bias
                + (1 << 20))                           # headroom
    vmem_limit = int(min(max(vmem_est, 32 * 1024 * 1024), 64 * 1024 * 1024))

    kernel = functools.partial(_peg_dwconv_kernel, h=h, pad=pad)
    return pl.pallas_call(
        kernel,
        out_shape=jax.ShapeDtypeStruct((B, N, C), x.dtype),
        grid=grid,
        in_specs=[
            pl.BlockSpec((1, N, tc), lambda cc, bb: (bb, 0, cc)),
            pl.BlockSpec((9, tc), lambda cc, bb: (0, cc)),
            pl.BlockSpec((1, tc), lambda cc, bb: (0, cc)),
        ],
        out_specs=pl.BlockSpec((1, N, tc), lambda cc, bb: (bb, 0, cc)),
        scratch_shapes=[pltpu.VMEM((N + 2 * pad, tc), x.dtype)],
        compiler_params=pltpu.CompilerParams(
            dimension_semantics=("parallel", "parallel"),
            vmem_limit_bytes=vmem_limit),
    )(x, w_tap_major, bias)


# ------------------------------ pure-JAX reference -------------------------------
def pos_inject_reference(x, w_tap_major, bias):
    """Straightforward NHWC re-statement of the PyTorch forward (for checking)."""
    B, N, C = x.shape
    h = int(math.isqrt(N))
    feat = x.reshape(B, h, h, C)                       # token n -> (i, j) = (n//h, n%h)
    featp = jnp.pad(feat, ((0, 0), (1, 1), (1, 1), (0, 0)))
    out = jnp.zeros_like(feat)
    for di in range(3):
        for dj in range(3):
            out = out + featp[:, di:di + h, dj:dj + h, :] * w_tap_major[di * 3 + dj]
    out = out + bias.reshape(1, 1, 1, C) + feat        # conv bias + residual
    return out.reshape(B, N, C)


# ------------------------------------ demo ---------------------------------------
if __name__ == "__main__":
    # Small config consistent with the module: batch=2, 16x16 token grid (N=256),
    # hidden dim 256 (lane-dense, exercises a 256-wide channel tile).
    B, h, C = 2, 16, 256
    N = h * h

    key = jax.random.PRNGKey(0)
    kx, kw, kb = jax.random.split(key, 3)
    x = jax.random.normal(kx, (B, N, C), dtype=jnp.float32)
    # torch depthwise weight (C, 1, 3, 3) stored tap-major as (9, C); bias (1, C).
    w_tap_major = (0.1 * jax.random.normal(kw, (9, C))).astype(jnp.float32)
    bias = (0.02 * jax.random.normal(kb, (1, C))).astype(jnp.float32)

    ref = pos_inject_reference(x, w_tap_major, bias)

    # Default (large, single channel tile per image).
    out = jax.block_until_ready(jax.jit(pos_inject_forward)(x, w_tap_major, bias))
    assert out.shape == (B, N, C), out.shape
    assert bool(jnp.all(jnp.isfinite(out)))
    err = float(jnp.max(jnp.abs(out - ref)))
    assert err < 1e-4, f"mismatch vs reference (tc=default): {err}"

    # Multi-channel-tile path (exercises the cc grid axis / index maps).
    out_small = jax.block_until_ready(
        jax.jit(functools.partial(pos_inject_forward, channel_tile=128))(
            x, w_tap_major, bias))
    err_small = float(jnp.max(jnp.abs(out_small - ref)))
    assert err_small < 1e-4, f"mismatch vs reference (tc=128): {err_small}"

    print("KERNEL_OK")
</pallas_src>

<mosaic_0001>
module attributes {stable_mosaic.version = 11 : i64} {
  func.func @_peg_dwconv_kernel(%arg0: i32, %arg1: i32, %arg2: memref<1x256x256xf32, #tpu.memory_space<vmem>>, %arg3: memref<9x256xf32, #tpu.memory_space<vmem>>, %arg4: memref<1x256xf32, #tpu.memory_space<vmem>>, %arg5: memref<1x256x256xf32, #tpu.memory_space<vmem>>, %arg6: memref<304x256xf32, #tpu.memory_space<vmem>>) attributes {dimension_semantics = [#tpu.dimension_semantics<parallel>, #tpu.dimension_semantics<parallel>], iteration_bounds = array<i64: 1, 2>, scalar_prefetch = 0 : i64, scratch_operands = 1 : i64, tpu.core_type = #tpu.core_type<tc>, window_params = [{transform_indices = @transform_0, window_bounds = array<i64: 1, 256, 256>}, {transform_indices = @transform_1, window_bounds = array<i64: 9, 256>}, {transform_indices = @transform_2, window_bounds = array<i64: 1, 256>}, {transform_indices = @transform_3, window_bounds = array<i64: 1, 256, 256>}]} {
    %cst = arith.constant 0.000000e+00 : f32
    %0 = vector.broadcast %cst : f32 to vector<24x256xf32>
    %c0 = arith.constant 0 : index
    %c0_0 = arith.constant 0 : index
    %1 = vector.load %arg6[%c0, %c0_0] : memref<304x256xf32, #tpu.memory_space<vmem>>, vector<24x256xf32>
    tpu.vector_store %arg6[%c0, %c0_0], %0 {strides = array<i32>} : memref<304x256xf32, #tpu.memory_space<vmem>>, vector<24x256xf32>,
    %c280 = arith.constant 280 : index
    %c0_1 = arith.constant 0 : index
    %2 = vector.load %arg6[%c280, %c0_1] : memref<304x256xf32, #tpu.memory_space<vmem>>, vector<24x256xf32>
    tpu.vector_store %arg6[%c280, %c0_1], %0 {strides = array<i32>} : memref<304x256xf32, #tpu.memory_space<vmem>>, vector<24x256xf32>,
    %c0_2 = arith.constant 0 : index
    %c0_3 = arith.constant 0 : index
    %c0_4 = arith.constant 0 : index
    %3 = vector.load %arg2[%c0_2, %c0_3, %c0_4] : memref<1x256x256xf32, #tpu.memory_space<vmem>>, vector<1x256x256xf32>
    %4 = vector.shape_cast %3 : vector<1x256x256xf32> to vector<256x256xf32>
    %c24 = arith.constant 24 : index
    %c0_5 = arith.constant 0 : index
    %5 = vector.load %arg6[%c24, %c0_5] : memref<304x256xf32, #tpu.memory_space<vmem>>, vector<256x256xf32>
    tpu.vector_store %arg6[%c24, %c0_5], %4 {strides = array<i32>} : memref<304x256xf32, #tpu.memory_space<vmem>>, vector<256x256xf32>,
    %c0_6 = arith.constant 0 : index
    %c0_7 = arith.constant 0 : index
    %6 = vector.load %arg3[%c0_6, %c0_7] : memref<9x256xf32, #tpu.memory_space<vmem>>, vector<9x256xf32>
    %c0_8 = arith.constant 0 : index
    %c0_9 = arith.constant 0 : index
    %7 = vector.load %arg4[%c0_8, %c0_9] : memref<1x256xf32, #tpu.memory_space<vmem>>, vector<1x256xf32>
    %8 = tpu.iota {dimensions = array<i32: 0>} : vector<256x1xi32>
    %c16_i32 = arith.constant 16 : i32
    %c0_i32 = arith.constant 0 : i32
    %9 = arith.cmpi eq, %c16_i32, %c0_i32 : i32
    %c1_i32 = arith.constant 1 : i32
    %10 = arith.select %9, %c1_i32, %c16_i32 : i32
    %11 = vector.broadcast %10 : i32 to vector<256x1xi32>
    %12 = arith.remsi %8, %11 : vector<256x1xi32>
    %c0_i32_10 = arith.constant 0 : i32
    %13 = vector.broadcast %c0_i32_10 : i32 to vector<256x1xi32>
    %14 = arith.cmpi ne, %12, %13 : vector<256x1xi32>
    %c0_i32_11 = arith.constant 0 : i32
    %15 = vector.broadcast %c0_i32_11 : i32 to vector<256x1xi32>
    %16 = arith.cmpi slt, %12, %15 : vector<256x1xi32>
    %c0_i32_12 = arith.constant 0 : i32
    %17 = arith.cmpi slt, %10, %c0_i32_12 : i32
    %18 = vector.broadcast %17 : i1 to vector<256x1xi1>
    %19 = vector.broadcast %18 : vector<256x1xi1> to vector<256x1xi1>
    %20 = arith.xori %16, %19 : vector<256x1xi1>
    %21 = arith.andi %20, %14 : vector<256x1xi1>
    %22 = vector.broadcast %10 : i32 to vector<256x1xi32>
    %23 = arith.addi %12, %22 : vector<256x1xi32>
    %24 = arith.select %21, %23, %12 : vector<256x1xi1>, vector<256x1xi32>
    %c0_i32_13 = arith.constant 0 : i32
    %25 = vector.broadcast %c0_i32_13 : i32 to vector<256x1xi32>
    %26 = arith.cmpi sgt, %24, %25 : vector<256x1xi32>
    %c15_i32 = arith.constant 15 : i32
    %27 = vector.broadcast %c15_i32 : i32 to vector<256x1xi32>
    %28 = arith.cmpi slt, %24, %27 : vector<256x1xi32>
    %c24_14 = arith.constant 24 : index
    %c0_15 = arith.constant 0 : index
    %29 = vector.load %arg6[%c24_14, %c0_15] : memref<304x256xf32, #tpu.memory_space<vmem>>, vector<256x256xf32>
    %30 = vector.broadcast %7 : vector<1x256xf32> to vector<256x256xf32>
    %31 = arith.addf %29, %30 : vector<256x256xf32>
    %c8 = arith.constant 8 : index
    %c0_16 = arith.constant 0 : index
    %32 = vector.load %arg6[%c8, %c0_16] : memref<304x256xf32, #tpu.memory_space<vmem>>, vector<256x256xf32>
    %33 = vector.extract_strided_slice %6 {offsets = [1, 0], sizes = [1, 256], strides = [1, 1]} : vector<9x256xf32> to vector<1x256xf32>
    %34 = vector.broadcast %33 : vector<1x256xf32> to vector<256x256xf32>
    %35 = arith.mulf %32, %34 : vector<256x256xf32>
    %36 = vector.extract_strided_slice %6 {offsets = [4, 0], sizes = [1, 256], strides = [1, 1]} : vector<9x256xf32> to vector<1x256xf32>
    %37 = vector.broadcast %36 : vector<1x256xf32> to vector<256x256xf32>
    %38 = arith.mulf %29, %37 : vector<256x256xf32>
    %39 = arith.addf %35, %38 : vector<256x256xf32>
    %c40 = arith.constant 40 : index
    %c0_17 = arith.constant 0 : index
    %40 = vector.load %arg6[%c40, %c0_17] : memref<304x256xf32, #tpu.memory_space<vmem>>, vector<256x256xf32>
    %41 = vector.extract_strided_slice %6 {offsets = [7, 0], sizes = [1, 256], strides = [1, 1]} : vector<9x256xf32> to vector<1x256xf32>
    %42 = vector.broadcast %41 : vector<1x256xf32> to vector<256x256xf32>
    %43 = arith.mulf %40, %42 : vector<256x256xf32>
    %44 = arith.addf %39, %43 : vector<256x256xf32>
    %45 = arith.addf %31, %44 : vector<256x256xf32>
    %c7 = arith.constant 7 : index
    %c0_18 = arith.constant 0 : index
    %46 = vector.load %arg6[%c7, %c0_18] : memref<304x256xf32, #tpu.memory_space<vmem>>, vector<256x256xf32>
    %47 = vector.extract_strided_slice %6 {offsets = [0, 0], sizes = [1, 256], strides = [1, 1]} : vector<9x256xf32> to vector<1x256xf32>
    %48 = vector.broadcast %47 : vector<1x256xf32> to vector<256x256xf32>
    %49 = arith.mulf %46, %48 : vector<256x256xf32>
    %c23 = arith.constant 23 : index
    %c0_19 = arith.constant 0 : index
    %50 = vector.load %arg6[%c23, %c0_19] : memref<304x256xf32, #tpu.memory_space<vmem>>, vector<256x256xf32>
    %51 = vector.extract_strided_slice %6 {offsets = [3, 0], sizes = [1, 256], strides = [1, 1]} : vector<9x256xf32> to vector<1x256xf32>
    %52 = vector.broadcast %51 : vector<1x256xf32> to vector<256x256xf32>
    %53 = arith.mulf %50, %52 : vector<256x256xf32>
    %54 = arith.addf %49, %53 : vector<256x256xf32>
    %c39 = arith.constant 39 : index
    %c0_20 = arith.constant 0 : index
    %55 = vector.load %arg6[%c39, %c0_20] : memref<304x256xf32, #tpu.memory_space<vmem>>, vector<256x256xf32>
    %56 = vector.extract_strided_slice %6 {offsets = [6, 0], sizes = [1, 256], strides = [1, 1]} : vector<9x256xf32> to vector<1x256xf32>
    %57 = vector.broadcast %56 : vector<1x256xf32> to vector<256x256xf32>
    %58 = arith.mulf %55, %57 : vector<256x256xf32>
    %59 = arith.addf %54, %58 : vector<256x256xf32>
    %cst_21 = arith.constant 0.000000e+00 : f32
    %60 = vector.shape_cast %26 : vector<256x1xi1> to vector<256x1xi1>
    %61 = vector.broadcast %60 : vector<256x1xi1> to vector<256x256xi1>
    %62 = vector.broadcast %cst_21 : f32 to vector<256x256xf32>
    %63 = arith.select %61, %59, %62 : vector<256x256xi1>, vector<256x256xf32>
    %64 = arith.addf %45, %63 : vector<256x256xf32>
    %c9 = arith.constant 9 : index
    %c0_22 = arith.constant 0 : index
    %65 = vector.load %arg6[%c9, %c0_22] : memref<304x256xf32, #tpu.memory_space<vmem>>, vector<256x256xf32>
    %66 = vector.extract_strided_slice %6 {offsets = [2, 0], sizes = [1, 256], strides = [1, 1]} : vector<9x256xf32> to vector<1x256xf32>
    %67 = vector.broadcast %66 : vector<1x256xf32> to vector<256x256xf32>
    %68 = arith.mulf %65, %67 : vector<256x256xf32>
    %c25 = arith.constant 25 : index
    %c0_23 = arith.constant 0 : index
    %69 = vector.load %arg6[%c25, %c0_23] : memref<304x256xf32, #tpu.memory_space<vmem>>, vector<256x256xf32>
    %70 = vector.extract_strided_slice %6 {offsets = [5, 0], sizes = [1, 256], strides = [1, 1]} : vector<9x256xf32> to vector<1x256xf32>
    %71 = vector.broadcast %70 : vector<1x256xf32> to vector<256x256xf32>
    %72 = arith.mulf %69, %71 : vector<256x256xf32>
    %73 = arith.addf %68, %72 : vector<256x256xf32>
    %c41 = arith.constant 41 : index
    %c0_24 = arith.constant 0 : index
    %74 = vector.load %arg6[%c41, %c0_24] : memref<304x256xf32, #tpu.memory_space<vmem>>, vector<256x256xf32>
    %75 = vector.extract_strided_slice %6 {offsets = [8, 0], sizes = [1, 256], strides = [1, 1]} : vector<9x256xf32> to vector<1x256xf32>
    %76 = vector.broadcast %75 : vector<1x256xf32> to vector<256x256xf32>
    %77 = arith.mulf %74, %76 : vector<256x256xf32>
    %78 = arith.addf %73, %77 : vector<256x256xf32>
    %cst_25 = arith.constant 0.000000e+00 : f32
    %79 = vector.shape_cast %28 : vector<256x1xi1> to vector<256x1xi1>
    %80 = vector.broadcast %79 : vector<256x1xi1> to vector<256x256xi1>
    %81 = vector.broadcast %cst_25 : f32 to vector<256x256xf32>
    %82 = arith.select %80, %78, %81 : vector<256x256xi1>, vector<256x256xf32>
    %83 = arith.addf %64, %82 : vector<256x256xf32>
    %c0_26 = arith.constant 0 : index
    %c0_27 = arith.constant 0 : index
    %c0_28 = arith.constant 0 : index
    %84 = vector.load %arg5[%c0_26, %c0_27, %c0_28] : memref<1x256x256xf32, #tpu.memory_space<vmem>>, vector<1x256x256xf32>
    %85 = vector.shape_cast %84 : vector<1x256x256xf32> to vector<256x256xf32>
    %86 = vector.shape_cast %83 : vector<256x256xf32> to vector<1x256x256xf32>
    tpu.vector_store %arg5[%c0_26, %c0_27, %c0_28], %86 {strides = array<i32>} : memref<1x256x256xf32, #tpu.memory_space<vmem>>, vector<1x256x256xf32>,
    return
  }
  func.func @transform_0(%arg0: i32, %arg1: i32) -> (i32, i32, i32) {
    %c0_i32 = arith.constant 0 : i32
    %c0_i32_0 = arith.constant 0 : i32
    return %arg1, %c0_i32, %arg0 : i32, i32, i32
  }
  func.func @transform_1(%arg0: i32, %arg1: i32) -> (i32, i32) {
    %c0_i32 = arith.constant 0 : i32
    %c0_i32_0 = arith.constant 0 : i32
    return %c0_i32, %arg0 : i32, i32
  }
  func.func @transform_2(%arg0: i32, %arg1: i32) -> (i32, i32) {
    %c0_i32 = arith.constant 0 : i32
    %c0_i32_0 = arith.constant 0 : i32
    return %c0_i32, %arg0 : i32, i32
  }
  func.func @transform_3(%arg0: i32, %arg1: i32) -> (i32, i32, i32) {
    %c0_i32 = arith.constant 0 : i32
    %c0_i32_0 = arith.constant 0 : i32
    return %arg1, %c0_i32, %arg0 : i32, i32, i32
  }
}

</mosaic_0001>

<bundles_post_ra>
// kernel: pos_inject_forward.1
= control target key start
LH: loop header
LB: loop body
LE: loop exit
PB: predicated region body
PF: predicated region fallthrough
CT: control target
= control target key end

     0   :  { %8 = vsyncpa [#allocation4], 0  ;;  %s6703_s0 = inlined_call_operand.hbm [shape: f32[2,256,256], index: 0, kind: input, shape index: {}]   ;;  %s6704_s1 = inlined_call_operand.hbm [shape: f32[9,256], index: 1, kind: input, shape index: {}]   ;;  %s6705_s2 = inlined_call_operand.vmem [shape: f32[1,256], index: 2, kind: input, shape index: {}]   ;;  %s6706_s3 = inlined_call_operand.hbm [shape: f32[2,256,256], index: 3, kind: output, shape index: {}]  }
   0x1   :  { %10 = vsyncpa [#allocation4 + $0x1], 0 }
   0x2   :  { %11 = vsyncpa [#allocation7], 0 }
   0x3   :  { %12 = vsyncpa [#allocation5], 0 }
   0x4   :  { %14 = vsyncpa [#allocation5 + $0x1], 0  ;;  %s3672_s12 = smov 0   ;;  %s3674_s13 = smov 0  }
   0x5   :  { %s3676_s14 = smov 0   ;;  %s3678_s15 = smov 0  }
   0x6   :  { %s3680_s16 = smov 0   ;;  %s3682_s17 = smov 0  }
   0x7 LB: > { %s3324_s18 = sadd.s32 4294967295, %s3642_s17   ;;  %s3325_s19 = sadd.s32 4294967294, %s3642_s17   ;;  %s3642_s17 = sphi %s3682_s17, %s20_s17   ;;  %s3638_s16 = sphi %s3680_s16, %s7437_s16   ;;  %s3634_s15 = sphi %s3678_s15, %s7436_s15   ;;  %s3630_s14 = sphi %s3676_s14, %s7435_s14   ;;  %s3626_s13 = sphi %s3674_s13, %s7434_s13   ;;  %s3622_s12 = sphi %s3672_s12, %s7433_s12  }
   0x8   : > { %p54_p0 = scmp.ne.s32.totalorder %s3626_s13, %s3622_s12  ;;  %p3706_p1 = scmp.eq.s32.totalorder %s3324_s18, 0 }
   0x9   : > { %p3710_p2 = scmp.eq.s32.totalorder %s3324_s18, 1  ;;  %p138_p3 = scmp.eq.s32.totalorder %s3325_s19, 1 }
   0xa   : > { %p3716_p4 = por %p3706_p1, %p54_p0  ;;  %p3326_p5 = scmp.ge.s32.totalorder %s3642_s17, 1 }
   0xb   : > { %p3721_p6 = por %p138_p3, %p54_p0  ;;  %p145_p7 = scmp.lt.s32.totalorder %s3642_s17, 3 }
   0xc   : > { %s6969_s22 = scalar_select %p3716_p4, 1, 0 }
   0xd   : > { %s6970_s23 = scalar_select %p3721_p6, 1, 0 }
   0xe   : > { %p3726_p8 = pnand %p3326_p5, %p145_p7  ;;  %s3644_s25 = smov [#allocation6]  }
   0xf   : > { %s160_s26 = sshll.u32 %s3644_s25, 4  ;;  %s29_s28 = sadd.s32 1, %s3638_s16  ;;  %s161_s26 = int_to_ptr.vmem [resolvable:$true] %s160_s26 }
  0x10   : > { %p3354_p9 = pneg %p3726_p8  ;;  %s3515_s29 = scalar_lea.vmem %s161_s26, 512 }
  0x11   : > { %p3516_p13 = scmp.ne.s32.totalorder %s161_s26, %s3515_s29  ;;  %p3523_p5 = scmp.lt.s32.totalorder %s161_s26, %s161_s26 }
  0x12   : > { %p3735_p11 = pnand %p3354_p9, %p3706_p1  ;;  %p3524_p7 = scmp.lt.s32.totalorder %s3515_s29, %s3515_s29 }
  0x14   : > { %p3506_p12 = pneg %p3735_p11  ;;  %p3525_p6 = por %p3524_p7, %p3523_p5 }
  0x16   : > { %p3518_p0 = pnand %p3516_p13, %p3506_p12 }
  0x18   : > { %p3519_p3 = pneg %p3518_p0 }
  0x1a   : > { %p3526_p4 = pnand %p3525_p6, %p3519_p3 }
  0x1c   : > { %3529 = shalt.err (!%p3526_p4)
}
  0x1d   : > { %s6708_s30 = smov 256   ;;  %s6709_s4 = smov 16  }
  0x1e   : > { %3357 = dma.hbm_to_vmem [thread:$0]  (!%p3735_p11), %s6704_s1, 512, %s161_s26, [#allocation7], %s6708_s30, %s6708_s30, %s6709_s4  }
  0x1f   : > { %p30_p4 = scmp.ge.s32.totalorder %s29_s28, 2  ;;  %s41_s7 = sadd.s32 1, %s3630_s14 }
  0x20   : > { %p48_p6 = scmp.ne.s32.totalorder %s3630_s14, %s3626_s13  ;;  %p49_p9 = scmp.eq.s32.totalorder %s3642_s17, 0 }
  0x21   : > { %s7439_s28 = smov (%p30_p4, %s29_s28), 0  ;;  %p3367_p0 = scmp.lt.s32.totalorder %s3642_s17, 2 }
  0x22   : > { %p3756_p12 = por %p49_p9, %p48_p6  ;;  %p3762_p13 = por %p3710_p2, %p48_p6 }
  0x23   : > { %s36_s10 = ssub.s32 %s3638_s16, %s7439_s28  ;;  %s182_s11 = sand.u32 1, %s3630_s14  }
  0x24   : > { %p39_p11 = scmp.eq.s32.totalorder %s36_s10, 0  ;;  %s3330_s18 = sshll.u32 %s182_s11, 9 }
  0x25   : > { %s3344_s25 = sshll.u32 %s3638_s16, 13  ;;  %s186_s5 = scalar_lea.vmem [#allocation3], %s3330_s18 }
  0x26   : > { %s3771_s19 = scalar_select %p39_p11, %s3630_s14, %s41_s7  }
  0x27   : > { %s194_s29 = scalar_lea.hbm %s6703_s0, %s3344_s25  ;;  %s195_s6 = sshll.u32 %s186_s5, 4  ;;  %s196_s6 = int_to_ptr.vmem [resolvable:$true] %s195_s6 }
  0x28   : > { %p3779_p2 = pnand %p3367_p0, %p3756_p12  ;;  %s183_s30 = scalar_lea.sflag [#allocation4], %s182_s11 }
  0x29   : > { %s3543_s10 = scalar_lea.vmem %s196_s6, 8192  ;;  %s3647_s7 = smov [#allocation3]  }
  0x2a   : > { %p3532_p3 = pneg %p3779_p2  ;;  %p3544_p5 = scmp.ne.s32.totalorder %s196_s6, %s3543_s10 }
  0x2b   : > { %s3548_s4 = sshll.u32 %s3647_s7, 4  ;;  %s3549_s4 = int_to_ptr.vmem [resolvable:$false] %s3548_s4 }
  0x2c   : > { %p3546_p7 = pnand %p3544_p5, %p3532_p3  ;;  %s3550_s25 = scalar_lea.vmem %s3549_s4, 16384 }
  0x2d   : > { %p3551_p6 = scmp.lt.s32.totalorder %s196_s6, %s3549_s4  ;;  %p3552_p9 = scmp.lt.s32.totalorder %s3550_s25, %s3543_s10 }
  0x2e   : > { %p3547_p4 = pneg %p3546_p7 }
  0x2f   : > { %p3553_p11 = por %p3552_p9, %p3551_p6 }
  0x31   : > { %p3554_p10 = pnand %p3553_p11, %p3547_p4 }
  0x33   : > { %3557 = shalt.err (!%p3554_p10)
}
  0x34   : > { %s6976_s8 = smov 16   ;;  %s6977_s18 = smov 256  }
  0x35   : > { %3361 = dma.hbm_to_vmem [thread:$0]  (!%p3779_p2), %s194_s29, 8192, %s196_s6, %s183_s30, %s6977_s18, %s6977_s18, %s6976_s8  }
  0x36   : > { %207 = sbr.rel (%p3726_p8) target bundleno = 568 (0x238), region = 32 }
  0x3b   : > { %s3793_s11 = sand.u32 1, %s3626_s13   ;;  %p6978_p10 = scmp.ne.s32.totalorder %s6969_s22, 0 }
  0x3c   : > { %s3334_s4 = sshll.u32 %s3793_s11, 9  ;;  %s210_s26 = scalar_lea.sflag [#allocation4], %s3793_s11 }
  0x3d   : > { %s3799_s27 = scalar_lea.vmem [#allocation3], %s3334_s4 }
  0x3e   : > { %3609 = dma.done.wait (%p6978_p10), %s210_s26, 8192  }
  0x3f   : > { %3611 = vsyncadd (%p6978_p10), %s210_s26, 4294959104 }
  0x40   : > { %3613 = dma.done.wait (%p3706_p1), [#allocation7], 512  }
  0x41   : > { %3615 = vsyncadd (%p3706_p1), [#allocation7], 4294966784  ;;  %v3648_v0 = vmov 0.0   ;;  %v3810_v1 = vld [vmem:[%s3799_s27] sm:$0xff]  ;;  %v3813_v2 = vld [vmem:[%s3799_s27 + $0x8] sm:$0xff]  ;;  %v397_v25 = vlaneseq  ;;  %vm1929_vm0 = vcmask 1040384  }
  0x42   : > { %252 = vst [vmem:[#allocation2 + $0x98] sm:$0xff] %v3648_v0  ;;  %253 = vst [vmem:[#allocation2 + $0x8] sm:$0xff] %v3648_v0  ;;  %v3816_v3 = vld [vmem:[%s3799_s27 + $0x10] sm:$0xff]  ;;  %v3822_v4 = vld [vmem:[%s3799_s27 + $0x18] sm:$0xff]  ;;  %vm2810_vm2 = vcmask 1046528   ;;  %s4160_s24 = scalar_lea.vmem [#allocation8], %s3334_s4 }
  0x43   : > { %254 = vst [vmem:[#allocation2 + $0x240] sm:$0xff] %v3648_v0  ;;  %255 = vst [vmem:[#allocation2 + $0x28] sm:$0xff] %v3648_v0  ;;  %v3825_v5 = vld [vmem:[%s3799_s27 + $0x20] sm:$0xff]  ;;  %v3828_v6 = vld [vmem:[%s3799_s27 + $0x28] sm:$0xff]  ;;  %v3917_v38 = vshrl.u32 %v397_v25, 7  ;;  %s3345_s30 = sshll.u32 %s3634_s15, 13 }
  0x44   : > { %256 = vst [vmem:[#allocation2 + $0xb8] sm:$0xff] %v3648_v0  ;;  %257 = vst [vmem:[#allocation2 + $0xc0] sm:$0xff] %v3648_v0  ;;  %v3834_v7 = vld [vmem:[%s3799_s27 + $0x30] sm:$0xff]  ;;  %v3837_v8 = vld [vmem:[%s3799_s27 + $0x38] sm:$0xff]  ;;  %s3213_s29 = sshll.u32 %s4160_s24, 4  ;;  %s6652_s21 = scalar_lea.hbm %s6706_s3, %s3345_s30  ;;  %s6654_s29 = int_to_ptr.vmem [resolvable:$true] %s3213_s29 }
  0x45   : > { %258 = vst [vmem:[#allocation2 + $0x40] sm:$0xff] %v3648_v0  ;;  %259 = vst [vmem:[#allocation2 + $0xf0] sm:$0xff] %v3648_v0  ;;  %v3840_v9 = vld [vmem:[%s3799_s27 + $0x40] sm:$0xff]  ;;  %v3844_v10 = vld [vmem:[%s3799_s27 + $0x48] sm:$0xff]  ;;  %v3929_v48 = vadd.s32 8, %v3917_v38  ;;  %v3935_v52 = vsub.s32 0, %v3917_v38 }
  0x46   : > { %260 = vst [vmem:[#allocation2 + $0xa8] sm:$0xff] %v3648_v0  ;;  %261 = vst [vmem:[#allocation2 + $0x118] sm:$0xff] %v3648_v0  ;;  %v3847_v11 = vld [vmem:[%s3799_s27 + $0x50] sm:$0xff]  ;;  %v3850_v12 = vld [vmem:[%s3799_s27 + $0x58] sm:$0xff]  ;;  %v3938_v53 = vsub.s32 1, %v3917_v38  ;;  %v6713_v54 = vsub.s32 4, %v3917_v38 }
  0x47   : > { %262 = vst [vmem:[#allocation2 + $0x128] sm:$0xff] %v3648_v0  ;;  %263 = vst [vmem:[#allocation2 + $0xd8] sm:$0xff] %v3648_v0  ;;  %v3854_v13 = vld [vmem:[%s3799_s27 + $0x60] sm:$0xff]  ;;  %v3857_v14 = vld [vmem:[%s3799_s27 + $0x68] sm:$0xff]  ;;  %v3945_v58 = vadd.s32 24, %v3917_v38  ;;  %v3948_v59 = vadd.s32 40, %v3917_v38 }
  0x48   : > { %328 = vst [vmem:[#allocation2 + $0x158] sm:$0xff] %v3810_v1  ;;  %329 = vst [vmem:[#allocation2 + $0x68] sm:$0xff] %v3813_v2  ;;  %v3860_v15 = vld [vmem:[%s3799_s27 + $0x70] sm:$0xff]  ;;  %v3865_v16 = vld [vmem:[%s3799_s27 + $0x78] sm:$0xff]  ;;  %v3951_v60 = vadd.s32 56, %v3917_v38  ;;  %v3957_v0 = vadd.s32 72, %v3917_v38 }
  0x49   : > { %330 = vst [vmem:[#allocation2 + $0x200] sm:$0xff] %v3816_v3  ;;  %331 = vst [vmem:[#allocation2 + $0x258] sm:$0xff] %v3822_v4  ;;  %v3868_v17 = vld [vmem:[%s3799_s27 + $0x80] sm:$0xff]  ;;  %v3871_v18 = vld [vmem:[%s3799_s27 + $0x88] sm:$0xff]  ;;  %v3960_v25 = vadd.s32 88, %v3917_v38  ;;  %s3198_s15 = scalar_lea.sflag [#allocation5], %s3793_s11 }
  0x4a   : > { %332 = vst [vmem:[#allocation2 + $0x10] sm:$0xff] %v3825_v5  ;;  %333 = vst [vmem:[#allocation2 + $0x30] sm:$0xff] %v3828_v6  ;;  %v3876_v19 = vld [vmem:[%s3799_s27 + $0x90] sm:$0xff]  ;;  %v3879_v20 = vld [vmem:[%s3799_s27 + $0x98] sm:$0xff]  ;;  %s3558_s10 = scalar_lea.vmem %s6654_s29, 8192  ;;  %s3649_s7 = smov [#allocation8]  }
  0x4b   : > { %336 = vst [vmem:[#allocation2 + $0x70] sm:$0xff] %v3840_v9  ;;  %337 = vst [vmem:[#allocation2 + $0x60] sm:$0xff] %v3844_v10  ;;  %v3882_v21 = vld [vmem:[%s3799_s27 + $0xa0] sm:$0xff]  ;;  %v3888_v22 = vld [vmem:[%s3799_s27 + $0xa8] sm:$0xff]  ;;  %p3559_p1 = scmp.ne.s32.totalorder %s6654_s29, %s3558_s10  ;;  %s3562_s25 = sshll.u32 %s3649_s7, 4  ;;  %s3563_s25 = int_to_ptr.vmem [resolvable:$false] %s3562_s25 }
  0x4c   : > { %340 = vst [vmem:[#allocation2 + $0x1c8] sm:$0xff] %v3854_v13  ;;  %341 = vst [vmem:[#allocation2 + $0x190] sm:$0xff] %v3857_v14  ;;  %v3891_v23 = vld [vmem:[%s3799_s27 + $0xb0] sm:$0xff]  ;;  %v3894_v24 = vld [vmem:[%s3799_s27 + $0xb8] sm:$0xff]  ;;  %s3564_s8 = scalar_lea.vmem %s3563_s25, 16384  ;;  %p3565_p0 = scmp.lt.s32.totalorder %s6654_s29, %s3563_s25 }
  0x4d   : > { %344 = vst [vmem:[#allocation2 + $0x78] sm:$0xff] %v3868_v17  ;;  %345 = vst [vmem:[#allocation2 + $0x50] sm:$0xff] %v3871_v18  ;;  %v3900_v26 = vld [vmem:[%s3799_s27 + $0xc0] sm:$0xff]  ;;  %v289_v27 = vld [vmem:[%s3799_s27 + $0xc8] sm:$0xff]  ;;  %p3560_p8 = pnand %p3559_p1, %p3762_p13  ;;  %p3566_p2 = scmp.lt.s32.totalorder %s3564_s8, %s3558_s10 }
  0x4e   : > { %6979 = vst [vmem:[#allocation12_spill] sm:$0xff] %v3879_v20  ;;  %6980 = vst [vmem:[#allocation13_spill] sm:$0xff] %v3882_v21  ;;  %v3904_v28 = vld [vmem:[%s3799_s27 + $0xd0] sm:$0xff]  ;;  %v291_v29 = vld [vmem:[%s3799_s27 + $0xd8] sm:$0xff] }
  0x4f   : > { %346 = vst [vmem:[#allocation2 + $0x220] sm:$0xff] %v3876_v19  ;;  %347 = vst [vmem:[#allocation2 + $0x170] sm:$0xff] %v3879_v20  ;;  %v292_v30 = vld [vmem:[%s3799_s27 + $0xe0] sm:$0xff]  ;;  %v293_v31 = vld [vmem:[%s3799_s27 + $0xe8] sm:$0xff]  ;;  %p3561_p12 = pneg %p3560_p8  ;;  %p3567_p3 = por %p3566_p2, %p3565_p0 }
  0x50   : > { %348 = vst [vmem:[#allocation2 + $0x1f8] sm:$0xff] %v3882_v21  ;;  %6981 = vst [vmem:[#allocation14_spill] sm:$0xff] %v3888_v22  ;;  %v294_v32 = vld [vmem:[%s3799_s27 + $0xf0] sm:$0xff]  ;;  %v295_v33 = vld [vmem:[%s3799_s27 + $0xf8] sm:$0xff] }
  0x51   : > { %6982 = vst [vmem:[#allocation15_spill] sm:$0xff] %v3891_v23  ;;  %6983 = vst [vmem:[#allocation16_spill] sm:$0xff] %v3894_v24  ;;  %v296_v34 = vld [vmem:[%s3799_s27 + $0x100] sm:$0xff]  ;;  %v297_v35 = vld [vmem:[%s3799_s27 + $0x108] sm:$0xff]  ;;  %p3568_p5 = pnand %p3567_p3, %p3561_p12 }
  0x52   : > { %349 = vst [vmem:[#allocation2 + $0xb0] sm:$0xff] %v3888_v22  ;;  %350 = vst [vmem:[#allocation2 + $0x58] sm:$0xff] %v3891_v23  ;;  %v298_v36 = vld [vmem:[%s3799_s27 + $0x110] sm:$0xff]  ;;  %v299_v37 = vld [vmem:[%s3799_s27 + $0x118] sm:$0xff] }
  0x53   : > { %351 = vst [vmem:[#allocation2 + $0x168] sm:$0xff] %v3894_v24  ;;  %6984 = vst [vmem:[#allocation17_spill] sm:$0xff] %v3900_v26  ;;  %v300_v39 = vld [vmem:[%s3799_s27 + $0x120] sm:$0xff]  ;;  %v301_v40 = vld [vmem:[%s3799_s27 + $0x128] sm:$0xff] }
  0x54   : > { %6985 = vst [vmem:[#allocation18_spill] sm:$0xff] %v3904_v28  ;;  %352 = vst [vmem:[#allocation2 + $0x1a0] sm:$0xff] %v3900_v26  ;;  %v302_v41 = vld [vmem:[%s3799_s27 + $0x130] sm:$0xff]  ;;  %v303_v42 = vld [vmem:[%s3799_s27 + $0x138] sm:$0xff] }
  0x55   : > { %353 = vst [vmem:[#allocation2 + $0x1b0] sm:$0xff] %v289_v27  ;;  %354 = vst [vmem:[#allocation2 + $0x20] sm:$0xff] %v3904_v28  ;;  %v304_v43 = vld [vmem:[%s3799_s27 + $0x140] sm:$0xff]  ;;  %v305_v44 = vld [vmem:[%s3799_s27 + $0x148] sm:$0xff]  ;;  %v3963_v27 = vadd.s32 104, %v3917_v38  ;;  %v6995_v28 = vsub.s32 4, %v3917_v38 }
  0x56   : > { %355 = vst [vmem:[#allocation2 + $0xd0] sm:$0xff] %v291_v29  ;;  %356 = vst [vmem:[#allocation2 + $0x248] sm:$0xff] %v292_v30  ;;  %v306_v45 = vld [vmem:[%s3799_s27 + $0x150] sm:$0xff]  ;;  %v307_v46 = vld [vmem:[%s3799_s27 + $0x158] sm:$0xff] }
  0x57   : > { %357 = vst [vmem:[#allocation2 + $0x180] sm:$0xff] %v293_v31  ;;  %358 = vst [vmem:[#allocation2 + $0x208] sm:$0xff] %v294_v32  ;;  %v308_v47 = vld [vmem:[%s3799_s27 + $0x160] sm:$0xff]  ;;  %v309_v49 = vld [vmem:[%s3799_s27 + $0x168] sm:$0xff]  ;;  %v6712_v32 = vsub.s32 7, %v3917_v38 }
  0x58   : > { %359 = vst [vmem:[#allocation2 + $0xf8] sm:$0xff] %v295_v33  ;;  %360 = vst [vmem:[#allocation2 + $0xe8] sm:$0xff] %v296_v34  ;;  %v310_v50 = vld [vmem:[%s3799_s27 + $0x170] sm:$0xff]  ;;  %v311_v51 = vld [vmem:[%s3799_s27 + $0x178] sm:$0xff]  ;;  %v6711_v33 = vsub.s32 3, %v3917_v38  ;;  %v6710_v34 = vsub.s32 6, %v3917_v38 }
  0x59   : > { %6986 = vst [vmem:[#allocation19_spill] sm:$0xff] %v3917_v38  ;;  %361 = vst [vmem:[#allocation2 + $0x238] sm:$0xff] %v297_v35  ;;  %v312_v55 = vld [vmem:[%s3799_s27 + $0x180] sm:$0xff]  ;;  %v313_v56 = vld [vmem:[%s3799_s27 + $0x188] sm:$0xff] }
  0x5a   : > { %362 = vst [vmem:[#allocation2 + $0x198] sm:$0xff] %v298_v36  ;;  %363 = vst [vmem:[#allocation2 + $0x80] sm:$0xff] %v299_v37  ;;  %v314_v57 = vld [vmem:[%s3799_s27 + $0x190] sm:$0xff]  ;;  %v315_v61 = vld [vmem:[%s3799_s27 + $0x198] sm:$0xff] }
  0x5b   : > { %364 = vst [vmem:[#allocation2 + $0x1e8] sm:$0xff] %v300_v39  ;;  %365 = vst [vmem:[#allocation2] sm:$0xff] %v301_v40  ;;  %v316_v62 = vld [vmem:[%s3799_s27 + $0x1a0] sm:$0xff]  ;;  %v317_v63 = vld [vmem:[%s3799_s27 + $0x1a8] sm:$0xff]  ;;  %v441_v39 = vand.u32 15, %v3929_v48  ;;  %v6715_v40 = vsub.s32 2, %v3917_v38 }
  0x5c   : > { %366 = vst [vmem:[#allocation2 + $0xa0] sm:$0xff] %v302_v41  ;;  %367 = vst [vmem:[#allocation2 + $0x88] sm:$0xff] %v303_v42  ;;  %v318_v29 = vld [vmem:[%s3799_s27 + $0x1b0] sm:$0xff]  ;;  %v319_v30 = vld [vmem:[%s3799_s27 + $0x1b8] sm:$0xff]  ;;  %v6717_v41 = vsub.s32 5, %v3917_v38 }
  0x5d   : > { %368 = vst [vmem:[#allocation2 + $0x1d8] sm:$0xff] %v304_v43  ;;  %369 = vst [vmem:[#allocation2 + $0x1c0] sm:$0xff] %v305_v44  ;;  %v320_v31 = vld [vmem:[%s3799_s27 + $0x1c0] sm:$0xff]  ;;  %v321_v35 = vld [vmem:[%s3799_s27 + $0x1c8] sm:$0xff]  ;;  %vm4047_vm1 = vcmp.lt.s32.totalorder %v441_v39, 15 }
  0x5e   : > { %370 = vst [vmem:[#allocation2 + $0x1e0] sm:$0xff] %v306_v45  ;;  %371 = vst [vmem:[#allocation2 + $0x1d0] sm:$0xff] %v307_v46  ;;  %v322_v36 = vld [vmem:[%s3799_s27 + $0x1d0] sm:$0xff]  ;;  %v323_v37 = vld [vmem:[%s3799_s27 + $0x1d8] sm:$0xff] }
  0x5f   : > { %372 = vst [vmem:[#allocation2 + $0x140] sm:$0xff] %v308_v47  ;;  %373 = vst [vmem:[#allocation2 + $0x138] sm:$0xff] %v309_v49  ;;  %v324_v42 = vld [vmem:[%s3799_s27 + $0x1e0] sm:$0xff]  ;;  %v325_v43 = vld [vmem:[%s3799_s27 + $0x1e8] sm:$0xff] }
  0x60   : > { %374 = vst [vmem:[#allocation2 + $0x188] sm:$0xff] %v310_v50  ;;  %375 = vst [vmem:[#allocation2 + $0x100] sm:$0xff] %v311_v51  ;;  %v326_v44 = vld [vmem:[%s3799_s27 + $0x1f0] sm:$0xff]  ;;  %v327_v48 = vld [vmem:[%s3799_s27 + $0x1f8] sm:$0xff] }
  0x61   : > { %6987 = vst [vmem:[#allocation20_spill] sm:$0xff] %v3951_v60  ;;  %376 = vst [vmem:[#allocation2 + $0x218] sm:$0xff] %v312_v55  ;;  %v392_v49 = vld [vmem:[#allocation6] sm:$0xff]  ;;  %v3984_v50 = vld [vmem:[#allocation6 + $0x8] sm:$0xff] }
  0x62   : > { %377 = vst [vmem:[#allocation2 + $0x250] sm:$0xff] %v313_v56  ;;  %378 = vst [vmem:[#allocation2 + $0x1a8] sm:$0xff] %v314_v57  ;;  %v396_v57 = vld [vmem:[%s6705_s2] sm:$0x3]  ;;  %v4035_v51 = vld [vmem:[#allocation6 + $0x10] ss:$0 sm:$0xff]  ;;  %v4041_v45 = vrot.slane %v392_v49, %v6715_v40  ;;  %v4076_v24 = vrot.slane %v3984_v50, %v6995_v28 }
  0x63   : > { %6988 = vst [vmem:[#allocation21_spill] sm:$0xff] %v3957_v0  ;;  %6989 = vst [vmem:[#allocation22_spill] sm:$0xff] %v3960_v25  ;;  %v4109_v0 = vld [vmem:[#allocation6 + $0x18] ss:$0 sm:$0xff] }
  0x64   : > { %6990 = vst [vmem:[#allocation23_spill] sm:$0xff] %v3963_v27  ;;  %379 = vst [vmem:[#allocation2 + $0x110] sm:$0xff] %v315_v61  ;;  %v3993_v61 = vrot.slane %v392_v49, %v3938_v53  ;;  %v2266_v40 = vmul.f32 0.0, %v4041_v45  ;;  %v2268_v25 = vmul.f32 %v4041_v45, %v3810_v1  ;;  %v2551_v26 = vmul.f32 %v4109_v0, %v3837_v8 }
  0x65   : > { %380 = vst [vmem:[#allocation2 + $0x48] sm:$0xff] %v316_v62  ;;  %381 = vst [vmem:[#allocation2 + $0x90] sm:$0xff] %v317_v63  ;;  %v3997_v62 = vrot.slane %v392_v49, %v6713_v54  ;;  %v4001_v63 = vrot.slane %v392_v49, %v6712_v32 }
  0x66   : > { %382 = vst [vmem:[#allocation2 + $0x160] sm:$0xff] %v318_v29  ;;  %383 = vst [vmem:[#allocation2 + $0x18] sm:$0xff] %v319_v30  ;;  %v4004_v29 = vrot.slane %v392_v49, %v3935_v52  ;;  %v4007_v30 = vrot.slane %v396_v57, %v3935_v52 }
  0x67   : > { %384 = vst [vmem:[#allocation2 + $0x1b8] sm:$0xff] %v320_v31  ;;  %385 = vst [vmem:[#allocation2 + $0x120] sm:$0xff] %v321_v35  ;;  %v4011_v31 = vrot.slane %v3984_v50, %v3935_v52  ;;  %v4015_v35 = vrot.slane %v392_v49, %v6711_v33  ;;  %v1108_v33 = vmul.f32 %v4076_v24, %v3837_v8 }
  0x68   : > { %386 = vst [vmem:[#allocation2 + $0x38] sm:$0xff] %v322_v36  ;;  %387 = vst [vmem:[#allocation2 + $0x148] sm:$0xff] %v323_v37  ;;  %v4019_v36 = vrot.slane %v392_v49, %v6710_v34  ;;  %v1031_v37 = vmul.f32 0.0, %v3993_v61  ;;  %v955_v52 = vadd.f32 %v4007_v30, %v3816_v3  ;;  %v4045_v34 = vrot.slane %v392_v49, %v6717_v41 }
  0x69   : > { %388 = vst [vmem:[#allocation2 + $0x108] sm:$0xff] %v324_v42  ;;  %389 = vst [vmem:[#allocation2 + $0xe0] sm:$0xff] %v325_v43  ;;  %v1103_v42 = vmul.f32 %v3997_v62, %v3816_v3  ;;  %v1243_v43 = vmul.f32 %v4001_v63, %v3834_v7  ;;  %v1527_v56 = vmul.f32 %v4015_v35, %v3816_v3 }
  0x6a   : > { %390 = vst [vmem:[#allocation2 + $0x228] sm:$0xff] %v326_v44  ;;  %391 = vst [vmem:[#allocation2 + $0x210] sm:$0xff] %v327_v48  ;;  %v1447_v44 = vmul.f32 0.0, %v4004_v29  ;;  %v1525_v48 = vmul.f32 %v4015_v35, %v3810_v1  ;;  %v1669_v55 = vmul.f32 %v4019_v36, %v3825_v5  ;;  %v1671_v46 = vmul.f32 %v4019_v36, %v3834_v7 }
  0x6b   : > { %v1167_v47 = vadd.f32 %v1103_v42, %v1031_v37  ;;  %v2550_v37 = vmul.f32 %v4035_v51, %v3834_v7  ;;  %v2552_v42 = vmul.f32 %v4035_v51, %v3840_v9  ;;  %v2344_v39 = vmul.f32 %v4045_v34, %v3816_v3 }
  0x6c   : > { %v1591_v32 = vadd.f32 %v1525_v48, %v1447_v44  ;;  %v1593_v54 = vadd.f32 %v1527_v56, %v1447_v44  ;;  %v2346_v56 = vmul.f32 %v4045_v34, %v3825_v5  ;;  %v4067_v44 = vrot.slane %v396_v57, %v3938_v53 }
  0x6d   : > { %v1307_v27 = vadd.f32 %v1243_v43, %v1167_v47  ;;  %v2410_v43 = vadd.f32 %v2344_v39, %v2266_v40  ;;  %v4071_v41 = vrot.slane %v3984_v50, %v3938_v53  ;;  %v1104_v53 = vmul.f32 %v4076_v24, %v3822_v4 }
  0x6e   : > { %v4060_v49 = vadd.f32 %v1669_v55, %v1591_v32  ;;  %v4062_v48 = vadd.f32 %v1671_v46, %v1593_v54  ;;  %v2412_v46 = vadd.f32 %v2346_v56, %v2268_v25  ;;  %v956_v55 = vadd.f32 %v4067_v44, %v3822_v4 }
  0x6f   : > { %v1371_v47 = vadd.f32 %v1307_v27, %v955_v52  ;;  %v4082_v57 = vadd.f32 %v2550_v37, %v2410_v43  ;;  %v1032_v27 = vmul.f32 0.0, %v4071_v41  ;;  %v6997_v40 = vsub.s32 7, %v3917_v38 }
  0x70   : > { %6993 = vst [vmem:[#allocation24_spill] sm:$0xff] %v4060_v49  ;;  %6994 = vst [vmem:[#allocation25_spill] sm:$0xff] %v4062_v48  ;;  %v6728_v54 = vrot.slane %v4060_v49, 7  ;;  %v6727_v32 = vrot.slane %v4062_v48, 7  ;;  %v4097_v52 = vadd.f32 %v2552_v42, %v2412_v46  ;;  %v1448_v37 = vmul.f32 0.0, %v4011_v31 }
  0x71   : > { %6996 = vst [vmem:[#allocation26_spill] sm:$0xff] %v4082_v57  ;;  %v4090_v28 = vrot.slane %v3984_v50, %v6997_v40  ;;  %v6999_v39 = vsub.s32 3, %v3917_v38  ;;  %v1168_v40 = vadd.f32 %v1104_v53, %v1032_v27  ;;  %v7001_v27 = vsub.s32 2, %v3917_v38 }
  0x72   : > { %v1937_v25 = vsel %vm1929_vm0, %v6728_v54, %v6727_v32  ;;  %6998 = vst [vmem:[#allocation27_spill] sm:$0xff] %v4097_v52  ;;  %v6738_v49 = vrot.slane %v4097_v52, 1  ;;  %v7002_v32 = vsub.s32 5, %v3917_v38  ;;  %v7003_v23 = vrot.slane %v4082_v57, 1 }
  0x73   : > { %v4103_v56 = vrot.slane %v3984_v50, %v6999_v39  ;;  %v2190_v43 = vadd.f32 %v1937_v25, %v1371_v47  ;;  %v1244_v48 = vmul.f32 %v4090_v28, %v3837_v8  ;;  %v7000_v39 = vsub.s32 6, %v3917_v38 }
  0x74   : > { %v4123_v53 = vrot.slane %v3984_v50, %v7001_v27  ;;  %v4128_v54 = vrot.slane %v3984_v50, %v7002_v32 }
  0x75   : > { %v1526_v42 = vmul.f32 %v4103_v56, %v3813_v2  ;;  %v1528_v46 = vmul.f32 %v4103_v56, %v3822_v4  ;;  %v4118_v47 = vrot.slane %v3984_v50, %v7000_v39  ;;  %v1308_v25 = vadd.f32 %v1244_v48, %v1168_v40 }
  0x76   : > { %v2818_v39 = vsel %vm2810_vm2, %v7003_v23, %v6738_v49  ;;  %v2267_v22 = vmul.f32 0.0, %v4123_v53  ;;  %v2269_v23 = vmul.f32 %v4123_v53, %v3813_v2  ;;  %v1451_v49 = vmul.f32 %v4004_v29, %v3810_v1 }
  0x77   : > { %v1592_v48 = vadd.f32 %v1526_v42, %v1448_v37  ;;  %v1594_v40 = vadd.f32 %v1528_v46, %v1448_v37  ;;  %v1670_v27 = vmul.f32 %v4118_v47, %v3828_v6  ;;  %v3007_v38 = vsel %vm4047_vm1, %v2818_v39, 0.0 }
  0x78   : > { %v1372_v50 = vadd.f32 %v1308_v25, %v956_v55  ;;  %v1672_v32 = vmul.f32 %v4118_v47, %v3837_v8  ;;  %v3071_v52 = vadd.f32 %v3007_v38, %v2190_v43  ;;  %v2345_v37 = vmul.f32 %v4128_v54, %v3822_v4 }
  0x79   : > { %v4144_v20 = vadd.f32 %v1670_v27, %v1592_v48  ;;  %v2347_v46 = vmul.f32 %v4128_v54, %v3828_v6  ;;  %v2553_v55 = vmul.f32 %v4109_v0, %v3844_v10  ;;  %v959_v25 = vadd.f32 %v4007_v30, %v3834_v7 }
  0x7a   : > { %v4150_v42 = vadd.f32 %v1672_v32, %v1594_v40  ;;  %3135 = vst [vmem:[%s4160_s24 + $0x10] sm:$0xff] %v3071_v52  ;;  %v2411_v43 = vadd.f32 %v2345_v37, %v2267_v22  ;;  %v1035_v39 = vmul.f32 %v3993_v61, %v3816_v3  ;;  %v1107_v48 = vmul.f32 %v3997_v62, %v3834_v7 }
  0x7b   : > { %7004 = vst [vmem:[#allocation28_spill] sm:$0xff] %v4144_v20  ;;  %v6749_v38 = vrot.slane %v4144_v20, 7  ;;  %v2413_v27 = vadd.f32 %v2347_v46, %v2269_v23  ;;  %v1247_v32 = vmul.f32 %v4001_v63, %v3847_v11  ;;  %v1453_v22 = vmul.f32 %v4004_v29, %v3816_v3 }
  0x7c   : > { %7005 = vst [vmem:[#allocation29_spill] sm:$0xff] %v4150_v42  ;;  %v6745_v40 = vrot.slane %v4150_v42, 7  ;;  %v4173_v57 = vadd.f32 %v2551_v26, %v2411_v43  ;;  %v1171_v52 = vadd.f32 %v1107_v48, %v1035_v39  ;;  %v1529_v37 = vmul.f32 %v4015_v35, %v3825_v5 }
  0x7d   : > { %v4184_v46 = vadd.f32 %v2553_v55, %v2413_v27  ;;  %v1531_v1 = vmul.f32 %v4015_v35, %v3834_v7  ;;  %v1673_v26 = vmul.f32 %v4019_v36, %v3840_v9  ;;  %v7006_v42 = vand.u32 15, %v3945_v58 }
  0x7e   : > { %v1939_v23 = vsel %vm1929_vm0, %v6749_v38, %v6745_v40  ;;  %v6748_v39 = vrot.slane %v4173_v57, 1  ;;  %v1311_v48 = vadd.f32 %v1247_v32, %v1171_v52  ;;  %v1595_v21 = vadd.f32 %v1529_v37, %v1451_v49 }
  0x7f   : > { %v2191_v43 = vadd.f32 %v1939_v23, %v1372_v50  ;;  %v6746_v60 = vrot.slane %v4184_v46, 1  ;;  %vm4194_vm3 = vcmp.lt.s32.totalorder %v7006_v42, 15  ;;  %v1597_v55 = vadd.f32 %v1531_v1, %v1453_v22 }
  0x80   : > { %v1675_v27 = vmul.f32 %v4019_v36, %v3847_v11  ;;  %v2270_v40 = vmul.f32 %v4041_v45, %v3816_v3  ;;  %v1375_v50 = vadd.f32 %v1311_v48, %v959_v25  ;;  %v4202_v23 = vadd.f32 %v1673_v26, %v1595_v21 }
  0x81   : > { %v2272_v49 = vmul.f32 %v4041_v45, %v3825_v5  ;;  %v2348_v58 = vmul.f32 %v4045_v34, %v3834_v7  ;;  %v2820_v42 = vsel %vm2810_vm2, %v6748_v39, %v6746_v60  ;;  %v2350_v3 = vmul.f32 %v4045_v34, %v3840_v9 }
  0x82   : > { %v4213_v32 = vadd.f32 %v1675_v27, %v1597_v55  ;;  %v2554_v21 = vmul.f32 %v4035_v51, %v3847_v11  ;;  %v3008_v25 = vsel %vm4047_vm1, %v2820_v42, 0.0  ;;  %v6750_v52 = vrot.slane %v4202_v23, 7 }
  0x83   : > { %v2414_v22 = vadd.f32 %v2348_v58, %v2270_v40  ;;  %v2556_v37 = vmul.f32 %v4035_v51, %v3854_v13  ;;  %v3072_v1 = vadd.f32 %v3008_v25, %v2191_v43  ;;  %v2416_v48 = vadd.f32 %v2350_v3, %v2272_v49 }
  0x84   : > { %7009 = vst [vmem:[#allocation30_spill] sm:$0xff] %v4213_v32  ;;  %v6747_v26 = vrot.slane %v4213_v32, 7  ;;  %v960_v55 = vadd.f32 %v4067_v44, %v3837_v8  ;;  %v1036_v60 = vmul.f32 %v4071_v41, %v3822_v4  ;;  %v1248_v40 = vmul.f32 %v4090_v28, %v3850_v12 }
  0x85   : > { %v4227_v27 = vadd.f32 %v2554_v21, %v2414_v22  ;;  %3136 = vst [vmem:[%s4160_s24 + $0x18] sm:$0xff] %v3072_v1  ;;  %v4241_v49 = vadd.f32 %v2556_v37, %v2416_v48  ;;  %v1452_v58 = vmul.f32 %v4011_v31, %v3813_v2  ;;  %v1454_v42 = vmul.f32 %v4011_v31, %v3822_v4 }
  0x86   : > { %v1945_v43 = vsel %vm1929_vm0, %v6750_v52, %v6747_v26  ;;  %v1172_v25 = vadd.f32 %v1108_v33, %v1036_v60  ;;  %v1530_v22 = vmul.f32 %v4103_v56, %v3828_v6  ;;  %v1532_v26 = vmul.f32 %v4103_v56, %v3837_v8 }
  0x87   : > { %7010 = vst [vmem:[#allocation31_spill] sm:$0xff] %v4241_v49  ;;  %v2194_v3 = vadd.f32 %v1945_v43, %v1375_v50  ;;  %v6753_v21 = vrot.slane %v4227_v27, 1  ;;  %v6752_v1 = vrot.slane %v4241_v49, 1  ;;  %v1674_v37 = vmul.f32 %v4118_v47, %v3844_v10 }
  0x88   : > { %v1676_v2 = vmul.f32 %v4118_v47, %v3850_v12  ;;  %v1312_v48 = vadd.f32 %v1248_v40, %v1172_v25  ;;  %v1596_v39 = vadd.f32 %v1530_v22, %v1452_v58  ;;  %v2271_v50 = vmul.f32 %v4123_v53, %v3822_v4 }
  0x89   : > { %v2273_v60 = vmul.f32 %v4123_v53, %v3828_v6  ;;  %v2826_v33 = vsel %vm2810_vm2, %v6753_v21, %v6752_v1  ;;  %v1598_v43 = vadd.f32 %v1532_v26, %v1454_v42  ;;  %v2349_v38 = vmul.f32 %v4128_v54, %v3837_v8 }
  0x8a   : > { %v2351_v40 = vmul.f32 %v4128_v54, %v3844_v10  ;;  %v3011_v4 = vsel %vm4194_vm3, %v2826_v33, 0.0  ;;  %v1376_v58 = vadd.f32 %v1312_v48, %v960_v55  ;;  %v4272_v25 = vadd.f32 %v1674_v37, %v1596_v39 }
  0x8b   : > { %v2555_v22 = vmul.f32 %v4109_v0, %v3850_v12  ;;  %v3075_v52 = vadd.f32 %v3011_v4, %v2194_v3  ;;  %v4276_v49 = vadd.f32 %v1676_v2, %v1598_v43  ;;  %v2415_v1 = vadd.f32 %v2349_v38, %v2271_v50 }
  0x8c   : > { %v2417_v26 = vadd.f32 %v2351_v40, %v2273_v60  ;;  %v6756_v42 = vrot.slane %v4272_v25, 7  ;;  %v2557_v21 = vmul.f32 %v4109_v0, %v3857_v14  ;;  %v963_v32 = vadd.f32 %v4007_v30, %v3847_v11 }
  0x8d   : > { %7011 = vst [vmem:[#allocation32_spill] sm:$0xff] %v4276_v49  ;;  %v1039_v39 = vmul.f32 %v3993_v61, %v3834_v7  ;;  %3139 = vst [vmem:[%s4160_s24 + $0x30] sm:$0xff] %v3075_v52  ;;  %v6755_v55 = vrot.slane %v4276_v49, 7  ;;  %v4287_v37 = vadd.f32 %v2555_v22, %v2415_v1  ;;  %v1111_v38 = vmul.f32 %v3997_v62, %v3847_v11 }
  0x8e   : > { %v1251_v3 = vmul.f32 %v4001_v63, %v3860_v15  ;;  %v4293_v2 = vadd.f32 %v2557_v21, %v2417_v26  ;;  %v1455_v48 = vmul.f32 %v4004_v29, %v3825_v5  ;;  %v1457_v50 = vmul.f32 %v4004_v29, %v3834_v7 }
  0x8f   : > { %v1533_v52 = vmul.f32 %v4015_v35, %v3840_v9  ;;  %v1947_v1 = vsel %vm1929_vm0, %v6756_v42, %v6755_v55  ;;  %v6760_v60 = vrot.slane %v4287_v37, 1  ;;  %v1175_v33 = vadd.f32 %v1111_v38, %v1039_v39 }
  0x90   : > { %7012 = vst [vmem:[#allocation33_spill] sm:$0xff] %v4293_v2  ;;  %v1535_v21 = vmul.f32 %v4015_v35, %v3847_v11  ;;  %v2195_v43 = vadd.f32 %v1947_v1, %v1376_v58  ;;  %v6757_v5 = vrot.slane %v4293_v2, 1  ;;  %v1677_v4 = vmul.f32 %v4019_v36, %v3854_v13 }
  0x91   : > { %v1599_v40 = vadd.f32 %v1533_v52, %v1455_v48  ;;  %v7013_v22 = vand.u32 15, %v3948_v59  ;;  %v1315_v55 = vadd.f32 %v1251_v3, %v1175_v33  ;;  %v1679_v39 = vmul.f32 %v4019_v36, %v3860_v15 }
  0x92   : > { %v1601_v42 = vadd.f32 %v1535_v21, %v1457_v50  ;;  %v2274_v58 = vmul.f32 %v4041_v45, %v3834_v7  ;;  %v2828_v38 = vsel %vm2810_vm2, %v6760_v60, %v6757_v5  ;;  %v2276_v48 = vmul.f32 %v4041_v45, %v3840_v9 }
  0x93   : > { %vm4314_vm4 = vcmp.lt.s32.totalorder %v7013_v22, 15  ;;  %v4327_v59 = vadd.f32 %v1677_v4, %v1599_v40  ;;  %v2352_v3 = vmul.f32 %v4045_v34, %v3847_v11  ;;  %v3012_v50 = vsel %vm4194_vm3, %v2828_v38, 0.0 }
  0x94   : > { %v1379_v52 = vadd.f32 %v1315_v55, %v963_v32  ;;  %v4335_v7 = vadd.f32 %v1679_v39, %v1601_v42  ;;  %v2354_v1 = vmul.f32 %v4045_v34, %v3854_v13  ;;  %v3076_v33 = vadd.f32 %v3012_v50, %v2195_v43 }
  0x95   : > { %v6759_v21 = vrot.slane %v4327_v59, 7  ;;  %v2418_v40 = vadd.f32 %v2352_v3, %v2274_v58  ;;  %v2558_v4 = vmul.f32 %v4035_v51, %v3860_v15  ;;  %v2560_v20 = vmul.f32 %v4035_v51, %v3868_v17 }
  0x96   : > { %7016 = vst [vmem:[#allocation34_spill] sm:$0xff] %v4335_v7  ;;  %v6758_v22 = vrot.slane %v4335_v7, 7  ;;  %v2420_v5 = vadd.f32 %v2354_v1, %v2276_v48  ;;  %v964_v32 = vadd.f32 %v4067_v44, %v3850_v12  ;;  %3140 = vst [vmem:[%s4160_s24 + $0x38] sm:$0xff] %v3076_v33  ;;  %v1040_v55 = vmul.f32 %v4071_v41, %v3837_v8 }
  0x97   : > { %v4348_v42 = vadd.f32 %v2558_v4, %v2418_v40  ;;  %v1112_v43 = vmul.f32 %v4076_v24, %v3850_v12  ;;  %v1252_v39 = vmul.f32 %v4090_v28, %v3865_v16  ;;  %v1456_v48 = vmul.f32 %v4011_v31, %v3828_v6 }
  0x98   : > { %v1953_v58 = vsel %vm1929_vm0, %v6759_v21, %v6758_v22  ;;  %v4361_v38 = vadd.f32 %v2560_v20, %v2420_v5  ;;  %v1458_v3 = vmul.f32 %v4011_v31, %v3837_v8  ;;  %v1534_v40 = vmul.f32 %v4103_v56, %v3844_v10 }
  0x99   : > { %v2198_v50 = vadd.f32 %v1953_v58, %v1379_v52  ;;  %v6764_v1 = vrot.slane %v4348_v42, 1  ;;  %v1176_v33 = vadd.f32 %v1112_v43, %v1040_v55  ;;  %v1536_v22 = vmul.f32 %v4103_v56, %v3850_v12 }
  0x9a   : > { %7017 = vst [vmem:[#allocation35_spill] sm:$0xff] %v4361_v38  ;;  %v6763_v4 = vrot.slane %v4361_v38, 1  ;;  %v1678_v5 = vmul.f32 %v4118_v47, %v3857_v14  ;;  %v1680_v6 = vmul.f32 %v4118_v47, %v3865_v16  ;;  %v1600_v21 = vadd.f32 %v1534_v40, %v1456_v48 }
  0x9b   : > { %v1316_v20 = vadd.f32 %v1252_v39, %v1176_v33  ;;  %v2275_v52 = vmul.f32 %v4123_v53, %v3837_v8  ;;  %v2277_v55 = vmul.f32 %v4123_v53, %v3844_v10  ;;  %v1602_v58 = vadd.f32 %v1536_v22, %v1458_v3 }
  0x9c   : > { %v2834_v43 = vsel %vm2810_vm2, %v6764_v1, %v6763_v4  ;;  %v2353_v60 = vmul.f32 %v4128_v54, %v3850_v12  ;;  %v2355_v39 = vmul.f32 %v4128_v54, %v3857_v14  ;;  %v4392_v33 = vadd.f32 %v1678_v5, %v1600_v21 }
  0x9d   : > { %v3015_v8 = vsel %vm4314_vm4, %v2834_v43, 0.0  ;;  %v1380_v48 = vadd.f32 %v1316_v20, %v964_v32  ;;  %v2559_v40 = vmul.f32 %v4109_v0, %v3865_v16  ;;  %v4396_v7 = vadd.f32 %v1680_v6, %v1602_v58 }
  0x9e   : > { %7018 = vst [vmem:[#allocation36_spill] sm:$0xff] %v4392_v33  ;;  %v3079_v38 = vadd.f32 %v3015_v8, %v2198_v50  ;;  %v2419_v4 = vadd.f32 %v2353_v60, %v2275_v52  ;;  %v2421_v22 = vadd.f32 %v2355_v39, %v2277_v55  ;;  %v6768_v3 = vrot.slane %v4392_v33, 7 }
  0x9f   : > { %7019 = vst [vmem:[#allocation37_spill] sm:$0xff] %v4396_v7  ;;  %v2561_v1 = vmul.f32 %v4109_v0, %v3871_v18  ;;  %v967_v2 = vadd.f32 %v4007_v30, %v3860_v15  ;;  %v1043_v21 = vmul.f32 %v3993_v61, %v3847_v11  ;;  %v6767_v32 = vrot.slane %v4396_v7, 7 }
  0xa0   : > { %3143 = vst [vmem:[%s4160_s24 + $0x50] sm:$0xff] %v3079_v38  ;;  %v4407_v5 = vadd.f32 %v2559_v40, %v2419_v4  ;;  %v1115_v60 = vmul.f32 %v3997_v62, %v3860_v15  ;;  %v1255_v50 = vmul.f32 %v4001_v63, %v3876_v19  ;;  %v1459_v20 = vmul.f32 %v4004_v29, %v3840_v9  ;;  %v7022_v40 = vld [vmem:[#allocation20_spill] sm:$0xff] }
  0xa1   : > { %v4413_v6 = vadd.f32 %v2561_v1, %v2421_v22  ;;  %v1461_v52 = vmul.f32 %v4004_v29, %v3847_v11  ;;  %v1537_v38 = vmul.f32 %v4015_v35, %v3854_v13  ;;  %v1955_v4 = vsel %vm1929_vm0, %v6768_v3, %v6767_v32 }
  0xa2   : > { %7020 = vst [vmem:[#allocation38_spill] sm:$0xff] %v4407_v5  ;;  %v6770_v55 = vrot.slane %v4407_v5, 1  ;;  %v1179_v43 = vadd.f32 %v1115_v60, %v1043_v21  ;;  %v1539_v1 = vmul.f32 %v4015_v35, %v3860_v15  ;;  %v2199_v58 = vadd.f32 %v1955_v4, %v1380_v48 }
  0xa3   : > { %7021 = vst [vmem:[#allocation39_spill] sm:$0xff] %v4413_v6  ;;  %v6769_v9 = vrot.slane %v4413_v6, 1  ;;  %v1603_v39 = vadd.f32 %v1537_v38, %v1459_v20  ;;  %v1681_v8 = vmul.f32 %v4019_v36, %v3868_v17  ;;  %v7023_v22 = vand.u32 15, %v7022_v40 }
  0xa4   : > { %v1319_v32 = vadd.f32 %v1255_v50, %v1179_v43  ;;  %v1605_v3 = vadd.f32 %v1539_v1, %v1461_v52  ;;  %v1683_v21 = vmul.f32 %v4019_v36, %v3876_v19  ;;  %v2278_v48 = vmul.f32 %v4041_v45, %v3847_v11 }
  0xa5   : > { %vm4434_vm5 = vcmp.lt.s32.totalorder %v7023_v22, 15  ;;  %v2836_v60 = vsel %vm2810_vm2, %v6770_v55, %v6769_v9  ;;  %v4447_v20 = vadd.f32 %v1681_v8, %v1603_v39  ;;  %v2280_v38 = vmul.f32 %v4041_v45, %v3854_v13  ;;  %v7028_v55 = vld [vmem:[#allocation13_spill] sm:$0xff] }
  0xa6   : > { %v2356_v50 = vmul.f32 %v4045_v34, %v3860_v15  ;;  %v3016_v52 = vsel %vm4314_vm4, %v2836_v60, 0.0  ;;  %v1383_v4 = vadd.f32 %v1319_v32, %v967_v2  ;;  %v4455_v11 = vadd.f32 %v1683_v21, %v1605_v3  ;;  %v7030_v21 = vld [vmem:[#allocation12_spill] sm:$0xff] }
  0xa7   : > { %7026 = vst [vmem:[#allocation20_spill] sm:$0xff] %v4447_v20  ;;  %v2358_v43 = vmul.f32 %v4045_v34, %v3868_v17  ;;  %v3080_v1 = vadd.f32 %v3016_v52, %v2199_v58  ;;  %v6773_v40 = vrot.slane %v4447_v20, 7  ;;  %v2562_v8 = vmul.f32 %v4035_v51, %v3876_v19 }
  0xa8   : > { %7027 = vst [vmem:[#allocation40_spill] sm:$0xff] %v4455_v11  ;;  %v2422_v39 = vadd.f32 %v2356_v50, %v2278_v48  ;;  %v6772_v22 = vrot.slane %v4455_v11, 7  ;;  %v2564_v26 = vmul.f32 %v4035_v51, %v7028_v55  ;;  %v968_v2 = vadd.f32 %v4067_v44, %v3865_v16 }
  0xa9   : > { %v2424_v9 = vadd.f32 %v2358_v43, %v2280_v38  ;;  %3144 = vst [vmem:[%s4160_s24 + $0x58] sm:$0xff] %v3080_v1  ;;  %v1044_v32 = vmul.f32 %v4071_v41, %v3850_v12  ;;  %v1116_v58 = vmul.f32 %v4076_v24, %v3865_v16  ;;  %v1256_v48 = vmul.f32 %v4090_v28, %v7030_v21 }
  0xaa   : > { %v4468_v3 = vadd.f32 %v2562_v8, %v2422_v39  ;;  %v1961_v60 = vsel %vm1929_vm0, %v6773_v40, %v6772_v22  ;;  %v1460_v50 = vmul.f32 %v4011_v31, %v3844_v10  ;;  %v1462_v52 = vmul.f32 %v4011_v31, %v3850_v12 }
  0xab   : > { %v4481_v38 = vadd.f32 %v2564_v26, %v2424_v9  ;;  %v2202_v43 = vadd.f32 %v1961_v60, %v1383_v4  ;;  %v1180_v39 = vadd.f32 %v1116_v58, %v1044_v32  ;;  %v1538_v8 = vmul.f32 %v4103_v56, %v3857_v14 }
  0xac   : > { %7029 = vst [vmem:[#allocation13_spill] sm:$0xff] %v4468_v3  ;;  %v6778_v1 = vrot.slane %v4468_v3, 1  ;;  %v1540_v22 = vmul.f32 %v4103_v56, %v3865_v16  ;;  %v1682_v9 = vmul.f32 %v4118_v47, %v3871_v18  ;;  %v1684_v10 = vmul.f32 %v4118_v47, %v7030_v21 }
  0xad   : > { %7031 = vst [vmem:[#allocation12_spill] sm:$0xff] %v4481_v38  ;;  %v6777_v11 = vrot.slane %v4481_v38, 1  ;;  %v1320_v26 = vadd.f32 %v1256_v48, %v1180_v39  ;;  %v1604_v40 = vadd.f32 %v1538_v8, %v1460_v50  ;;  %v2279_v4 = vmul.f32 %v4123_v53, %v3850_v12 }
  0xae   : > { %v2281_v32 = vmul.f32 %v4123_v53, %v3857_v14  ;;  %v1606_v60 = vadd.f32 %v1540_v22, %v1462_v52  ;;  %v2357_v6 = vmul.f32 %v4128_v54, %v3865_v16  ;;  %v2359_v48 = vmul.f32 %v4128_v54, %v3871_v18 }
  0xaf   : > { %v2842_v58 = vsel %vm2810_vm2, %v6778_v1, %v6777_v11  ;;  %v1384_v50 = vadd.f32 %v1320_v26, %v968_v2  ;;  %v4512_v39 = vadd.f32 %v1682_v9, %v1604_v40  ;;  %v2563_v8 = vmul.f32 %v4109_v0, %v7030_v21  ;;  %v7034_v1 = vld [vmem:[#allocation14_spill] sm:$0xff] }
  0xb0   : > { %v3019_v12 = vsel %vm4434_vm5, %v2842_v58, 0.0  ;;  %v4516_v3 = vadd.f32 %v1684_v10, %v1606_v60  ;;  %v2423_v11 = vadd.f32 %v2357_v6, %v2279_v4  ;;  %v2425_v22 = vadd.f32 %v2359_v48, %v2281_v32 }
  0xb1   : > { %7032 = vst [vmem:[#allocation41_spill] sm:$0xff] %v4512_v39  ;;  %v3083_v38 = vadd.f32 %v3019_v12, %v2202_v43  ;;  %v6784_v52 = vrot.slane %v4512_v39, 7  ;;  %v2565_v20 = vmul.f32 %v4109_v0, %v7034_v1  ;;  %v971_v5 = vadd.f32 %v4007_v30, %v3876_v19  ;;  %v7036_v43 = vld [vmem:[#allocation15_spill] sm:$0xff] }
  0xb2   : > { %7033 = vst [vmem:[#allocation42_spill] sm:$0xff] %v4516_v3  ;;  %v1047_v40 = vmul.f32 %v3993_v61, %v3860_v15  ;;  %v6783_v2 = vrot.slane %v4516_v3, 7  ;;  %v4527_v9 = vadd.f32 %v2563_v8, %v2423_v11  ;;  %v1119_v6 = vmul.f32 %v3997_v62, %v3876_v19 }
  0xb3   : > { %3147 = vst [vmem:[%s4160_s24 + $0x70] sm:$0xff] %v3083_v38  ;;  %v1259_v10 = vmul.f32 %v4001_v63, %v7036_v43  ;;  %v4533_v26 = vadd.f32 %v2565_v20, %v2425_v22  ;;  %v1463_v4 = vmul.f32 %v4004_v29, %v3854_v13  ;;  %v1465_v32 = vmul.f32 %v4004_v29, %v3860_v15  ;;  %v7038_v22 = vld [vmem:[#allocation21_spill] sm:$0xff] }
  0xb4   : > { %7035 = vst [vmem:[#allocation14_spill] sm:$0xff] %v4527_v9  ;;  %v1541_v38 = vmul.f32 %v4015_v35, %v3868_v17  ;;  %v1963_v11 = vsel %vm1929_vm0, %v6784_v52, %v6783_v2  ;;  %v6786_v58 = vrot.slane %v4527_v9, 1  ;;  %v1183_v60 = vadd.f32 %v1119_v6, %v1047_v40  ;;  %v2492_v6 = vld [vmem:[#allocation2 + $0x58] sm:$0xff] }
  0xb5   : > { %7037 = vst [vmem:[#allocation15_spill] sm:$0xff] %v4533_v26  ;;  %v1543_v20 = vmul.f32 %v4015_v35, %v3876_v19  ;;  %v2203_v48 = vadd.f32 %v1963_v11, %v1384_v50  ;;  %v6785_v13 = vrot.slane %v4533_v26, 1  ;;  %v1685_v8 = vmul.f32 %v4019_v36, %v7028_v55 }
  0xb6   : > { %v1607_v12 = vadd.f32 %v1541_v38, %v1463_v4  ;;  %v7039_v49 = vand.u32 15, %v7038_v22  ;;  %v1323_v2 = vadd.f32 %v1259_v10, %v1183_v60  ;;  %v1687_v40 = vmul.f32 %v4019_v36, %v7036_v43 }
  0xb7   : > { %v1609_v52 = vadd.f32 %v1543_v20, %v1465_v32  ;;  %v2282_v50 = vmul.f32 %v4041_v45, %v3860_v15  ;;  %v2844_v4 = vsel %vm2810_vm2, %v6786_v58, %v6785_v13  ;;  %v2284_v10 = vmul.f32 %v4041_v45, %v3868_v17  ;;  %v7044_v58 = vld [vmem:[#allocation17_spill] sm:$0xff] }
  0xb8   : > { %vm4554_vm6 = vcmp.lt.s32.totalorder %v7039_v49, 15  ;;  %v4567_v49 = vadd.f32 %v1685_v8, %v1607_v12  ;;  %v2360_v32 = vmul.f32 %v4045_v34, %v3876_v19  ;;  %v3020_v38 = vsel %vm4434_vm5, %v2844_v4, 0.0 }
  0xb9   : > { %v1387_v15 = vadd.f32 %v1323_v2, %v971_v5  ;;  %v4575_v11 = vadd.f32 %v1687_v40, %v1609_v52  ;;  %v2362_v60 = vmul.f32 %v4045_v34, %v7028_v55  ;;  %v3084_v20 = vadd.f32 %v3020_v38, %v2203_v48  ;;  %v7046_v48 = vld [vmem:[#allocation16_spill] sm:$0xff] }
  0xba   : > { %7042 = vst [vmem:[#allocation21_spill] sm:$0xff] %v4567_v49  ;;  %v6789_v22 = vrot.slane %v4567_v49, 7  ;;  %v2426_v12 = vadd.f32 %v2360_v32, %v2282_v50  ;;  %v2566_v8 = vmul.f32 %v4035_v51, %v2492_v6  ;;  %v2568_v26 = vmul.f32 %v4035_v51, %v7044_v58  ;;  %v4761_v49 = vld [vmem:[#allocation2 + $0x20] sm:$0xff] }
  0xbb   : > { %7043 = vst [vmem:[#allocation43_spill] sm:$0xff] %v4575_v11  ;;  %v6788_v17 = vrot.slane %v4575_v11, 7  ;;  %v2428_v13 = vadd.f32 %v2362_v60, %v2284_v10  ;;  %v972_v7 = vadd.f32 %v4067_v44, %v7030_v21  ;;  %3148 = vst [vmem:[%s4160_s24 + $0x78] sm:$0xff] %v3084_v20  ;;  %v1048_v52 = vmul.f32 %v4071_v41, %v3865_v16 }
  0xbc   : > { %v4587_v5 = vadd.f32 %v2566_v8, %v2426_v12  ;;  %v1120_v2 = vmul.f32 %v4076_v24, %v7030_v21  ;;  %v1260_v40 = vmul.f32 %v4090_v28, %v7046_v48  ;;  %v1464_v4 = vmul.f32 %v4011_v31, %v3857_v14 }
  0xbd   : > { %v1969_v50 = vsel %vm1929_vm0, %v6789_v22, %v6788_v17  ;;  %v4600_v6 = vadd.f32 %v2568_v26, %v2428_v13  ;;  %v1466_v10 = vmul.f32 %v4011_v31, %v3865_v16  ;;  %v1542_v20 = vmul.f32 %v4103_v56, %v3871_v18  ;;  %v2493_v13 = vld [vmem:[#allocation2 + $0x168] sm:$0xff] }
  0xbe   : > { %7045 = vst [vmem:[#allocation17_spill] sm:$0xff] %v4587_v5  ;;  %v2206_v32 = vadd.f32 %v1969_v50, %v1387_v15  ;;  %v6797_v38 = vrot.slane %v4587_v5, 1  ;;  %v1184_v60 = vadd.f32 %v1120_v2, %v1048_v52  ;;  %v1544_v8 = vmul.f32 %v4103_v56, %v7030_v21 }
  0xbf   : > { %7047 = vst [vmem:[#allocation16_spill] sm:$0xff] %v4600_v6  ;;  %v6792_v12 = vrot.slane %v4600_v6, 1  ;;  %v1686_v26 = vmul.f32 %v4118_v47, %v7034_v1  ;;  %v1688_v14 = vmul.f32 %v4118_v47, %v7046_v48  ;;  %v1608_v15 = vadd.f32 %v1542_v20, %v1464_v4  ;;  %v2495_v4 = vld [vmem:[#allocation2 + $0x1b0] sm:$0xff] }
  0xc0   : > { %v1324_v17 = vadd.f32 %v1260_v40, %v1184_v60  ;;  %v2283_v52 = vmul.f32 %v4123_v53, %v3865_v16  ;;  %v2285_v2 = vmul.f32 %v4123_v53, %v3871_v18  ;;  %v1610_v22 = vadd.f32 %v1544_v8, %v1466_v10 }
  0xc1   : > { %v2850_v50 = vsel %vm2810_vm2, %v6797_v38, %v6792_v12  ;;  %v2361_v48 = vmul.f32 %v4128_v54, %v7030_v21  ;;  %v2363_v40 = vmul.f32 %v4128_v54, %v7034_v1  ;;  %v4631_v18 = vadd.f32 %v1686_v26, %v1608_v15 }
  0xc2   : > { %v3023_v16 = vsel %vm4554_vm6, %v2850_v50, 0.0  ;;  %v1388_v60 = vadd.f32 %v1324_v17, %v972_v7  ;;  %v2567_v20 = vmul.f32 %v4109_v0, %v2493_v13  ;;  %v4634_v11 = vadd.f32 %v1688_v14, %v1610_v22  ;;  %v3424_v13 = vld [vmem:[#allocation2 + $0x78] sm:$0xff] }
  0xc3   : > { %7048 = vst [vmem:[#allocation44_spill] sm:$0xff] %v4631_v18  ;;  %v3087_v6 = vadd.f32 %v3023_v16, %v2206_v32  ;;  %v2427_v10 = vadd.f32 %v2361_v48, %v2283_v52  ;;  %v2429_v8 = vadd.f32 %v2363_v40, %v2285_v2  ;;  %v6794_v12 = vrot.slane %v4631_v18, 7  ;;  %v7051_v32 = vld [vmem:[#allocation18_spill] sm:$0xff]  ;;  %v3425_v52 = vld [vmem:[#allocation2 + $0x220] sm:$0xff] }
  0xc4   : > { %7049 = vst [vmem:[#allocation45_spill] sm:$0xff] %v4634_v11  ;;  %v2569_v21 = vmul.f32 %v4109_v0, %v2495_v4  ;;  %v975_v1 = vadd.f32 %v4007_v30, %v7036_v43  ;;  %v1051_v50 = vmul.f32 %v3993_v61, %v3876_v19  ;;  %v6793_v17 = vrot.slane %v4634_v11, 7 }
  0xc5   : > { %3151 = vst [vmem:[%s4160_s24 + $0x90] sm:$0xff] %v3087_v6  ;;  %v4644_v7 = vadd.f32 %v2567_v20, %v2427_v10  ;;  %v1123_v22 = vmul.f32 %v3997_v62, %v7036_v43  ;;  %v1263_v26 = vmul.f32 %v4001_v63, %v7051_v32  ;;  %v1467_v15 = vmul.f32 %v3424_v13, %v4004_v29 }
  0xc6   : > { %v4650_v14 = vadd.f32 %v2569_v21, %v2429_v8  ;;  %v1469_v2 = vmul.f32 %v3425_v52, %v4004_v29  ;;  %v1545_v19 = vmul.f32 %v4015_v35, %v7028_v55  ;;  %v1971_v6 = vsel %vm1929_vm0, %v6794_v12, %v6793_v17  ;;  %v7053_v55 = vld [vmem:[#allocation22_spill] sm:$0xff] }
  0xc7   : > { %7050 = vst [vmem:[#allocation46_spill] sm:$0xff] %v4644_v7  ;;  %v6796_v48 = vrot.slane %v4644_v7, 1  ;;  %v1187_v40 = vadd.f32 %v1123_v22, %v1051_v50  ;;  %v1547_v4 = vmul.f32 %v4015_v35, %v7036_v43  ;;  %v2207_v16 = vadd.f32 %v1971_v6, %v1388_v60  ;;  %v2496_v60 = vld [vmem:[#allocation2 + $0x20] sm:$0xff] }
  0xc8   : > { %7052 = vst [vmem:[#allocation18_spill] sm:$0xff] %v4650_v14  ;;  %v6795_v20 = vrot.slane %v4650_v14, 1  ;;  %v1611_v10 = vadd.f32 %v1545_v19, %v1467_v15  ;;  %v1689_v8 = vmul.f32 %v4019_v36, %v7044_v58  ;;  %v7054_v21 = vand.u32 15, %v7053_v55  ;;  %v4683_v15 = vld [vmem:[#allocation2 + $0x1f8] sm:$0xff]  ;;  %v4727_v14 = vld [vmem:[#allocation2 + $0xb0] sm:$0xff] }
  0xc9   : > { %v1327_v17 = vadd.f32 %v1263_v26, %v1187_v40  ;;  %v1613_v12 = vadd.f32 %v1547_v4, %v1469_v2  ;;  %v1691_v50 = vmul.f32 %v4019_v36, %v7051_v32  ;;  %v2286_v43 = vmul.f32 %v3425_v52, %v4041_v45  ;;  %v4687_v2 = vld [vmem:[#allocation2 + $0x58] sm:$0xff]  ;;  %v2498_v52 = vld [vmem:[#allocation2 + $0x248] sm:$0xff]  ;;  %v4695_v4 = vld [vmem:[#allocation2 + $0x1a0] sm:$0xff] }
  0xca   : > { %vm4669_vm7 = vcmp.lt.s32.totalorder %v7054_v21, 15  ;;  %v2852_v58 = vsel %vm2810_vm2, %v6796_v48, %v6795_v20  ;;  %v4681_v22 = vadd.f32 %v1689_v8, %v1611_v10  ;;  %v2288_v26 = vmul.f32 %v4683_v15, %v4041_v45 }
  0xcb   : > { %v2364_v32 = vmul.f32 %v4687_v2, %v4045_v34  ;;  %v3024_v19 = vsel %vm4554_vm6, %v2852_v58, 0.0  ;;  %v1391_v6 = vadd.f32 %v1327_v17, %v975_v1  ;;  %v4693_v40 = vadd.f32 %v1691_v50, %v1613_v12  ;;  %v4703_v58 = vld [vmem:[#allocation2 + $0x168] sm:$0xff]  ;;  %v3430_v17 = vld [vmem:[#allocation2 + $0x170] sm:$0xff] }
  0xcc   : > { %7057 = vst [vmem:[#allocation22_spill] sm:$0xff] %v4681_v22  ;;  %v2366_v10 = vmul.f32 %v4695_v4, %v4045_v34  ;;  %v3088_v8 = vadd.f32 %v3024_v19, %v2207_v16  ;;  %v6802_v55 = vrot.slane %v4681_v22, 7  ;;  %v2570_v20 = vmul.f32 %v4035_v51, %v2496_v60 }
  0xcd   : > { %7058 = vst [vmem:[#allocation47_spill] sm:$0xff] %v4693_v40  ;;  %v2430_v21 = vadd.f32 %v2364_v32, %v2286_v43  ;;  %v6801_v48 = vrot.slane %v4693_v40, 7  ;;  %v2572_v3 = vmul.f32 %v4035_v51, %v2498_v52  ;;  %v976_v12 = vadd.f32 %v4703_v58, %v4067_v44  ;;  %v4713_v43 = vld [vmem:[#allocation2 + $0xd0] sm:$0xff] }
  0xce   : > { %v2432_v38 = vadd.f32 %v2366_v10, %v2288_v26  ;;  %3152 = vst [vmem:[%s4160_s24 + $0x98] sm:$0xff] %v3088_v8  ;;  %v1052_v16 = vmul.f32 %v3430_v17, %v4071_v41  ;;  %v1124_v50 = vmul.f32 %v4703_v58, %v4076_v24  ;;  %v1264_v60 = vmul.f32 %v4713_v43, %v4090_v28 }
  0xcf   : > { %v4708_v1 = vadd.f32 %v2570_v20, %v2430_v21  ;;  %v1977_v26 = vsel %vm1929_vm0, %v6802_v55, %v6801_v48  ;;  %v3432_v20 = vld [vmem:[#allocation2 + $0x50] sm:$0xff]  ;;  %v1470_v19 = vmul.f32 %v3430_v17, %v4011_v31  ;;  %v1546_v40 = vmul.f32 %v4727_v14, %v4103_v56 }
  0xd0   : > { %v4722_v32 = vadd.f32 %v2572_v3, %v2432_v38  ;;  %v1468_v52 = vmul.f32 %v3432_v20, %v4011_v31  ;;  %v2210_v10 = vadd.f32 %v1977_v26, %v1391_v6  ;;  %v1188_v21 = vadd.f32 %v1124_v50, %v1052_v16  ;;  %v4734_v3 = vld [vmem:[#allocation2 + $0x1b0] sm:$0xff] }
  0xd1   : > { %7059 = vst [vmem:[#allocation48_spill] sm:$0xff] %v4708_v1  ;;  %v6810_v8 = vrot.slane %v4708_v1, 1  ;;  %v1548_v38 = vmul.f32 %v4703_v58, %v4103_v56  ;;  %v1690_v20 = vmul.f32 %v4734_v3, %v4118_v47  ;;  %v1692_v6 = vmul.f32 %v4713_v43, %v4118_v47  ;;  %v2497_v26 = vld [vmem:[#allocation2 + $0xd0] sm:$0xff] }
  0xd2   : > { %7060 = vst [vmem:[#allocation49_spill] sm:$0xff] %v4722_v32  ;;  %v6809_v11 = vrot.slane %v4722_v32, 1  ;;  %v1328_v16 = vadd.f32 %v1264_v60, %v1188_v21  ;;  %v1612_v50 = vadd.f32 %v1546_v40, %v1468_v52  ;;  %v2287_v48 = vmul.f32 %v3430_v17, %v4123_v53  ;;  %v2499_v40 = vld [vmem:[#allocation2 + $0x180] sm:$0xff] }
  0xd3   : > { %v2289_v55 = vmul.f32 %v4727_v14, %v4123_v53  ;;  %v1614_v22 = vadd.f32 %v1548_v38, %v1470_v19  ;;  %v2365_v18 = vmul.f32 %v4703_v58, %v4128_v54  ;;  %v2367_v60 = vmul.f32 %v4734_v3, %v4128_v54 }
  0xd4   : > { %v2858_v7 = vsel %vm2810_vm2, %v6810_v8, %v6809_v11  ;;  %v1392_v52 = vadd.f32 %v1328_v16, %v976_v12  ;;  %v4754_v21 = vadd.f32 %v1690_v20, %v1612_v50  ;;  %v2571_v32 = vmul.f32 %v4109_v0, %v2497_v26 }
  0xd5   : > { %v3027_v17 = vsel %vm4669_vm7, %v2858_v7, 0.0  ;;  %v4757_v5 = vadd.f32 %v1692_v6, %v1614_v22  ;;  %v2431_v19 = vadd.f32 %v2365_v18, %v2287_v48  ;;  %v2433_v38 = vadd.f32 %v2367_v60, %v2289_v55  ;;  %v4773_v48 = vld [vmem:[#allocation2 + $0x208] sm:$0xff] }
  0xd6   : > { %7061 = vst [vmem:[#allocation50_spill] sm:$0xff] %v4754_v21  ;;  %v3091_v1 = vadd.f32 %v3027_v17, %v2210_v10  ;;  %v6817_v11 = vrot.slane %v4754_v21, 7  ;;  %v2573_v8 = vmul.f32 %v4109_v0, %v2499_v40  ;;  %v979_v9 = vadd.f32 %v4761_v49, %v4007_v30  ;;  %v4794_v40 = vld [vmem:[#allocation2 + $0x248] sm:$0xff] }
  0xd7   : > { %7062 = vst [vmem:[#allocation51_spill] sm:$0xff] %v4757_v5  ;;  %v1055_v7 = vmul.f32 %v4687_v2, %v3993_v61  ;;  %v6814_v12 = vrot.slane %v4757_v5, 7  ;;  %v4769_v10 = vadd.f32 %v2571_v32, %v2431_v19  ;;  %v1127_v18 = vmul.f32 %v4761_v49, %v3997_v62  ;;  %v7065_v19 = vld [vmem:[#allocation23_spill] sm:$0xff] }
  0xd8   : > { %3155 = vst [vmem:[%s4160_s24 + $0xb0] sm:$0xff] %v3091_v1  ;;  %v1267_v22 = vmul.f32 %v4773_v48, %v4001_v63  ;;  %v4777_v55 = vadd.f32 %v2573_v8, %v2433_v38  ;;  %v1471_v20 = vmul.f32 %v4683_v15, %v4004_v29  ;;  %v1473_v1 = vmul.f32 %v4687_v2, %v4004_v29 }
  0xd9   : > { %7063 = vst [vmem:[#allocation52_spill] sm:$0xff] %v4769_v10  ;;  %v1549_v32 = vmul.f32 %v4695_v4, %v4015_v35  ;;  %v1979_v6 = vsel %vm1929_vm0, %v6817_v11, %v6814_v12  ;;  %v6816_v26 = vrot.slane %v4769_v10, 1  ;;  %v1191_v16 = vadd.f32 %v1127_v18, %v1055_v7 }
  0xda   : > { %7064 = vst [vmem:[#allocation53_spill] sm:$0xff] %v4777_v55  ;;  %v1551_v8 = vmul.f32 %v4761_v49, %v4015_v35  ;;  %v2211_v50 = vadd.f32 %v1979_v6, %v1392_v52  ;;  %v6815_v15 = vrot.slane %v4777_v55, 1  ;;  %v1693_v17 = vmul.f32 %v4794_v40, %v4019_v36 }
  0xdb   : > { %v1615_v60 = vadd.f32 %v1549_v32, %v1471_v20  ;;  %v7066_v38 = vand.u32 15, %v7065_v19  ;;  %v1331_v12 = vadd.f32 %v1267_v22, %v1191_v16  ;;  %v1695_v18 = vmul.f32 %v4773_v48, %v4019_v36  ;;  %v2500_v20 = vld [vmem:[#allocation2 + $0x208] sm:$0xff] }
  0xdc   : > { %v1617_v7 = vadd.f32 %v1551_v8, %v1473_v1  ;;  %v2290_v52 = vmul.f32 %v4687_v2, %v4041_v45  ;;  %v2860_v32 = vsel %vm2810_vm2, %v6816_v26, %v6815_v15  ;;  %v2292_v22 = vmul.f32 %v4695_v4, %v4041_v45  ;;  %v2502_v16 = vld [vmem:[#allocation2 + $0xe8] sm:$0xff] }
  0xdd   : > { %vm4800_vm8 = vcmp.lt.s32.totalorder %v7066_v38, 15  ;;  %v4813_v6 = vadd.f32 %v1693_v17, %v1615_v60  ;;  %v2368_v1 = vmul.f32 %v4761_v49, %v4045_v34  ;;  %v3028_v2 = vsel %vm4669_vm7, %v2860_v32, 0.0 }
  0xde   : > { %v1395_v8 = vadd.f32 %v1331_v12, %v979_v9  ;;  %v4821_v19 = vadd.f32 %v1695_v18, %v1617_v7  ;;  %v2370_v38 = vmul.f32 %v4794_v40, %v4045_v34  ;;  %v3092_v15 = vadd.f32 %v3028_v2, %v2211_v50  ;;  %v4838_v7 = vld [vmem:[#allocation2 + $0xf8] sm:$0xff] }
  0xdf   : > { %7069 = vst [vmem:[#allocation23_spill] sm:$0xff] %v4813_v6  ;;  %v6821_v60 = vrot.slane %v4813_v6, 7  ;;  %v2434_v17 = vadd.f32 %v2368_v1, %v2290_v52  ;;  %v2574_v26 = vmul.f32 %v4035_v51, %v2500_v20  ;;  %v2576_v10 = vmul.f32 %v4035_v51, %v2502_v16  ;;  %v7075_v6 = vld [vmem:[#allocation19_spill] sm:$0xff] }
  0xe0   : > { %7070 = vst [vmem:[#allocation54_spill] sm:$0xff] %v4821_v19  ;;  %v6820_v11 = vrot.slane %v4821_v19, 7  ;;  %v2436_v55 = vadd.f32 %v2370_v38, %v2292_v22  ;;  %v980_v13 = vadd.f32 %v4713_v43, %v4067_v44  ;;  %3156 = vst [vmem:[%s4160_s24 + $0xb8] sm:$0xff] %v3092_v15  ;;  %v1056_v12 = vmul.f32 %v4703_v58, %v4071_v41 }
  0xe1   : > { %v4832_v9 = vadd.f32 %v2574_v26, %v2434_v17  ;;  %v1128_v50 = vmul.f32 %v4713_v43, %v4076_v24  ;;  %v1268_v18 = vmul.f32 %v4838_v7, %v4090_v28  ;;  %v1472_v26 = vmul.f32 %v4727_v14, %v4011_v31 }
  0xe2   : > { %v1985_v51 = vsel %vm1929_vm0, %v6821_v60, %v6820_v11  ;;  %v4847_v15 = vadd.f32 %v2576_v10, %v2436_v55  ;;  %v1474_v52 = vmul.f32 %v4703_v58, %v4011_v31  ;;  %v1550_v1 = vmul.f32 %v4734_v3, %v4103_v56  ;;  %v4859_v10 = vld [vmem:[#allocation2 + $0x180] sm:$0xff] }
  0xe3   : > { %7071 = vst [vmem:[#allocation55_spill] sm:$0xff] %v4832_v9  ;;  %v2214_v20 = vadd.f32 %v1985_v51, %v1395_v8  ;;  %v6826_v32 = vrot.slane %v4832_v9, 1  ;;  %v1192_v22 = vadd.f32 %v1128_v50, %v1056_v12  ;;  %v1552_v2 = vmul.f32 %v4713_v43, %v4103_v56  ;;  %v2501_v8 = vld [vmem:[#allocation2 + $0xf8] sm:$0xff] }
  0xe4   : > { %7072 = vst [vmem:[#allocation56_spill] sm:$0xff] %v4847_v15  ;;  %v6825_v16 = vrot.slane %v4847_v15, 1  ;;  %v1694_v14 = vmul.f32 %v4859_v10, %v4118_v47  ;;  %v1696_v55 = vmul.f32 %v4838_v7, %v4118_v47  ;;  %v1616_v17 = vadd.f32 %v1550_v1, %v1472_v26  ;;  %v2503_v26 = vld [vmem:[#allocation2 + $0x238] sm:$0xff] }
  0xe5   : > { %v1332_v38 = vadd.f32 %v1268_v18, %v1192_v22  ;;  %v2291_v12 = vmul.f32 %v4703_v58, %v4123_v53  ;;  %v2293_v50 = vmul.f32 %v4734_v3, %v4123_v53  ;;  %v1618_v11 = vadd.f32 %v1552_v2, %v1474_v52 }
  0xe6   : > { %v2866_v51 = vsel %vm2810_vm2, %v6826_v32, %v6825_v16  ;;  %v2369_v60 = vmul.f32 %v4713_v43, %v4128_v54  ;;  %v2371_v18 = vmul.f32 %v4859_v10, %v4128_v54  ;;  %v4880_v1 = vadd.f32 %v1694_v14, %v1616_v17 }
  0xe7   : > { %v3031_v58 = vsel %vm4800_vm8, %v2866_v51, 0.0  ;;  %v1396_v22 = vadd.f32 %v1332_v38, %v980_v13  ;;  %v2575_v15 = vmul.f32 %v4109_v0, %v2501_v8  ;;  %v4883_v9 = vadd.f32 %v1696_v55, %v1618_v11 }
  0xe8   : > { %7073 = vst [vmem:[#allocation57_spill] sm:$0xff] %v4880_v1  ;;  %v3095_v19 = vadd.f32 %v3031_v58, %v2214_v20  ;;  %v2435_v52 = vadd.f32 %v2369_v60, %v2291_v12  ;;  %v2437_v2 = vadd.f32 %v2371_v18, %v2293_v50  ;;  %v6831_v16 = vrot.slane %v4880_v1, 7  ;;  %v4919_v18 = vld [vmem:[#allocation2 + $0xe8] sm:$0xff] }
  0xe9   : > { %7074 = vst [vmem:[#allocation58_spill] sm:$0xff] %v4883_v9  ;;  %v2577_v32 = vmul.f32 %v4109_v0, %v2503_v26  ;;  %v413_v21 = vadd.s32 120, %v7075_v6  ;;  %v983_v39 = vadd.f32 %v4773_v48, %v4007_v30  ;;  %v6830_v13 = vrot.slane %v4883_v9, 7  ;;  %v4900_v0 = vld [vmem:[#allocation2 + $0x198] sm:$0xff] }
  0xea   : > { %3159 = vst [vmem:[%s4160_s24 + $0xd0] sm:$0xff] %v3095_v19  ;;  %v4892_v14 = vadd.f32 %v2575_v15, %v2435_v52  ;;  %v1059_v11 = vmul.f32 %v4761_v49, %v3993_v61  ;;  %v1131_v60 = vmul.f32 %v4773_v48, %v3997_v62  ;;  %v1271_v8 = vmul.f32 %v4900_v0, %v4001_v63  ;;  %v2504_v52 = vld [vmem:[#allocation2 + $0x198] sm:$0xff] }
  0xeb   : > { %v4898_v20 = vadd.f32 %v2577_v32, %v2437_v2  ;;  %v539_v55 = vand.u32 15, %v413_v21  ;;  %v1475_v19 = vmul.f32 %v4695_v4, %v4004_v29  ;;  %v1987_v15 = vsel %vm1929_vm0, %v6831_v16, %v6830_v13 }
  0xec   : > { %7076 = vst [vmem:[#allocation19_spill] sm:$0xff] %v4892_v14  ;;  %v6833_v38 = vrot.slane %v4892_v14, 1  ;;  %v1195_v17 = vadd.f32 %v1131_v60, %v1059_v11  ;;  %v1477_v21 = vmul.f32 %v4761_v49, %v4004_v29  ;;  %v2215_v32 = vadd.f32 %v1987_v15, %v1396_v22  ;;  %v2506_v15 = vld [vmem:[#allocation2 + $0x1e8] sm:$0xff] }
  0xed   : > { %7077 = vst [vmem:[#allocation59_spill] sm:$0xff] %v4898_v20  ;;  %v6832_v12 = vrot.slane %v4898_v20, 1  ;;  %v1553_v50 = vmul.f32 %v4794_v40, %v4015_v35  ;;  %v1555_v4 = vmul.f32 %v4773_v48, %v4015_v35  ;;  %v1697_v26 = vmul.f32 %v4919_v18, %v4019_v36 }
  0xee   : > { %v1335_v51 = vadd.f32 %v1271_v8, %v1195_v17  ;;  %v1699_v58 = vmul.f32 %v4900_v0, %v4019_v36  ;;  %vm4930_vm9 = vcmp.lt.s32.totalorder %v539_v55, 15  ;;  %v2294_v60 = vmul.f32 %v4761_v49, %v4041_v45  ;;  %v4946_v49 = vld [vmem:[#allocation6 + $0x10] ss:$0 sm:$0xff] }
  0xef   : > { %v2868_v22 = vsel %vm2810_vm2, %v6833_v38, %v6832_v12  ;;  %v1619_v11 = vadd.f32 %v1553_v50, %v1475_v19  ;;  %v2296_v8 = vmul.f32 %v4794_v40, %v4041_v45  ;;  %v1621_v16 = vadd.f32 %v1555_v4, %v1477_v21 }
  0xf0   : > { %v3032_v17 = vsel %vm4800_vm8, %v2868_v22, 0.0  ;;  %v1399_v13 = vadd.f32 %v1335_v51, %v983_v39  ;;  %v2372_v55 = vmul.f32 %v4773_v48, %v4045_v34  ;;  %v2374_v19 = vmul.f32 %v4919_v18, %v4045_v34 }
  0xf1   : > { %v3096_v12 = vadd.f32 %v3032_v17, %v2215_v32  ;;  %v4942_v38 = vadd.f32 %v1697_v26, %v1619_v11  ;;  %v2578_v50 = vmul.f32 %v4946_v49, %v2504_v52  ;;  %v4949_v20 = vadd.f32 %v1699_v58, %v1621_v16  ;;  %v4963_v58 = vld [vmem:[#allocation2 + $0x80] sm:$0xff]  ;;  %v4983_v17 = vld [vmem:[#allocation2 + $0x238] sm:$0xff] }
  0xf2   : > { %v2438_v9 = vadd.f32 %v2372_v55, %v2294_v60  ;;  %v2580_v5 = vmul.f32 %v4946_v49, %v2506_v15  ;;  %v984_v39 = vadd.f32 %v4838_v7, %v4067_v44  ;;  %v2440_v32 = vadd.f32 %v2374_v19, %v2296_v8 }
  0xf3   : > { %7080 = vst [vmem:[#allocation60_spill] sm:$0xff] %v4942_v38  ;;  %7081 = vst [vmem:[#allocation61_spill] sm:$0xff] %v4949_v20  ;;  %v6837_v21 = vrot.slane %v4942_v38, 7  ;;  %v1060_v51 = vmul.f32 %v4713_v43, %v4071_v41  ;;  %v1132_v4 = vmul.f32 %v4838_v7, %v4076_v24  ;;  %v6836_v26 = vrot.slane %v4949_v20, 7  ;;  %v2507_v20 = vld [vmem:[#allocation2] sm:$0xff] }
  0xf4   : > { %3160 = vst [vmem:[%s4160_s24 + $0xd8] sm:$0xff] %v3096_v12  ;;  %v4961_v16 = vadd.f32 %v2578_v50, %v2438_v9  ;;  %v1272_v52 = vmul.f32 %v4963_v58, %v4090_v28  ;;  %v1476_v12 = vmul.f32 %v4734_v3, %v4011_v31  ;;  %v4969_v22 = vadd.f32 %v2580_v5, %v2440_v32 }
  0xf5   : > { %v1196_v11 = vadd.f32 %v1132_v4, %v1060_v51  ;;  %v1478_v60 = vmul.f32 %v4713_v43, %v4011_v31  ;;  %v1554_v8 = vmul.f32 %v4859_v10, %v4103_v56  ;;  %v1993_v9 = vsel %vm1929_vm0, %v6837_v21, %v6836_v26  ;;  %v2505_v51 = vld [vmem:[#allocation2 + $0x80] sm:$0xff] }
  0xf6   : > { %7082 = vst [vmem:[#allocation62_spill] sm:$0xff] %v4961_v16  ;;  %7083 = vst [vmem:[#allocation63_spill] sm:$0xff] %v4969_v22  ;;  %v1556_v3 = vmul.f32 %v4838_v7, %v4103_v56  ;;  %v1698_v55 = vmul.f32 %v4983_v17, %v4118_v47  ;;  %v2218_v19 = vadd.f32 %v1993_v9, %v1399_v13  ;;  %v6840_v50 = vrot.slane %v4969_v22, 1 }
  0xf7   : > { %v1336_v5 = vadd.f32 %v1272_v52, %v1196_v11  ;;  %v1620_v32 = vadd.f32 %v1554_v8, %v1476_v12  ;;  %v1700_v26 = vmul.f32 %v4963_v58, %v4118_v47  ;;  %v2295_v21 = vmul.f32 %v4713_v43, %v4123_v53  ;;  %v5009_v8 = vld [vmem:[#allocation6 + $0x18] ss:$0 sm:$0xff] }
  0xf8   : > { %v1622_v4 = vadd.f32 %v1556_v3, %v1478_v60  ;;  %v2297_v15 = vmul.f32 %v4859_v10, %v4123_v53  ;;  %v7084_v13 = vrot.slane %v4961_v16, 1  ;;  %v2373_v12 = vmul.f32 %v4838_v7, %v4128_v54 }
  0xf9   : > { %v4999_v52 = vadd.f32 %v1698_v55, %v1620_v32  ;;  %v2375_v60 = vmul.f32 %v4983_v17, %v4128_v54  ;;  %v2579_v3 = vmul.f32 %v5009_v8, %v2505_v51  ;;  %v2581_v55 = vmul.f32 %v5009_v8, %v2507_v20 }
  0xfa   : > { %v2874_v9 = vsel %vm2810_vm2, %v7084_v13, %v6840_v50  ;;  %v5005_v43 = vadd.f32 %v1700_v26, %v1622_v4  ;;  %v1400_v13 = vadd.f32 %v1336_v5, %v984_v39  ;;  %v2439_v50 = vadd.f32 %v2373_v12, %v2295_v21  ;;  %v5023_v39 = vld [vmem:[#allocation2 + $0xa0] sm:$0xff] }
  0xfb   : > { %7085 = vst [vmem:[#allocation64_spill] sm:$0xff] %v4999_v52  ;;  %v3035_v11 = vsel %vm4930_vm9, %v2874_v9, 0.0  ;;  %v6844_v32 = vrot.slane %v4999_v52, 7  ;;  %v2441_v38 = vadd.f32 %v2375_v60, %v2297_v15  ;;  %v415_v26 = vadd.s32 136, %v7075_v6 }
  0xfc   : > { %7086 = vst [vmem:[#allocation65_spill] sm:$0xff] %v5005_v43  ;;  %v3099_v22 = vadd.f32 %v3035_v11, %v2218_v19  ;;  %v6843_v16 = vrot.slane %v5005_v43, 7  ;;  %v5017_v4 = vadd.f32 %v2579_v3, %v2439_v50  ;;  %v1063_v9 = vmul.f32 %v4773_v48, %v3993_v61  ;;  %v2510_v43 = vld [vmem:[#allocation2 + $0x1d8] sm:$0xff] }
  0xfd   : > { %v1135_v19 = vmul.f32 %v4900_v0, %v3997_v62  ;;  %v1275_v20 = vmul.f32 %v5023_v39, %v4001_v63  ;;  %v553_v15 = vand.u32 15, %v415_v26  ;;  %v1479_v50 = vmul.f32 %v4794_v40, %v4004_v29 }
  0xfe   : > { %3163 = vst [vmem:[%s4160_s24 + $0xf0] sm:$0xff] %v3099_v22  ;;  %7087 = vst [vmem:[#allocation66_spill] sm:$0xff] %v5017_v4  ;;  %v1995_v21 = vsel %vm1929_vm0, %v6844_v32, %v6843_v16  ;;  %v5032_v22 = vadd.f32 %v2581_v55, %v2441_v38  ;;  %v6854_v5 = vrot.slane %v5017_v4, 1  ;;  %v987_v51 = vadd.f32 %v4900_v0, %v4007_v30  ;;  %v5050_v16 = vld [vmem:[#allocation2 + $0x1e8] sm:$0xff] }
  0xff   : > { %v1199_v12 = vadd.f32 %v1135_v19, %v1063_v9  ;;  %v1481_v11 = vmul.f32 %v4773_v48, %v4004_v29  ;;  %v2219_v60 = vadd.f32 %v1995_v21, %v1400_v13  ;;  %v1557_v38 = vmul.f32 %v4919_v18, %v4015_v35  ;;  %v2508_v21 = vld [vmem:[#allocation2 + $0xa0] sm:$0xff] }
 0x100   : > { %7088 = vst [vmem:[#allocation67_spill] sm:$0xff] %v5032_v22  ;;  %v6851_v3 = vrot.slane %v5032_v22, 1  ;;  %v1559_v55 = vmul.f32 %v4900_v0, %v4015_v35  ;;  %vm5046_vm10 = vcmp.lt.s32.totalorder %v553_v15, 15  ;;  %v1701_v9 = vmul.f32 %v5050_v16, %v4019_v36 }
 0x101   : > { %v1339_v26 = vadd.f32 %v1275_v20, %v1199_v12  ;;  %v1703_v13 = vmul.f32 %v5023_v39, %v4019_v36  ;;  %v2298_v19 = vmul.f32 %v4773_v48, %v4041_v45  ;;  %v1623_v32 = vadd.f32 %v1557_v38, %v1479_v50 }
 0x102   : > { %v2876_v15 = vsel %vm2810_vm2, %v6854_v5, %v6851_v3  ;;  %v1625_v20 = vadd.f32 %v1559_v55, %v1481_v11  ;;  %v2300_v12 = vmul.f32 %v4919_v18, %v4041_v45  ;;  %v2376_v48 = vmul.f32 %v4900_v0, %v4045_v34 }
 0x103   : > { %v3036_v52 = vsel %vm4930_vm9, %v2876_v15, 0.0  ;;  %v1403_v14 = vadd.f32 %v1339_v26, %v987_v51  ;;  %v2378_v22 = vmul.f32 %v5050_v16, %v4045_v34  ;;  %v5071_v1 = vadd.f32 %v1701_v9, %v1623_v32 }
 0x104   : > { %v3100_v4 = vadd.f32 %v3036_v52, %v2219_v60  ;;  %v5073_v50 = vadd.f32 %v1703_v13, %v1625_v20  ;;  %v2582_v11 = vmul.f32 %v4946_v49, %v2508_v21  ;;  %v2442_v38 = vadd.f32 %v2376_v48, %v2298_v19 }
 0x105   : > { %7091 = vst [vmem:[#allocation68_spill] sm:$0xff] %v5071_v1  ;;  %v2444_v55 = vadd.f32 %v2378_v22, %v2300_v12  ;;  %v2584_v3 = vmul.f32 %v4946_v49, %v2510_v43  ;;  %v988_v2 = vadd.f32 %v4963_v58, %v4067_v44  ;;  %v6853_v51 = vrot.slane %v5071_v1, 7  ;;  %v5090_v22 = vld [vmem:[#allocation2 + $0x88] sm:$0xff] }
 0x106   : > { %7092 = vst [vmem:[#allocation69_spill] sm:$0xff] %v5073_v50  ;;  %3164 = vst [vmem:[%s4160_s24 + $0xf8] sm:$0xff] %v3100_v4  ;;  %v6852_v26 = vrot.slane %v5073_v50, 7  ;;  %v1064_v52 = vmul.f32 %v4838_v7, %v4071_v41  ;;  %v1136_v32 = vmul.f32 %v4963_v58, %v4076_v24  ;;  %v5086_v60 = vadd.f32 %v2582_v11, %v2442_v38  ;;  %v5109_v38 = vld [vmem:[#allocation2] sm:$0xff] }
 0x107   : > { %v5088_v9 = vadd.f32 %v2584_v3, %v2444_v55  ;;  %v1276_v43 = vmul.f32 %v5090_v22, %v4090_v28  ;;  %v1480_v4 = vmul.f32 %v4859_v10, %v4011_v31  ;;  %v1482_v21 = vmul.f32 %v4838_v7, %v4011_v31 }
 0x108   : > { %7093 = vst [vmem:[#allocation70_spill] sm:$0xff] %v5086_v60  ;;  %v2001_v13 = vsel %vm1929_vm0, %v6853_v51, %v6852_v26  ;;  %v1200_v19 = vadd.f32 %v1136_v32, %v1064_v52  ;;  %v1558_v3 = vmul.f32 %v4983_v17, %v4103_v56  ;;  %v6857_v20 = vrot.slane %v5086_v60, 1  ;;  %v2509_v32 = vld [vmem:[#allocation2 + $0x88] sm:$0xff] }
 0x109   : > { %7094 = vst [vmem:[#allocation71_spill] sm:$0xff] %v5088_v9  ;;  %v2222_v15 = vadd.f32 %v2001_v13, %v1403_v14  ;;  %v6856_v12 = vrot.slane %v5088_v9, 1  ;;  %v1560_v10 = vmul.f32 %v4963_v58, %v4103_v56  ;;  %v1702_v55 = vmul.f32 %v5109_v38, %v4118_v47 }
 0x10a   : > { %v1340_v48 = vadd.f32 %v1276_v43, %v1200_v19  ;;  %v1624_v11 = vadd.f32 %v1558_v3, %v1480_v4  ;;  %v1704_v52 = vmul.f32 %v5090_v22, %v4118_v47  ;;  %v2299_v43 = vmul.f32 %v4838_v7, %v4123_v53  ;;  %v2511_v19 = vld [vmem:[#allocation2 + $0x1c0] sm:$0xff] }
 0x10b   : > { %v2882_v14 = vsel %vm2810_vm2, %v6857_v20, %v6856_v12  ;;  %v1626_v13 = vadd.f32 %v1560_v10, %v1482_v21  ;;  %v2301_v4 = vmul.f32 %v4983_v17, %v4123_v53  ;;  %v2377_v51 = vmul.f32 %v4963_v58, %v4128_v54 }
 0x10c   : > { %v3039_v3 = vsel %vm5046_vm10, %v2882_v14, 0.0  ;;  %v5126_v26 = vadd.f32 %v1702_v55, %v1624_v11  ;;  %v2379_v21 = vmul.f32 %v5109_v38, %v4128_v54  ;;  %v2583_v7 = vmul.f32 %v5009_v8, %v2509_v32 }
 0x10d   : > { %v3103_v5 = vadd.f32 %v3039_v3, %v2222_v15  ;;  %v5130_v9 = vadd.f32 %v1704_v52, %v1626_v13  ;;  %v1404_v10 = vadd.f32 %v1340_v48, %v988_v2  ;;  %v2443_v12 = vadd.f32 %v2377_v51, %v2299_v43  ;;  %v5146_v51 = vld [vmem:[#allocation2 + $0x1e0] sm:$0xff] }
 0x10e   : > { %7095 = vst [vmem:[#allocation72_spill] sm:$0xff] %v5126_v26  ;;  %v2585_v20 = vmul.f32 %v5009_v8, %v2511_v19  ;;  %v417_v50 = vadd.s32 152, %v7075_v6  ;;  %v6860_v11 = vrot.slane %v5126_v26, 7  ;;  %v2445_v14 = vadd.f32 %v2379_v21, %v2301_v4 }
 0x10f   : > { %7096 = vst [vmem:[#allocation73_spill] sm:$0xff] %v5130_v9  ;;  %3167 = vst [vmem:[%s4160_s24 + $0x110] sm:$0xff] %v3103_v5  ;;  %v6859_v55 = vrot.slane %v5130_v9, 7  ;;  %v1067_v15 = vmul.f32 %v4900_v0, %v3993_v61  ;;  %v5142_v52 = vadd.f32 %v2583_v7, %v2443_v12  ;;  %v1139_v2 = vmul.f32 %v5023_v39, %v3997_v62 }
 0x110   : > { %v567_v13 = vand.u32 15, %v417_v50  ;;  %v1279_v48 = vmul.f32 %v5146_v51, %v4001_v63  ;;  %v5155_v32 = vadd.f32 %v2585_v20, %v2445_v14  ;;  %v1483_v12 = vmul.f32 %v4919_v18, %v4004_v29  ;;  %v5169_v14 = vld [vmem:[#allocation2 + $0x1d8] sm:$0xff] }
 0x111   : > { %7097 = vst [vmem:[#allocation74_spill] sm:$0xff] %v5142_v52  ;;  %v2003_v5 = vsel %vm1929_vm0, %v6860_v11, %v6859_v55  ;;  %v1485_v50 = vmul.f32 %v4900_v0, %v4004_v29  ;;  %v6870_v4 = vrot.slane %v5142_v52, 1  ;;  %v991_v19 = vadd.f32 %v5023_v39, %v4007_v30 }
 0x112   : > { %7098 = vst [vmem:[#allocation75_spill] sm:$0xff] %v5155_v32  ;;  %v2223_v43 = vadd.f32 %v2003_v5, %v1404_v10  ;;  %v1203_v3 = vadd.f32 %v1139_v2, %v1067_v15  ;;  %v6868_v21 = vrot.slane %v5155_v32, 1  ;;  %v1561_v7 = vmul.f32 %v5050_v16, %v4015_v35  ;;  %v2512_v10 = vld [vmem:[#allocation2 + $0x1e0] sm:$0xff] }
 0x113   : > { %v1563_v20 = vmul.f32 %v5023_v39, %v4015_v35  ;;  %v1705_v18 = vmul.f32 %v5169_v14, %v4019_v36  ;;  %vm5173_vm11 = vcmp.lt.s32.totalorder %v567_v13, 15  ;;  %v1707_v15 = vmul.f32 %v5146_v51, %v4019_v36 }
 0x114   : > { %v1343_v55 = vadd.f32 %v1279_v48, %v1203_v3  ;;  %v2302_v2 = vmul.f32 %v4900_v0, %v4041_v45  ;;  %v2304_v11 = vmul.f32 %v5050_v16, %v4041_v45  ;;  %v2884_v9 = vsel %vm2810_vm2, %v6870_v4, %v6868_v21  ;;  %v2514_v3 = vld [vmem:[#allocation2 + $0x140] sm:$0xff] }
 0x115   : > { %v1627_v13 = vadd.f32 %v1561_v7, %v1483_v12  ;;  %v1629_v26 = vadd.f32 %v1563_v20, %v1485_v50  ;;  %v2380_v48 = vmul.f32 %v5023_v39, %v4045_v34  ;;  %v3040_v60 = vsel %vm5046_vm10, %v2884_v9, 0.0 }
 0x116   : > { %v1407_v0 = vadd.f32 %v1343_v55, %v991_v19  ;;  %v2382_v1 = vmul.f32 %v5169_v14, %v4045_v34  ;;  %v2586_v32 = vmul.f32 %v4946_v49, %v2512_v10  ;;  %v3104_v33 = vadd.f32 %v3040_v60, %v2223_v43 }
 0x117   : > { %v5195_v52 = vadd.f32 %v1705_v18, %v1627_v13  ;;  %v5197_v21 = vadd.f32 %v1707_v15, %v1629_v26  ;;  %v2446_v12 = vadd.f32 %v2380_v48, %v2302_v2  ;;  %v2588_v7 = vmul.f32 %v4946_v49, %v2514_v3  ;;  %v5232_v48 = vld [vmem:[#allocation2 + $0x1c0] sm:$0xff] }
 0x118   : > { %v2448_v50 = vadd.f32 %v2382_v1, %v2304_v11  ;;  %v992_v20 = vadd.f32 %v5090_v22, %v4067_v44  ;;  %v1068_v40 = vmul.f32 %v4963_v58, %v4071_v41  ;;  %3168 = vst [vmem:[%s4160_s24 + $0x118] sm:$0xff] %v3104_v33  ;;  %v1140_v26 = vmul.f32 %v5090_v22, %v4076_v24  ;;  %v5213_v1 = vld [vmem:[#allocation2 + $0x1d0] sm:$0xff] }
 0x119   : > { %7101 = vst [vmem:[#allocation76_spill] sm:$0xff] %v5195_v52  ;;  %7102 = vst [vmem:[#allocation77_spill] sm:$0xff] %v5197_v21  ;;  %v6871_v9 = vrot.slane %v5195_v52, 7  ;;  %v6869_v55 = vrot.slane %v5197_v21, 7  ;;  %v5207_v60 = vadd.f32 %v2586_v32, %v2446_v12  ;;  %v1280_v11 = vmul.f32 %v5213_v1, %v4090_v28 }
 0x11a   : > { %v5211_v43 = vadd.f32 %v2588_v7, %v2448_v50  ;;  %v1484_v19 = vmul.f32 %v4983_v17, %v4011_v31  ;;  %v1486_v33 = vmul.f32 %v4963_v58, %v4011_v31  ;;  %v1204_v10 = vadd.f32 %v1140_v26, %v1068_v40  ;;  %v2513_v26 = vld [vmem:[#allocation2 + $0x1d0] sm:$0xff] }
 0x11b   : > { %7103 = vst [vmem:[#allocation78_spill] sm:$0xff] %v5207_v60  ;;  %v2009_v32 = vsel %vm1929_vm0, %v6871_v9, %v6869_v55  ;;  %v6873_v18 = vrot.slane %v5207_v60, 1  ;;  %v1562_v15 = vmul.f32 %v5109_v38, %v4103_v56  ;;  %v1564_v17 = vmul.f32 %v5090_v22, %v4103_v56 }
 0x11c   : > { %7104 = vst [vmem:[#allocation79_spill] sm:$0xff] %v5211_v43  ;;  %v2226_v2 = vadd.f32 %v2009_v32, %v1407_v0  ;;  %v6872_v13 = vrot.slane %v5211_v43, 1  ;;  %v1706_v3 = vmul.f32 %v5232_v48, %v4118_v47  ;;  %v1344_v12 = vadd.f32 %v1280_v11, %v1204_v10 }
 0x11d   : > { %v1628_v50 = vadd.f32 %v1562_v15, %v1484_v19  ;;  %v1708_v7 = vmul.f32 %v5213_v1, %v4118_v47  ;;  %v2303_v40 = vmul.f32 %v4963_v58, %v4123_v53  ;;  %v1630_v32 = vadd.f32 %v1564_v17, %v1486_v33  ;;  %v2515_v19 = vld [vmem:[#allocation2 + $0x138] sm:$0xff] }
 0x11e   : > { %v2890_v0 = vsel %vm2810_vm2, %v6873_v18, %v6872_v13  ;;  %v2305_v55 = vmul.f32 %v5109_v38, %v4123_v53  ;;  %v2381_v11 = vmul.f32 %v5090_v22, %v4128_v54  ;;  %v2383_v15 = vmul.f32 %v5232_v48, %v4128_v54 }
 0x11f   : > { %v3043_v10 = vsel %vm5173_vm11, %v2890_v0, 0.0  ;;  %v5251_v58 = vadd.f32 %v1706_v3, %v1628_v50  ;;  %v5255_v9 = vadd.f32 %v1708_v7, %v1630_v32  ;;  %v2587_v33 = vmul.f32 %v5009_v8, %v2513_v26 }
 0x120   : > { %v3107_v4 = vadd.f32 %v3043_v10, %v2226_v2  ;;  %v2447_v13 = vadd.f32 %v2381_v11, %v2303_v40  ;;  %v1408_v17 = vadd.f32 %v1344_v12, %v992_v20  ;;  %v2449_v18 = vadd.f32 %v2383_v15, %v2305_v55  ;;  %v5271_v55 = vld [vmem:[#allocation2 + $0x188] sm:$0xff]  ;;  %v5292_v15 = vld [vmem:[#allocation2 + $0x140] sm:$0xff] }
 0x121   : > { %7105 = vst [vmem:[#allocation80_spill] sm:$0xff] %v5251_v58  ;;  %7106 = vst [vmem:[#allocation81_spill] sm:$0xff] %v5255_v9  ;;  %v2589_v43 = vmul.f32 %v5009_v8, %v2515_v19  ;;  %v419_v21 = vadd.s32 168, %v7075_v6  ;;  %v6877_v0 = vrot.slane %v5251_v58, 7  ;;  %v6876_v3 = vrot.slane %v5255_v9, 7  ;;  %v2518_v9 = vld [vmem:[#allocation2 + $0x218] sm:$0xff] }
 0x122   : > { %3171 = vst [vmem:[%s4160_s24 + $0x130] sm:$0xff] %v3107_v4  ;;  %v5263_v50 = vadd.f32 %v2587_v33, %v2447_v13  ;;  %v1071_v2 = vmul.f32 %v5023_v39, %v3993_v61  ;;  %v1143_v20 = vmul.f32 %v5146_v51, %v3997_v62  ;;  %v1283_v4 = vmul.f32 %v5271_v55, %v4001_v63 }
 0x123   : > { %v5267_v7 = vadd.f32 %v2589_v43, %v2449_v18  ;;  %v581_v40 = vand.u32 15, %v419_v21  ;;  %v2011_v13 = vsel %vm1929_vm0, %v6877_v0, %v6876_v3  ;;  %v1487_v43 = vmul.f32 %v5050_v16, %v4004_v29 }
 0x124   : > { %7107 = vst [vmem:[#allocation82_spill] sm:$0xff] %v5263_v50  ;;  %v6883_v12 = vrot.slane %v5263_v50, 1  ;;  %v1489_v21 = vmul.f32 %v5023_v39, %v4004_v29  ;;  %v2227_v18 = vadd.f32 %v2011_v13, %v1408_v17  ;;  %v995_v32 = vadd.f32 %v5146_v51, %v4007_v30  ;;  %v2516_v17 = vld [vmem:[#allocation2 + $0x188] sm:$0xff] }
 0x125   : > { %7108 = vst [vmem:[#allocation83_spill] sm:$0xff] %v5267_v7  ;;  %v6882_v26 = vrot.slane %v5267_v7, 1  ;;  %v1207_v11 = vadd.f32 %v1143_v20, %v1071_v2  ;;  %v1565_v19 = vmul.f32 %v5169_v14, %v4015_v35  ;;  %v1567_v10 = vmul.f32 %v5146_v51, %v4015_v35 }
 0x126   : > { %v1709_v16 = vmul.f32 %v5292_v15, %v4019_v36  ;;  %v1711_v33 = vmul.f32 %v5271_v55, %v4019_v36  ;;  %vm5303_vm12 = vcmp.lt.s32.totalorder %v581_v40, 15  ;;  %v2306_v3 = vmul.f32 %v5023_v39, %v4041_v45 }
 0x127   : > { %v2892_v2 = vsel %vm2810_vm2, %v6883_v12, %v6882_v26  ;;  %v1347_v13 = vadd.f32 %v1283_v4, %v1207_v11  ;;  %v2308_v0 = vmul.f32 %v5169_v14, %v4041_v45  ;;  %v1631_v58 = vadd.f32 %v1565_v19, %v1487_v43 }
 0x128   : > { %v3044_v7 = vsel %vm5173_vm11, %v2892_v2, 0.0  ;;  %v1633_v50 = vadd.f32 %v1567_v10, %v1489_v21  ;;  %v2384_v40 = vmul.f32 %v5146_v51, %v4045_v34  ;;  %v2386_v4 = vmul.f32 %v5292_v15, %v4045_v34 }
 0x129   : > { %v3108_v26 = vadd.f32 %v3044_v7, %v2227_v18  ;;  %v1411_v12 = vadd.f32 %v1347_v13, %v995_v32  ;;  %v2590_v11 = vmul.f32 %v4946_v49, %v2516_v17  ;;  %v5318_v39 = vadd.f32 %v1709_v16, %v1631_v58 }
 0x12a   : > { %v5320_v60 = vadd.f32 %v1711_v33, %v1633_v50  ;;  %v2450_v52 = vadd.f32 %v2384_v40, %v2306_v3  ;;  %v2592_v5 = vmul.f32 %v4946_v49, %v2518_v9  ;;  %v2452_v43 = vadd.f32 %v2386_v4, %v2308_v0  ;;  %v5334_v3 = vld [vmem:[#allocation2 + $0x100] sm:$0xff]  ;;  %v5355_v40 = vld [vmem:[#allocation2 + $0x138] sm:$0xff] }
 0x12b   : > { %7111 = vst [vmem:[#allocation84_spill] sm:$0xff] %v5318_v39  ;;  %3172 = vst [vmem:[%s4160_s24 + $0x138] sm:$0xff] %v3108_v26  ;;  %v996_v21 = vadd.f32 %v5213_v1, %v4067_v44  ;;  %v1072_v7 = vmul.f32 %v5090_v22, %v4071_v41  ;;  %v1144_v18 = vmul.f32 %v5213_v1, %v4076_v24  ;;  %v6889_v32 = vrot.slane %v5318_v39, 7  ;;  %v2538_v39 = vld [vmem:[#allocation2 + $0x128] sm:$0x1] }
 0x12c   : > { %7112 = vst [vmem:[#allocation85_spill] sm:$0xff] %v5320_v60  ;;  %v6886_v58 = vrot.slane %v5320_v60, 7  ;;  %v5332_v50 = vadd.f32 %v2590_v11, %v2450_v52  ;;  %v1284_v9 = vmul.f32 %v5334_v3, %v4090_v28  ;;  %v5338_v0 = vadd.f32 %v2592_v5, %v2452_v43 }
 0x12d   : > { %v1208_v26 = vadd.f32 %v1144_v18, %v1072_v7  ;;  %v1488_v19 = vmul.f32 %v5109_v38, %v4011_v31  ;;  %v1490_v10 = vmul.f32 %v5090_v22, %v4011_v31  ;;  %v1566_v33 = vmul.f32 %v5232_v48, %v4103_v56  ;;  %v2517_v18 = vld [vmem:[#allocation2 + $0x100] sm:$0xff] }
 0x12e   : > { %7113 = vst [vmem:[#allocation86_spill] sm:$0xff] %v5332_v50  ;;  %7114 = vst [vmem:[#allocation87_spill] sm:$0xff] %v5338_v0  ;;  %v2017_v52 = vsel %vm1929_vm0, %v6889_v32, %v6886_v58  ;;  %v6888_v16 = vrot.slane %v5332_v50, 1  ;;  %v1568_v17 = vmul.f32 %v5213_v1, %v4103_v56  ;;  %v6887_v38 = vrot.slane %v5338_v0, 1  ;;  %v2519_v58 = vld [vmem:[#allocation2 + $0x250] sm:$0xff] }
 0x12f   : > { %v2230_v2 = vadd.f32 %v2017_v52, %v1411_v12  ;;  %v1348_v13 = vadd.f32 %v1284_v9, %v1208_v26  ;;  %v1710_v4 = vmul.f32 %v5355_v40, %v4118_v47  ;;  %v1632_v11 = vadd.f32 %v1566_v33, %v1488_v19 }
 0x130   : > { %v1634_v5 = vadd.f32 %v1568_v17, %v1490_v10  ;;  %v1712_v43 = vmul.f32 %v5334_v3, %v4118_v47  ;;  %v2307_v7 = vmul.f32 %v5090_v22, %v4123_v53  ;;  %v2898_v12 = vsel %vm2810_vm2, %v6888_v16, %v6887_v38 }
 0x131   : > { %v1412_v9 = vadd.f32 %v1348_v13, %v996_v21  ;;  %v2309_v26 = vmul.f32 %v5232_v48, %v4123_v53  ;;  %v2385_v19 = vmul.f32 %v5213_v1, %v4128_v54  ;;  %v3047_v10 = vsel %vm5303_vm12, %v2898_v12, 0.0 }
 0x132   : > { %v5374_v22 = vadd.f32 %v1710_v4, %v1632_v11  ;;  %v5376_v52 = vadd.f32 %v1712_v43, %v1634_v5  ;;  %v2387_v33 = vmul.f32 %v5355_v40, %v4128_v54  ;;  %v3111_v17 = vadd.f32 %v3047_v10, %v2230_v2 }
 0x133   : > { %v2451_v38 = vadd.f32 %v2385_v19, %v2307_v7  ;;  %v2591_v21 = vmul.f32 %v5009_v8, %v2517_v18  ;;  %v2593_v13 = vmul.f32 %v5009_v8, %v2519_v58  ;;  %v421_v12 = vadd.s32 184, %v7075_v6  ;;  %v5399_v7 = vld [vmem:[#allocation2 + $0x1a8] sm:$0xff] }
 0x134   : > { %7115 = vst [vmem:[#allocation88_spill] sm:$0xff] %v5374_v22  ;;  %7116 = vst [vmem:[#allocation89_spill] sm:$0xff] %v5376_v52  ;;  %v6892_v16 = vrot.slane %v5374_v22, 7  ;;  %v6891_v32 = vrot.slane %v5376_v52, 7  ;;  %v2453_v0 = vadd.f32 %v2387_v33, %v2309_v26  ;;  %v1075_v11 = vmul.f32 %v5146_v51, %v3993_v61  ;;  %v2522_v52 = vld [vmem:[#allocation2 + $0x48] sm:$0xff] }
 0x135   : > { %3175 = vst [vmem:[%s4160_s24 + $0x150] sm:$0xff] %v3111_v17  ;;  %v5386_v4 = vadd.f32 %v2591_v21, %v2451_v38  ;;  %v1147_v2 = vmul.f32 %v5271_v55, %v3997_v62  ;;  %v595_v43 = vand.u32 15, %v421_v12  ;;  %v1287_v38 = vmul.f32 %v5399_v7, %v4001_v63 }
 0x136   : > { %v2019_v58 = vsel %vm1929_vm0, %v6892_v16, %v6891_v32  ;;  %v5397_v5 = vadd.f32 %v2593_v13, %v2453_v0  ;;  %v999_v26 = vadd.f32 %v5271_v55, %v4007_v30  ;;  %v1491_v10 = vmul.f32 %v5169_v14, %v4004_v29  ;;  %v5415_v32 = vld [vmem:[#allocation2 + $0x218] sm:$0xff] }
 0x137   : > { %7117 = vst [vmem:[#allocation90_spill] sm:$0xff] %v5386_v4  ;;  %v6898_v18 = vrot.slane %v5386_v4, 1  ;;  %v1211_v19 = vadd.f32 %v1147_v2, %v1075_v11  ;;  %v2231_v33 = vadd.f32 %v2019_v58, %v1412_v9  ;;  %v1493_v0 = vmul.f32 %v5146_v51, %v4004_v29  ;;  %v2520_v9 = vld [vmem:[#allocation2 + $0x1a8] sm:$0xff] }
 0x138   : > { %7118 = vst [vmem:[#allocation91_spill] sm:$0xff] %v5397_v5  ;;  %v6897_v17 = vrot.slane %v5397_v5, 1  ;;  %v1569_v21 = vmul.f32 %v5292_v15, %v4015_v35  ;;  %v1571_v12 = vmul.f32 %v5271_v55, %v4015_v35  ;;  %v1713_v11 = vmul.f32 %v5415_v32, %v4019_v36 }
 0x139   : > { %v1351_v13 = vadd.f32 %v1287_v38, %v1211_v19  ;;  %v1715_v14 = vmul.f32 %v5399_v7, %v4019_v36  ;;  %vm5426_vm13 = vcmp.lt.s32.totalorder %v595_v43, 15  ;;  %v2310_v19 = vmul.f32 %v5146_v51, %v4041_v45 }
 0x13a   : > { %v2900_v2 = vsel %vm2810_vm2, %v6898_v18, %v6897_v17  ;;  %v1635_v38 = vadd.f32 %v1569_v21, %v1491_v10  ;;  %v2312_v16 = vmul.f32 %v5292_v15, %v4041_v45  ;;  %v1637_v4 = vadd.f32 %v1571_v12, %v1493_v0  ;;  %v5457_v12 = vld [vmem:[#allocation2 + $0x110] sm:$0xff] }
 0x13b   : > { %v3048_v5 = vsel %vm5303_vm12, %v2900_v2, 0.0  ;;  %v1415_v60 = vadd.f32 %v1351_v13, %v999_v26  ;;  %v2388_v43 = vmul.f32 %v5271_v55, %v4045_v34  ;;  %v2390_v10 = vmul.f32 %v5415_v32, %v4045_v34  ;;  %v2523_v2 = vld [vmem:[#allocation2 + $0x90] sm:$0xff] }
 0x13c   : > { %v3112_v17 = vadd.f32 %v3048_v5, %v2231_v33  ;;  %v5438_v18 = vadd.f32 %v1713_v11, %v1635_v38  ;;  %v2594_v51 = vmul.f32 %v4946_v49, %v2520_v9  ;;  %v5443_v21 = vadd.f32 %v1715_v14, %v1637_v4 }
 0x13d   : > { %v2454_v22 = vadd.f32 %v2388_v43, %v2310_v19  ;;  %v2596_v50 = vmul.f32 %v4946_v49, %v2522_v52  ;;  %v1000_v20 = vadd.f32 %v5334_v3, %v4067_v44  ;;  %v2456_v0 = vadd.f32 %v2390_v10, %v2312_v16 }
 0x13e   : > { %7121 = vst [vmem:[#allocation92_spill] sm:$0xff] %v5438_v18  ;;  %7122 = vst [vmem:[#allocation93_spill] sm:$0xff] %v5443_v21  ;;  %v6902_v26 = vrot.slane %v5438_v18, 7  ;;  %v1076_v5 = vmul.f32 %v5213_v1, %v4071_v41  ;;  %v1148_v33 = vmul.f32 %v5334_v3, %v4076_v24  ;;  %v6901_v13 = vrot.slane %v5443_v21, 7 }
 0x13f   : > { %3176 = vst [vmem:[%s4160_s24 + $0x158] sm:$0xff] %v3112_v17  ;;  %v5455_v4 = vadd.f32 %v2594_v51, %v2454_v22  ;;  %v1288_v52 = vmul.f32 %v5457_v12, %v4090_v28  ;;  %v1492_v17 = vmul.f32 %v5232_v48, %v4011_v31  ;;  %v5463_v11 = vadd.f32 %v2596_v50, %v2456_v0  ;;  %v5477_v50 = vld [vmem:[#allocation2 + $0x250] sm:$0xff] }
 0x140   : > { %v1212_v16 = vadd.f32 %v1148_v33, %v1076_v5  ;;  %v1494_v14 = vmul.f32 %v5213_v1, %v4011_v31  ;;  %v1570_v9 = vmul.f32 %v5355_v40, %v4103_v56  ;;  %v2025_v22 = vsel %vm1929_vm0, %v6902_v26, %v6901_v13  ;;  %v2521_v0 = vld [vmem:[#allocation2 + $0x110] sm:$0xff] }
 0x141   : > { %7123 = vst [vmem:[#allocation94_spill] sm:$0xff] %v5455_v4  ;;  %7124 = vst [vmem:[#allocation95_spill] sm:$0xff] %v5463_v11  ;;  %v1572_v48 = vmul.f32 %v5334_v3, %v4103_v56  ;;  %v1714_v38 = vmul.f32 %v5477_v50, %v4118_v47  ;;  %v2234_v19 = vadd.f32 %v2025_v22, %v1415_v60  ;;  %v6905_v43 = vrot.slane %v5463_v11, 1 }
 0x142   : > { %v1352_v10 = vadd.f32 %v1288_v52, %v1212_v16  ;;  %v1636_v51 = vadd.f32 %v1570_v9, %v1492_v17  ;;  %v1716_v33 = vmul.f32 %v5457_v12, %v4118_v47  ;;  %v2311_v13 = vmul.f32 %v5213_v1, %v4123_v53 }
 0x143   : > { %v1638_v5 = vadd.f32 %v1572_v48, %v1494_v14  ;;  %v2313_v26 = vmul.f32 %v5355_v40, %v4123_v53  ;;  %v7125_v60 = vrot.slane %v5455_v4, 1  ;;  %v2389_v16 = vmul.f32 %v5334_v3, %v4128_v54 }
 0x144   : > { %v5493_v17 = vadd.f32 %v1714_v38, %v1636_v51  ;;  %v2391_v9 = vmul.f32 %v5477_v50, %v4128_v54  ;;  %v2595_v22 = vmul.f32 %v5009_v8, %v2521_v0  ;;  %v1416_v11 = vadd.f32 %v1352_v10, %v1000_v20  ;;  %v5515_v20 = vld [vmem:[#allocation2 + $0x160] sm:$0xff] }
 0x145   : > { %v2906_v52 = vsel %vm2810_vm2, %v7125_v60, %v6905_v43  ;;  %v5499_v1 = vadd.f32 %v1716_v33, %v1638_v5  ;;  %v2455_v21 = vadd.f32 %v2389_v16, %v2311_v13  ;;  %v2597_v60 = vmul.f32 %v5009_v8, %v2523_v2 }
 0x146   : > { %7126 = vst [vmem:[#allocation96_spill] sm:$0xff] %v5493_v17  ;;  %v3051_v14 = vsel %vm5426_vm13, %v2906_v52, 0.0  ;;  %v6908_v38 = vrot.slane %v5493_v17, 7  ;;  %v2457_v43 = vadd.f32 %v2391_v9, %v2313_v26  ;;  %v423_v4 = vadd.s32 200, %v7075_v6 }
 0x147   : > { %7127 = vst [vmem:[#allocation97_spill] sm:$0xff] %v5499_v1  ;;  %v3115_v48 = vadd.f32 %v3051_v14, %v2234_v19  ;;  %v6907_v51 = vrot.slane %v5499_v1, 7  ;;  %v5509_v5 = vadd.f32 %v2595_v22, %v2455_v21  ;;  %v1079_v33 = vmul.f32 %v5271_v55, %v3993_v61 }
 0x148   : > { %v1151_v19 = vmul.f32 %v5399_v7, %v3997_v62  ;;  %v1291_v13 = vmul.f32 %v5515_v20, %v4001_v63  ;;  %v5524_v2 = vadd.f32 %v2597_v60, %v2457_v43  ;;  %v609_v21 = vand.u32 15, %v423_v4  ;;  %v5542_v60 = vld [vmem:[#allocation2 + $0x48] sm:$0xff] }
 0x149   : > { %3179 = vst [vmem:[%s4160_s24 + $0x170] sm:$0xff] %v3115_v48  ;;  %7128 = vst [vmem:[#allocation98_spill] sm:$0xff] %v5509_v5  ;;  %v2027_v26 = vsel %vm1929_vm0, %v6908_v38, %v6907_v51  ;;  %v1495_v10 = vmul.f32 %v5292_v15, %v4004_v29  ;;  %v6917_v0 = vrot.slane %v5509_v5, 1  ;;  %v1003_v52 = vadd.f32 %v5399_v7, %v4007_v30  ;;  %v2526_v38 = vld [vmem:[#allocation2 + $0x1b8] sm:$0xff] }
 0x14a   : > { %7129 = vst [vmem:[#allocation99_spill] sm:$0xff] %v5524_v2  ;;  %v1215_v16 = vadd.f32 %v1151_v19, %v1079_v33  ;;  %v1497_v14 = vmul.f32 %v5271_v55, %v4004_v29  ;;  %v2235_v9 = vadd.f32 %v2027_v26, %v1416_v11  ;;  %v6914_v22 = vrot.slane %v5524_v2, 1  ;;  %v2524_v26 = vld [vmem:[#allocation2 + $0x160] sm:$0xff] }
 0x14b   : > { %v1573_v43 = vmul.f32 %v5415_v32, %v4015_v35  ;;  %v1575_v4 = vmul.f32 %v5399_v7, %v4015_v35  ;;  %vm5538_vm14 = vcmp.lt.s32.totalorder %v609_v21, 15  ;;  %v1717_v33 = vmul.f32 %v5542_v60, %v4019_v36 }
 0x14c   : > { %v1355_v48 = vadd.f32 %v1291_v13, %v1215_v16  ;;  %v1719_v11 = vmul.f32 %v5515_v20, %v4019_v36  ;;  %v2314_v19 = vmul.f32 %v5271_v55, %v4041_v45  ;;  %v2908_v21 = vsel %vm2810_vm2, %v6917_v0, %v6914_v22 }
 0x14d   : > { %v1639_v51 = vadd.f32 %v1573_v43, %v1495_v10  ;;  %v1641_v13 = vadd.f32 %v1575_v4, %v1497_v14  ;;  %v2316_v16 = vmul.f32 %v5415_v32, %v4041_v45  ;;  %v3052_v1 = vsel %vm5426_vm13, %v2908_v21, 0.0 }
 0x14e   : > { %v1419_v17 = vadd.f32 %v1355_v48, %v1003_v52  ;;  %v2392_v55 = vmul.f32 %v5399_v7, %v4045_v34  ;;  %v2394_v2 = vmul.f32 %v5542_v60, %v4045_v34  ;;  %v3116_v5 = vadd.f32 %v3052_v1, %v2235_v9 }
 0x14f   : > { %v5563_v18 = vadd.f32 %v1717_v33, %v1639_v51  ;;  %v5565_v10 = vadd.f32 %v1719_v11, %v1641_v13  ;;  %v2598_v14 = vmul.f32 %v4946_v49, %v2524_v26  ;;  %v2600_v22 = vmul.f32 %v4946_v49, %v2526_v38 }
 0x150   : > { %v2458_v43 = vadd.f32 %v2392_v55, %v2314_v19  ;;  %v2460_v4 = vadd.f32 %v2394_v2, %v2316_v16  ;;  %v1004_v58 = vadd.f32 %v5457_v12, %v4067_v44  ;;  %3180 = vst [vmem:[%s4160_s24 + $0x178] sm:$0xff] %v3116_v5  ;;  %v1080_v1 = vmul.f32 %v5334_v3, %v4071_v41  ;;  %v5582_v2 = vld [vmem:[#allocation2 + $0x18] sm:$0xff] }
 0x151   : > { %7132 = vst [vmem:[#allocation100_spill] sm:$0xff] %v5563_v18  ;;  %7133 = vst [vmem:[#allocation101_spill] sm:$0xff] %v5565_v10  ;;  %v6916_v52 = vrot.slane %v5563_v18, 7  ;;  %v6915_v48 = vrot.slane %v5565_v10, 7  ;;  %v1152_v51 = vmul.f32 %v5457_v12, %v4076_v24  ;;  %v1292_v38 = vmul.f32 %v5582_v2, %v4090_v28 }
 0x152   : > { %v5578_v9 = vadd.f32 %v2598_v14, %v2458_v43  ;;  %v5580_v33 = vadd.f32 %v2600_v22, %v2460_v4  ;;  %v1496_v5 = vmul.f32 %v5355_v40, %v4011_v31  ;;  %v1498_v26 = vmul.f32 %v5334_v3, %v4011_v31  ;;  %v5601_v43 = vld [vmem:[#allocation2 + $0x90] sm:$0xff] }
 0x153   : > { %v2033_v11 = vsel %vm1929_vm0, %v6916_v52, %v6915_v48  ;;  %v1216_v19 = vadd.f32 %v1152_v51, %v1080_v1  ;;  %v1574_v22 = vmul.f32 %v5477_v50, %v4103_v56  ;;  %v1576_v40 = vmul.f32 %v5457_v12, %v4103_v56  ;;  %v2525_v51 = vld [vmem:[#allocation2 + $0x18] sm:$0xff] }
 0x154   : > { %7134 = vst [vmem:[#allocation102_spill] sm:$0xff] %v5578_v9  ;;  %7135 = vst [vmem:[#allocation103_spill] sm:$0xff] %v5580_v33  ;;  %v2238_v21 = vadd.f32 %v2033_v11, %v1419_v17  ;;  %v6920_v13 = vrot.slane %v5578_v9, 1  ;;  %v6919_v16 = vrot.slane %v5580_v33, 1  ;;  %v1718_v4 = vmul.f32 %v5601_v43, %v4118_v47 }
 0x155   : > { %v1356_v55 = vadd.f32 %v1292_v38, %v1216_v19  ;;  %v1640_v14 = vadd.f32 %v1574_v22, %v1496_v5  ;;  %v1720_v1 = vmul.f32 %v5582_v2, %v4118_v47  ;;  %v1642_v11 = vadd.f32 %v1576_v40, %v1498_v26  ;;  %v2527_v19 = vld [vmem:[#allocation2 + $0x120] sm:$0xff]  ;;  %v5627_v40 = vld [vmem:[#allocation2 + $0x38] sm:$0xff] }
 0x156   : > { %v2914_v17 = vsel %vm2810_vm2, %v6920_v13, %v6919_v16  ;;  %v2315_v38 = vmul.f32 %v5334_v3, %v4123_v53  ;;  %v2317_v5 = vmul.f32 %v5477_v50, %v4123_v53  ;;  %v2393_v52 = vmul.f32 %v5457_v12, %v4128_v54 }
 0x157   : > { %v3055_v22 = vsel %vm5538_vm14, %v2914_v17, 0.0  ;;  %v5618_v48 = vadd.f32 %v1718_v4, %v1640_v14  ;;  %v5622_v33 = vadd.f32 %v1720_v1, %v1642_v11  ;;  %v2395_v26 = vmul.f32 %v5601_v43, %v4128_v54 }
 0x158   : > { %v3119_v0 = vadd.f32 %v3055_v22, %v2238_v21  ;;  %v2599_v3 = vmul.f32 %v5009_v8, %v2525_v51  ;;  %v1420_v16 = vadd.f32 %v1356_v55, %v1004_v58  ;;  %v2459_v13 = vadd.f32 %v2393_v52, %v2315_v38 }
 0x159   : > { %7136 = vst [vmem:[#allocation104_spill] sm:$0xff] %v5618_v48  ;;  %7137 = vst [vmem:[#allocation105_spill] sm:$0xff] %v5622_v33  ;;  %v2601_v10 = vmul.f32 %v5009_v8, %v2527_v19  ;;  %v425_v14 = vadd.s32 216, %v7075_v6  ;;  %v6923_v4 = vrot.slane %v5618_v48, 7  ;;  %v6922_v21 = vrot.slane %v5622_v33, 7 }
 0x15a   : > { %3183 = vst [vmem:[%s4160_s24 + $0x190] sm:$0xff] %v3119_v0  ;;  %v2461_v1 = vadd.f32 %v2395_v26, %v2317_v5  ;;  %v1083_v17 = vmul.f32 %v5399_v7, %v3993_v61  ;;  %v5636_v11 = vadd.f32 %v2599_v3, %v2459_v13  ;;  %v1155_v58 = vmul.f32 %v5515_v20, %v3997_v62 }
 0x15b   : > { %v623_v51 = vand.u32 15, %v425_v14  ;;  %v1295_v52 = vmul.f32 %v4001_v63, %v5627_v40  ;;  %v2035_v0 = vsel %vm1929_vm0, %v6923_v4, %v6922_v21  ;;  %v1499_v38 = vmul.f32 %v5415_v32, %v4004_v29 }
 0x15c   : > { %7138 = vst [vmem:[#allocation106_spill] sm:$0xff] %v5636_v11  ;;  %v5647_v55 = vadd.f32 %v2601_v10, %v2461_v1  ;;  %v1501_v13 = vmul.f32 %v5399_v7, %v4004_v29  ;;  %v2239_v5 = vadd.f32 %v2035_v0, %v1420_v16  ;;  %v6930_v19 = vrot.slane %v5636_v11, 1  ;;  %v5661_v1 = vld [vmem:[#allocation2 + $0x1b8] sm:$0xff] }
 0x15d   : > { %v1007_v22 = vadd.f32 %v5515_v20, %v4007_v30  ;;  %v1219_v26 = vadd.f32 %v1155_v58, %v1083_v17  ;;  %v1577_v14 = vmul.f32 %v5542_v60, %v4015_v35  ;;  %v1579_v10 = vmul.f32 %v5515_v20, %v4015_v35 }
 0x15e   : > { %7139 = vst [vmem:[#allocation107_spill] sm:$0xff] %v5647_v55  ;;  %v6929_v3 = vrot.slane %v5647_v55, 1  ;;  %v1721_v32 = vmul.f32 %v5661_v1, %v4019_v36  ;;  %vm5665_vm15 = vcmp.lt.s32.totalorder %v623_v51, 15  ;;  %v1723_v17 = vmul.f32 %v4019_v36, %v5627_v40 }
 0x15f   : > { %v1359_v0 = vadd.f32 %v1295_v52, %v1219_v26  ;;  %v2318_v58 = vmul.f32 %v5399_v7, %v4041_v45  ;;  %v2320_v21 = vmul.f32 %v5542_v60, %v4041_v45  ;;  %v1643_v51 = vadd.f32 %v1577_v14, %v1499_v38  ;;  %v5682_v26 = vld [vmem:[#allocation2 + $0x108] sm:$0xff] }
 0x160   : > { %v2916_v4 = vsel %vm2810_vm2, %v6930_v19, %v6929_v3  ;;  %v1645_v33 = vadd.f32 %v1579_v10, %v1501_v13  ;;  %v2396_v52 = vmul.f32 %v5515_v20, %v4045_v34  ;;  %v2398_v9 = vmul.f32 %v5661_v1, %v4045_v34  ;;  %v5694_v14 = vld [vmem:[#allocation2 + $0x148] sm:$0xff] }
 0x161   : > { %v3056_v7 = vsel %vm5538_vm14, %v2916_v4, 0.0  ;;  %v1423_v48 = vadd.f32 %v1359_v0, %v1007_v22  ;;  %v2602_v55 = vmul.f32 %v4946_v49, %v5627_v40  ;;  %v5690_v3 = vadd.f32 %v1721_v32, %v1643_v51 }
 0x162   : > { %v3120_v11 = vadd.f32 %v3056_v7, %v2239_v5  ;;  %v5692_v38 = vadd.f32 %v1723_v17, %v1645_v33  ;;  %v2462_v13 = vadd.f32 %v2396_v52, %v2318_v58  ;;  %v2464_v10 = vadd.f32 %v2398_v9, %v2320_v21 }
 0x163   : > { %7142 = vst [vmem:[#allocation108_spill] sm:$0xff] %v5690_v3  ;;  %v2604_v15 = vmul.f32 %v4946_v49, %v5682_v26  ;;  %v1008_v4 = vadd.f32 %v5582_v2, %v4067_v44  ;;  %v1084_v22 = vmul.f32 %v5457_v12, %v4071_v41  ;;  %v6932_v5 = vrot.slane %v5690_v3, 7 }
 0x164   : > { %7143 = vst [vmem:[#allocation109_spill] sm:$0xff] %v5692_v38  ;;  %3184 = vst [vmem:[%s4160_s24 + $0x198] sm:$0xff] %v3120_v11  ;;  %v6931_v32 = vrot.slane %v5692_v38, 7  ;;  %v5705_v33 = vadd.f32 %v2602_v55, %v2462_v13  ;;  %v1156_v0 = vmul.f32 %v5582_v2, %v4076_v24  ;;  %v1296_v49 = vmul.f32 %v4090_v28, %v5694_v14  ;;  %v5728_v13 = vld [vmem:[#allocation2 + $0x120] sm:$0xff] }
 0x165   : > { %v5709_v9 = vadd.f32 %v2604_v15, %v2464_v10  ;;  %v1500_v21 = vmul.f32 %v5477_v50, %v4011_v31  ;;  %v1502_v11 = vmul.f32 %v5457_v12, %v4011_v31  ;;  %v1578_v51 = vmul.f32 %v5601_v43, %v4103_v56 }
 0x166   : > { %7144 = vst [vmem:[#allocation110_spill] sm:$0xff] %v5705_v33  ;;  %v2041_v55 = vsel %vm1929_vm0, %v6932_v5, %v6931_v32  ;;  %v6934_v17 = vrot.slane %v5705_v33, 1  ;;  %v1220_v58 = vadd.f32 %v1156_v0, %v1084_v22  ;;  %v1580_v50 = vmul.f32 %v5582_v2, %v4103_v56 }
 0x167   : > { %7145 = vst [vmem:[#allocation111_spill] sm:$0xff] %v5709_v9  ;;  %v2242_v52 = vadd.f32 %v2041_v55, %v1423_v48  ;;  %v6933_v7 = vrot.slane %v5709_v9, 1  ;;  %v1722_v10 = vmul.f32 %v5728_v13, %v4118_v47  ;;  %v1644_v19 = vadd.f32 %v1578_v51, %v1500_v21  ;;  %v5745_v21 = vld [vmem:[#allocation2 + $0xe0] sm:$0xff] }
 0x168   : > { %v1360_v15 = vadd.f32 %v1296_v49, %v1220_v58  ;;  %v1724_v32 = vmul.f32 %v4118_v47, %v5694_v14  ;;  %v2319_v22 = vmul.f32 %v5457_v12, %v4123_v53  ;;  %v1646_v0 = vadd.f32 %v1580_v50, %v1502_v11 }
 0x169   : > { %v2922_v48 = vsel %vm2810_vm2, %v6934_v17, %v6933_v7  ;;  %v2321_v55 = vmul.f32 %v5601_v43, %v4123_v53  ;;  %v2397_v49 = vmul.f32 %v5582_v2, %v4128_v54  ;;  %v5749_v12 = vadd.f32 %v1722_v10, %v1644_v19  ;;  %v5757_v17 = vld [vmem:[#allocation2 + $0x228] sm:$0xff] }
 0x16a   : > { %v3059_v58 = vsel %vm5665_vm15, %v2922_v48, 0.0  ;;  %v2399_v51 = vmul.f32 %v5728_v13, %v4128_v54  ;;  %v5753_v7 = vadd.f32 %v1724_v32, %v1646_v0  ;;  %v2603_v50 = vmul.f32 %v5009_v8, %v5694_v14 }
 0x16b   : > { %7146 = vst [vmem:[#allocation112_spill] sm:$0xff] %v5749_v12  ;;  %v3123_v5 = vadd.f32 %v3059_v58, %v2242_v52  ;;  %v2463_v11 = vadd.f32 %v2397_v49, %v2319_v22  ;;  %v1424_v9 = vadd.f32 %v1360_v15, %v1008_v4  ;;  %v2605_v33 = vmul.f32 %v5009_v8, %v5745_v21 }
 0x16c   : > { %7147 = vst [vmem:[#allocation113_spill] sm:$0xff] %v5753_v7  ;;  %v2465_v38 = vadd.f32 %v2399_v51, %v2321_v55  ;;  %v427_v19 = vadd.s32 232, %v7075_v6  ;;  %v6939_v10 = vrot.slane %v5749_v12, 7  ;;  %v6938_v52 = vrot.slane %v5753_v7, 7 }
 0x16d   : > { %3187 = vst [vmem:[%s4160_s24 + $0x1b0] sm:$0xff] %v3123_v5  ;;  %v5765_v32 = vadd.f32 %v2603_v50, %v2463_v11  ;;  %v1087_v22 = vmul.f32 %v5515_v20, %v3993_v61  ;;  %v1159_v4 = vmul.f32 %v3997_v62, %v5627_v40  ;;  %v1299_v8 = vmul.f32 %v4001_v63, %v5757_v17 }
 0x16e   : > { %v5769_v48 = vadd.f32 %v2605_v33, %v2465_v38  ;;  %v637_v0 = vand.u32 15, %v427_v19  ;;  %v2043_v5 = vsel %vm1929_vm0, %v6939_v10, %v6938_v52  ;;  %v1503_v55 = vmul.f32 %v5542_v60, %v4004_v29 }
 0x16f   : > { %7148 = vst [vmem:[#allocation114_spill] sm:$0xff] %v5765_v32  ;;  %v6943_v15 = vrot.slane %v5765_v32, 1  ;;  %v1505_v38 = vmul.f32 %v5515_v20, %v4004_v29  ;;  %v2243_v33 = vadd.f32 %v2043_v5, %v1424_v9  ;;  %v1011_v58 = vadd.f32 %v4007_v30, %v5627_v40  ;;  %v5819_v32 = vld [vmem:[#allocation2 + $0x210] sm:$0xff] }
 0x170   : > { %7149 = vst [vmem:[#allocation115_spill] sm:$0xff] %v5769_v48  ;;  %v6942_v49 = vrot.slane %v5769_v48, 1  ;;  %v1223_v51 = vadd.f32 %v1159_v4, %v1087_v22  ;;  %v1581_v11 = vmul.f32 %v5661_v1, %v4015_v35  ;;  %v1583_v50 = vmul.f32 %v4015_v35, %v5627_v40 }
 0x171   : > { %v1725_v19 = vmul.f32 %v5682_v26, %v4019_v36  ;;  %v1727_v60 = vmul.f32 %v4019_v36, %v5757_v17  ;;  %vm5801_vm1 = vcmp.lt.s32.totalorder %v637_v0, 15  ;;  %v2322_v5 = vmul.f32 %v5515_v20, %v4041_v45 }
 0x172   : > { %v2924_v9 = vsel %vm2810_vm2, %v6943_v15, %v6942_v49  ;;  %v1363_v4 = vadd.f32 %v1299_v8, %v1223_v51  ;;  %v2324_v52 = vmul.f32 %v5661_v1, %v4041_v45  ;;  %v1647_v48 = vadd.f32 %v1581_v11, %v1503_v55  ;;  %v5815_v51 = vld [vmem:[#allocation6 + $0x10] ss:$0 sm:$0xff] }
 0x173   : > { %v3060_v10 = vsel %vm5665_vm15, %v2924_v9, 0.0  ;;  %v1649_v7 = vadd.f32 %v1583_v50, %v1505_v38  ;;  %v2400_v49 = vmul.f32 %v4045_v34, %v5627_v40  ;;  %v2402_v8 = vmul.f32 %v5682_v26, %v4045_v34  ;;  %v5825_v38 = vld [vmem:[#allocation2 + $0x98] sm:$0xff] }
 0x174   : > { %v3124_v0 = vadd.f32 %v3060_v10, %v2243_v33  ;;  %v1427_v15 = vadd.f32 %v1363_v4, %v1011_v58  ;;  %v2606_v20 = vmul.f32 %v5815_v51, %v5757_v17  ;;  %v5821_v16 = vadd.f32 %v1725_v19, %v1647_v48 }
 0x175   : > { %v5823_v9 = vadd.f32 %v1727_v60, %v1649_v7  ;;  %v2466_v55 = vadd.f32 %v2400_v49, %v2322_v5  ;;  %v5829_v10 = vmul.f32 %v5825_v38, %v5815_v51  ;;  %v2468_v33 = vadd.f32 %v2402_v8, %v2324_v52 }
 0x176   : > { %7152 = vst [vmem:[#allocation116_spill] sm:$0xff] %v5821_v16  ;;  %3188 = vst [vmem:[%s4160_s24 + $0x1b8] sm:$0xff] %v3124_v0  ;;  %v1012_v58 = vadd.f32 %v4067_v44, %v5694_v14  ;;  %v1088_v11 = vmul.f32 %v5582_v2, %v4071_v41  ;;  %v1160_v48 = vmul.f32 %v4076_v24, %v5694_v14  ;;  %v6948_v7 = vrot.slane %v5821_v16, 7 }
 0x177   : > { %7153 = vst [vmem:[#allocation117_spill] sm:$0xff] %v5823_v9  ;;  %v6947_v49 = vrot.slane %v5823_v9, 7  ;;  %v5840_v50 = vadd.f32 %v2606_v20, %v2466_v55  ;;  %v1300_v19 = vmul.f32 %v4090_v28, %v5819_v32  ;;  %v5845_v52 = vadd.f32 %v5829_v10, %v2468_v33 }
 0x178   : > { %v1224_v60 = vadd.f32 %v1160_v48, %v1088_v11  ;;  %v1504_v4 = vmul.f32 %v5601_v43, %v4011_v31  ;;  %v1506_v5 = vmul.f32 %v5582_v2, %v4011_v31  ;;  %v1582_v20 = vmul.f32 %v5728_v13, %v4103_v56 }
 0x179   : > { %7154 = vst [vmem:[#allocation118_spill] sm:$0xff] %v5840_v50  ;;  %7155 = vst [vmem:[#allocation119_spill] sm:$0xff] %v5845_v52  ;;  %v2049_v0 = vsel %vm1929_vm0, %v6948_v7, %v6947_v49  ;;  %v6950_v8 = vrot.slane %v5840_v50, 1  ;;  %v1584_v55 = vmul.f32 %v4103_v56, %v5694_v14  ;;  %v6949_v43 = vrot.slane %v5845_v52, 1 }
 0x17a   : > { %v2246_v33 = vadd.f32 %v2049_v0, %v1427_v15  ;;  %v1364_v11 = vadd.f32 %v1300_v19, %v1224_v60  ;;  %v1726_v48 = vmul.f32 %v5745_v21, %v4118_v47  ;;  %v1648_v9 = vadd.f32 %v1582_v20, %v1504_v4 }
 0x17b   : > { %v1650_v12 = vadd.f32 %v1584_v55, %v1506_v5  ;;  %v1728_v49 = vmul.f32 %v4118_v47, %v5819_v32  ;;  %v2323_v7 = vmul.f32 %v5582_v2, %v4123_v53  ;;  %v2930_v15 = vsel %vm2810_vm2, %v6950_v8, %v6949_v43 }
 0x17c   : > { %v1428_v0 = vadd.f32 %v1364_v11, %v1012_v58  ;;  %v2325_v19 = vmul.f32 %v5728_v13, %v4123_v53  ;;  %v2401_v60 = vmul.f32 %v4128_v54, %v5694_v14  ;;  %v3063_v4 = vsel %vm5801_vm1, %v2930_v15, 0.0  ;;  %v5885_v58 = vld [vmem:[#allocation6 + $0x18] ss:$0 sm:$0xff] }
 0x17d   : > { %v5879_v5 = vadd.f32 %v1726_v48, %v1648_v9  ;;  %v5881_v2 = vadd.f32 %v1728_v49, %v1650_v12  ;;  %v2403_v20 = vmul.f32 %v5745_v21, %v4128_v54  ;;  %v3127_v55 = vadd.f32 %v3063_v4, %v2246_v33 }
 0x17e   : > { %v2467_v43 = vadd.f32 %v2401_v60, %v2323_v7  ;;  %v2607_v11 = vmul.f32 %v5885_v58, %v5819_v32  ;;  %v5891_v8 = vmul.f32 %v5885_v58, %v5825_v38  ;;  %v429_v49 = vadd.s32 248, %v7075_v6  ;;  %v1435_v60 = vld [vmem:[#allocation2 + $0x38] sm:$0x7f] }
 0x17f   : > { %7156 = vst [vmem:[#allocation120_spill] sm:$0xff] %v5879_v5  ;;  %7157 = vst [vmem:[#allocation121_spill] sm:$0xff] %v5881_v2  ;;  %v6957_v15 = vrot.slane %v5879_v5, 7  ;;  %v6956_v9 = vrot.slane %v5881_v2, 7  ;;  %v2469_v12 = vadd.f32 %v2403_v20, %v2325_v19  ;;  %v1091_v7 = vmul.f32 %v3993_v61, %v5627_v40  ;;  %v2254_v5 = vld [vmem:[#allocation2 + $0x108] sm:$0x1] }
 0x180   : > { %3191 = vst [vmem:[%s4160_s24 + $0x1d0] sm:$0xff] %v3127_v55  ;;  %v5897_v48 = vadd.f32 %v2607_v11, %v2467_v43  ;;  %v1163_v33 = vmul.f32 %v3997_v62, %v5757_v17  ;;  %v651_v20 = vand.u32 15, %v429_v49  ;;  %v1303_v43 = vmul.f32 %v5825_v38, %v4001_v63  ;;  %v1513_v55 = vld [vmem:[#allocation2 + $0x228] sm:$0x7f] }
 0x181   : > { %v2051_v4 = vsel %vm1929_vm0, %v6957_v15, %v6956_v9  ;;  %v5909_v19 = vadd.f32 %v5891_v8, %v2469_v12  ;;  %v1657_v11 = vld [vmem:[#allocation2 + $0xa8] sm:$0x7f]  ;;  %v1015_v50 = vadd.f32 %v4007_v30, %v5757_v17  ;;  %v1507_v2 = vmul.f32 %v5661_v1, %v4004_v29 }
 0x182   : > { %7158 = vst [vmem:[#allocation122_spill] sm:$0xff] %v5897_v48  ;;  %v1227_v16 = vadd.f32 %v1163_v33, %v1091_v7  ;;  %v2247_v9 = vadd.f32 %v2051_v4, %v1428_v0  ;;  %v1509_v49 = vmul.f32 %v4004_v29, %v1435_v60  ;;  %v1585_v15 = vmul.f32 %v5682_v26, %v4015_v35  ;;  %v2332_v33 = vld [vmem:[#allocation2 + $0x40] sm:$0x1] }
 0x183   : > { %7159 = vst [vmem:[#allocation123_spill] sm:$0xff] %v5909_v19  ;;  %v6962_v12 = vrot.slane %v5909_v19, 1  ;;  %v1587_v18 = vmul.f32 %v4015_v35, %v1513_v55  ;;  %v1729_v52 = vmul.f32 %v5825_v38, %v4019_v36  ;;  %v1731_v7 = vmul.f32 %v4019_v36, %v1657_v11 }
 0x184   : > { %v1367_v3 = vadd.f32 %v1303_v43, %v1227_v16  ;;  %v7160_v1 = vrot.slane %v5897_v48, 1  ;;  %vm5931_vm3 = vcmp.lt.s32.totalorder %v651_v20, 15  ;;  %v1651_v26 = vadd.f32 %v1585_v15, %v1507_v2  ;;  %v1436_v15 = vld [vmem:[#allocation2 + $0x148] sm:$0x7f] }
 0x185   : > { %v2326_v16 = vmul.f32 %v4041_v45, %v5627_v40  ;;  %v2328_v4 = vmul.f32 %v4041_v45, %v2254_v5  ;;  %v1653_v11 = vadd.f32 %v1587_v18, %v1509_v49  ;;  %v2404_v19 = vmul.f32 %v4045_v34, %v5757_v17  ;;  %v1514_v18 = vld [vmem:[#allocation2 + $0x210] sm:$0x7f] }
 0x186   : > { %v2932_v0 = vsel %vm2810_vm2, %v7160_v1, %v6962_v12  ;;  %v1431_v55 = vadd.f32 %v1367_v3, %v1015_v50  ;;  %v5942_v20 = vadd.f32 %v1729_v52, %v1651_v26  ;;  %v2406_v12 = vmul.f32 %v4045_v34, %v2332_v33  ;;  %v1658_v52 = vld [vmem:[#allocation2 + $0x118] sm:$0x7f] }
 0x187   : > { %v3064_v43 = vsel %vm5801_vm1, %v2932_v0, 0.0  ;;  %v2612_v2 = vmul.f32 %v5815_v51, %v2538_v39  ;;  %v1797_v40 = vadd.f32 %v1731_v7, %v1653_v11  ;;  %v2470_v48 = vadd.f32 %v2404_v19, %v2326_v16  ;;  %v2255_v16 = vld [vmem:[#allocation2 + $0xe0] sm:$0x1] }
 0x188   : > { %v3128_v1 = vadd.f32 %v3064_v43, %v2247_v9  ;;  %v1016_v5 = vadd.f32 %v4067_v44, %v5819_v32  ;;  %v1092_v3 = vmul.f32 %v4071_v41, %v5694_v14  ;;  %v6965_v17 = vrot.slane %v5942_v20, 7  ;;  %v2333_v43 = vld [vmem:[#allocation2 + $0xf0] sm:$0x1] }
 0x189   : > { %v2472_v22 = vadd.f32 %v2406_v12, %v2328_v4  ;;  %v1164_v50 = vmul.f32 %v4076_v24, %v5819_v32  ;;  %v1304_v39 = vmul.f32 %v5825_v38, %v4090_v28  ;;  %v2056_v9 = vrot.slane %v1797_v40, 7 }
 0x18a   : > { %3192 = vst [vmem:[%s4160_s24 + $0x1d8] sm:$0xff] %v3128_v1  ;;  %v5957_v19 = vadd.f32 %v5829_v10, %v2470_v48  ;;  %v1508_v49 = vmul.f32 %v5728_v13, %v4011_v31  ;;  %v1510_v7 = vmul.f32 %v4011_v31, %v1436_v15  ;;  %v1586_v12 = vmul.f32 %v5745_v21, %v4103_v56  ;;  %v2539_v21 = vld [vmem:[#allocation2 + $0xd8] sm:$0x1] }
 0x18b   : > { %v2678_v33 = vadd.f32 %v2612_v2, %v2472_v22  ;;  %v1228_v0 = vadd.f32 %v1164_v50, %v1092_v3  ;;  %v1588_v26 = vmul.f32 %v4103_v56, %v1514_v18  ;;  %v2057_v4 = vsel %vm1929_vm0, %v6965_v17, %v2056_v9 }
 0x18c   : > { %7163 = vst [vmem:[#allocation124_spill] sm:$0xff] %v5957_v19  ;;  %v6964_v10 = vrot.slane %v5957_v19, 1  ;;  %v1730_v48 = vmul.f32 %v5825_v38, %v4118_v47  ;;  %v1732_v13 = vmul.f32 %v4118_v47, %v1658_v52  ;;  %v2250_v11 = vadd.f32 %v2057_v4, %v1431_v55  ;;  %v1434_v19 = vld [vmem:[#allocation2 + $0x8] sm:$0x80] }
 0x18d   : > { %v2937_v1 = vrot.slane %v2678_v33, 1  ;;  %v1368_v2 = vadd.f32 %v1304_v39, %v1228_v0  ;;  %v1652_v15 = vadd.f32 %v1586_v12, %v1508_v49  ;;  %v1654_v40 = vadd.f32 %v1588_v26, %v1510_v7  ;;  %v1433_v26 = vld [vmem:[#allocation2 + $0x98] sm:$0x80] }
 0x18e   : > { %v2327_v3 = vmul.f32 %v4123_v53, %v5694_v14  ;;  %v2329_v18 = vmul.f32 %v4123_v53, %v2255_v16  ;;  %v2405_v22 = vmul.f32 %v4128_v54, %v5819_v32  ;;  %v2407_v55 = vmul.f32 %v4128_v54, %v2333_v43 }
 0x18f   : > { %v2938_v50 = vsel %vm2810_vm2, %v6964_v10, %v2937_v1  ;;  %v1432_v52 = vadd.f32 %v1368_v2, %v1016_v5  ;;  %v5980_v9 = vadd.f32 %v1730_v48, %v1652_v15  ;;  %v1798_v49 = vadd.f32 %v1732_v13, %v1654_v40  ;;  %v1511_v5 = vld [vmem:[#allocation2 + $0xb8] sm:$0x80]  ;;  %v2252_v1 = vld [vmem:[#allocation2 + $0x240] sm:$0xfe] }
 0x190   : > { %v3067_v39 = vsel %vm5931_vm3, %v2938_v50, 0.0  ;;  %v2471_v14 = vadd.f32 %v2405_v22, %v2327_v3  ;;  %v2613_v7 = vmul.f32 %v5885_v58, %v2539_v21  ;;  %v2473_v0 = vadd.f32 %v2407_v55, %v2329_v18  ;;  %v5991_v48 = vld [vmem:[#allocation2 + $0x158] sm:$0xff]  ;;  %v6004_v21 = vld [vmem:[#allocation2 + $0x10] sm:$0xff] }
 0x191   : > { %v3131_v33 = vadd.f32 %v3067_v39, %v2250_v11  ;;  %v2054_v32 = vrot.slane %v5980_v9, 7  ;;  %v434_v12 = vand.u32 15, %v7075_v6  ;;  %v2058_v16 = vrot.slane %v1798_v49, 7  ;;  %v1655_v11 = vld [vmem:[#allocation2 + $0x200] sm:$0x80] }
 0x192   : > { %v5989_v4 = vadd.f32 %v5891_v8, %v2471_v14  ;;  %v953_v13 = vadd.f32 %v5991_v48, %v4007_v30  ;;  %v1029_v43 = vmul.f32 %v5825_v38, %v3993_v61  ;;  %v2679_v2 = vadd.f32 %v2613_v7, %v2473_v0  ;;  %v2330_v3 = vld [vmem:[#allocation2 + $0x158] sm:$0xfe]  ;;  %v2474_v18 = vld [vmem:[#allocation2 + $0x10] sm:$0xfe] }
 0x193   : > { %3195 = vst [vmem:[%s4160_s24 + $0x1f0] sm:$0xff] %v3131_v33  ;;  %vm5998_vm4 = vcmp.gt.s32.totalorder %v434_v12, 0  ;;  %v1101_v8 = vmul.f32 %v5991_v48, %v3997_v62  ;;  %v1241_v40 = vmul.f32 %v6004_v21, %v4001_v63  ;;  %v2059_v22 = vsel %vm1929_vm0, %v2054_v32, %v2058_v16 }
 0x194   : > { %v2935_v50 = vrot.slane %v5989_v4, 1  ;;  %v1445_v55 = vmul.f32 %v4004_v29, %v1433_v26  ;;  %v1523_v39 = vmul.f32 %v4015_v35, %v1511_v5  ;;  %v2251_v49 = vadd.f32 %v2059_v22, %v1432_v52  ;;  %v3473_v26 = vld [vmem:[#allocation2 + $0x68] sm:$0xff]  ;;  %v1656_v5 = vld [vmem:[#allocation2 + $0x258] sm:$0x80] }
 0x195   : > { %v2939_v14 = vrot.slane %v2679_v2, 1  ;;  %v1165_v7 = vadd.f32 %v1101_v8, %v1029_v43  ;;  %v1667_v33 = vmul.f32 %v4019_v36, %v1655_v11  ;;  %v2264_v12 = vmul.f32 %v4041_v45, %v2252_v1  ;;  %v1512_v36 = vld [vmem:[#allocation2 + $0xc0] sm:$0x80]  ;;  %v2253_v43 = vld [vmem:[#allocation2 + $0x28] sm:$0xfe] }
 0x196   : > { %v1589_v0 = vadd.f32 %v1523_v39, %v1445_v55  ;;  %v2342_v10 = vmul.f32 %v4045_v34, %v2330_v3  ;;  %v2548_v17 = vmul.f32 %v5815_v51, %v2474_v18  ;;  %v954_v35 = vadd.f32 %v3473_v26, %v4067_v44  ;;  %v2331_v1 = vld [vmem:[#allocation2 + $0x68] sm:$0xfe]  ;;  %v2475_v2 = vld [vmem:[#allocation2 + $0x30] sm:$0xfe] }
 0x197   : > { %v2940_v16 = vsel %vm2810_vm2, %v2935_v50, %v2939_v14  ;;  %v1305_v29 = vadd.f32 %v1241_v40, %v1165_v7  ;;  %v1030_v52 = vmul.f32 %v5825_v38, %v4071_v41  ;;  %v1102_v11 = vmul.f32 %v3473_v26, %v4076_v24  ;;  %v6027_v3 = vld [vmem:[#allocation2 + $0x30] sm:$0xff]  ;;  %v7166_v7 = vld [vmem:[#allocation24_spill] sm:$0xff] }
 0x198   : > { %v3068_v34 = vsel %vm5931_vm3, %v2940_v16, 0.0  ;;  %v1733_v45 = vadd.f32 %v1667_v33, %v1589_v0  ;;  %v2408_v51 = vadd.f32 %v2342_v10, %v2264_v12  ;;  %v1242_v38 = vmul.f32 %v6027_v3, %v4090_v28 }
 0x199   : > { %v3132_v8 = vadd.f32 %v3068_v34, %v2251_v49  ;;  %v1369_v40 = vadd.f32 %v1305_v29, %v953_v13  ;;  %v1446_v18 = vmul.f32 %v4011_v31, %v1434_v19  ;;  %v1166_v60 = vadd.f32 %v1102_v11, %v1030_v52  ;;  %v7168_v29 = vld [vmem:[#allocation26_spill] sm:$0xff] }
 0x19a   : > { %v1930_v22 = vrot.slane %v1733_v45, 7  ;;  %v2614_v55 = vadd.f32 %v2548_v17, %v2408_v51  ;;  %v1524_v39 = vmul.f32 %v4103_v56, %v1512_v36  ;;  %v1668_v10 = vmul.f32 %v4118_v47, %v1656_v5 }
 0x19b   : > { %3196 = vst [vmem:[%s4160_s24 + $0x1f8] sm:$0xff] %v3132_v8  ;;  %v2265_v14 = vmul.f32 %v4123_v53, %v2253_v43  ;;  %v2343_v49 = vmul.f32 %v4128_v54, %v2331_v1  ;;  %v2549_v13 = vmul.f32 %v5885_v58, %v2475_v2  ;;  %v7167_v33 = vrot.slane %v7166_v7, 7  ;;  %v3475_v1 = vld [vmem:[#allocation2 + $0x70] sm:$0xff] }
 0x19c   : > { %v2811_v12 = vrot.slane %v2614_v55, 1  ;;  %v1306_v31 = vadd.f32 %v1242_v38, %v1166_v60  ;;  %v1590_v19 = vadd.f32 %v1524_v39, %v1446_v18  ;;  %v400_v16 = vadd.s32 16, %v7075_v6  ;;  %v7175_v60 = vld [vmem:[#allocation28_spill] sm:$0xff] }
 0x19d   : > { %v1932_v0 = vsel %vm1929_vm0, %v1930_v22, %v7167_v33  ;;  %v2409_v56 = vadd.f32 %v2343_v49, %v2265_v14  ;;  %v7169_v53 = vrot.slane %v7168_v29, 1  ;;  %v957_v52 = vadd.f32 %v6004_v21, %v4007_v30  ;;  %v7173_v22 = vld [vmem:[#allocation25_spill] sm:$0xff]  ;;  %v7178_v14 = vld [vmem:[#allocation27_spill] sm:$0xff] }
 0x19e   : > { %v2124_v17 = vsel %vm5998_vm4, %v1932_v0, 0.0  ;;  %v1734_v58 = vadd.f32 %v1668_v10, %v1590_v19  ;;  %v448_v5 = vand.u32 15, %v400_v16  ;;  %v1033_v43 = vmul.f32 %v5991_v48, %v3993_v61 }
 0x19f   : > { %v2188_v47 = vadd.f32 %v2124_v17, %v1369_v40  ;;  %v2813_v54 = vsel %vm2810_vm2, %v2811_v12, %v7169_v53  ;;  %v2615_v36 = vadd.f32 %v2549_v13, %v2409_v56  ;;  %v1105_v34 = vmul.f32 %v6004_v21, %v3997_v62 }
 0x1a0   : > { %v1370_v51 = vadd.f32 %v1306_v31, %v954_v35  ;;  %v1933_v11 = vrot.slane %v1734_v58, 7  ;;  %v1245_v2 = vmul.f32 %v3475_v1, %v4001_v63  ;;  %vm6054_vm5 = vcmp.gt.s32.totalorder %v448_v5, 0 }
 0x1a1   : > { %v3069_v45 = vadd.f32 %v2813_v54, %v2188_v47  ;;  %v2814_v8 = vrot.slane %v2615_v36, 1  ;;  %v1169_v38 = vadd.f32 %v1105_v34, %v1033_v43  ;;  %v7172_v18 = vrot.slane %v4202_v23, 7  ;;  %v7182_v47 = vld [vmem:[#allocation29_spill] sm:$0xff] }
 0x1a2   : > { %v7174_v55 = vrot.slane %v7173_v22, 7  ;;  %v7176_v39 = vrot.slane %v7175_v60, 7  ;;  %v7177_v10 = vrot.slane %v4227_v27, 1  ;;  %v7179_v49 = vrot.slane %v7178_v14, 1 }
 0x1a3   : > { %3133 = vst [vmem:[%s4160_s24] sm:$0xff] %v3069_v45  ;;  %v1034_v7 = vmul.f32 %v3473_v26, %v4071_v41  ;;  %v7180_v33 = vrot.slane %v4173_v57, 1  ;;  %v1309_v12 = vadd.f32 %v1245_v2, %v1169_v38  ;;  %v1106_v31 = vmul.f32 %v6027_v3, %v4076_v24  ;;  %v3476_v26 = vld [vmem:[#allocation2 + $0x60] sm:$0xff] }
 0x1a4   : > { %v1941_v48 = vsel %vm1929_vm0, %v7174_v55, %v7172_v18  ;;  %v1935_v35 = vsel %vm1929_vm0, %v1933_v11, %v7176_v39  ;;  %v2822_v13 = vsel %vm2810_vm2, %v7179_v49, %v7177_v10  ;;  %v958_v17 = vadd.f32 %v6027_v3, %v4067_v44  ;;  %v3477_v11 = vld [vmem:[#allocation2 + $0x1c8] sm:$0xff]  ;;  %v7187_v18 = vld [vmem:[#allocation30_spill] sm:$0xff]  ;;  %v7192_v10 = vld [vmem:[#allocation31_spill] sm:$0xff] }
 0x1a5   : > { %v2125_v23 = vsel %vm5998_vm4, %v1935_v35, 0.0  ;;  %v2816_v0 = vsel %vm2810_vm2, %v2814_v8, %v7180_v33  ;;  %v2128_v27 = vsel %vm6054_vm5, %v1941_v48, 0.0  ;;  %v1246_v15 = vmul.f32 %v3476_v26, %v4090_v28 }
 0x1a6   : > { %v2189_v19 = vadd.f32 %v2125_v23, %v1370_v51  ;;  %v1373_v56 = vadd.f32 %v1309_v12, %v957_v52  ;;  %v1170_v16 = vadd.f32 %v1106_v31, %v1034_v7  ;;  %v7181_v57 = vrot.slane %v4272_v25, 7  ;;  %v3478_v7 = vld [vmem:[#allocation2 + $0x190] sm:$0xff] }
 0x1a7   : > { %v7183_v29 = vrot.slane %v7182_v47, 7  ;;  %v402_v54 = vadd.s32 32, %v7075_v6  ;;  %v7184_v36 = vrot.slane %v4287_v37, 1  ;;  %v7185_v5 = vrot.slane %v4184_v46, 1 }
 0x1a8   : > { %v3070_v58 = vadd.f32 %v2816_v0, %v2189_v19  ;;  %v1037_v34 = vmul.f32 %v6004_v21, %v3993_v61  ;;  %v1109_v52 = vmul.f32 %v3475_v1, %v3997_v62  ;;  %v2192_v45 = vadd.f32 %v2128_v27, %v1373_v56  ;;  %v7194_v0 = vld [vmem:[#allocation36_spill] sm:$0xff]  ;;  %v7198_v56 = vld [vmem:[#allocation38_spill] sm:$0xff] }
 0x1a9   : > { %v1943_v53 = vsel %vm1929_vm0, %v7183_v29, %v7181_v57  ;;  %v2824_v43 = vsel %vm2810_vm2, %v7185_v5, %v7184_v36  ;;  %v1310_v25 = vadd.f32 %v1246_v15, %v1170_v16  ;;  %v462_v51 = vand.u32 15, %v402_v54  ;;  %v7200_v57 = vld [vmem:[#allocation33_spill] sm:$0xff] }
 0x1aa   : > { %v1249_v2 = vmul.f32 %v3477_v11, %v4001_v63  ;;  %3134 = vst [vmem:[%s4160_s24 + $0x8] sm:$0xff] %v3070_v58  ;;  %v2129_v37 = vsel %vm6054_vm5, %v1943_v53, 0.0  ;;  %v961_v46 = vadd.f32 %v3475_v1, %v4007_v30  ;;  %v1173_v8 = vadd.f32 %v1109_v52, %v1037_v34 }
 0x1ab   : > { %v7186_v38 = vrot.slane %v4327_v59, 7  ;;  %v7188_v21 = vrot.slane %v7187_v18, 7  ;;  %v3073_v55 = vadd.f32 %v2822_v13, %v2192_v45  ;;  %v1374_v48 = vadd.f32 %v1310_v25, %v958_v17  ;;  %v3479_v45 = vld [vmem:[#allocation2 + $0x78] sm:$0xff] }
 0x1ac   : > { %vm6109_vm6 = vcmp.gt.s32.totalorder %v462_v51, 0  ;;  %v1038_v39 = vmul.f32 %v6027_v3, %v4071_v41  ;;  %v1313_v40 = vadd.f32 %v1249_v2, %v1173_v8  ;;  %v7191_v35 = vrot.slane %v4348_v42, 1  ;;  %v7196_v3 = vld [vmem:[#allocation32_spill] sm:$0xff]  ;;  %v7222_v51 = vld [vmem:[#allocation21_spill] sm:$0xff] }
 0x1ad   : > { %v1949_v22 = vsel %vm1929_vm0, %v7188_v21, %v7186_v38  ;;  %v7193_v14 = vrot.slane %v7192_v10, 1  ;;  %v1110_v49 = vmul.f32 %v3476_v26, %v4076_v24  ;;  %v1250_v13 = vmul.f32 %v3478_v7, %v4090_v28  ;;  %3137 = vst [vmem:[%s4160_s24 + $0x20] sm:$0xff] %v3073_v55 }
 0x1ae   : > { %v2193_v23 = vadd.f32 %v2129_v37, %v1374_v48  ;;  %v2132_v33 = vsel %vm6109_vm6, %v1949_v22, 0.0  ;;  %v7195_v12 = vrot.slane %v7194_v0, 7  ;;  %v7197_v31 = vrot.slane %v7196_v3, 7  ;;  %v7208_v22 = vld [vmem:[#allocation13_spill] sm:$0xff]  ;;  %v7210_v48 = vld [vmem:[#allocation35_spill] sm:$0xff] }
 0x1af   : > { %v2830_v59 = vsel %vm2810_vm2, %v7193_v14, %v7191_v35  ;;  %v404_v19 = vadd.s32 48, %v7075_v6  ;;  %v1377_v27 = vadd.f32 %v1313_v40, %v961_v46  ;;  %v962_v17 = vadd.f32 %v3476_v26, %v4067_v44  ;;  %v7206_v46 = vld [vmem:[#allocation34_spill] sm:$0xff] }
 0x1b0   : > { %v1951_v42 = vsel %vm1929_vm0, %v7197_v31, %v7195_v12  ;;  %v1174_v15 = vadd.f32 %v1110_v49, %v1038_v39  ;;  %v7199_v16 = vrot.slane %v7198_v56, 1  ;;  %v7201_v47 = vrot.slane %v7200_v57, 1  ;;  %v3480_v14 = vld [vmem:[#allocation2 + $0x50] sm:$0xff]  ;;  %v3481_v57 = vld [vmem:[#allocation2 + $0x1f8] sm:$0xff] }
 0x1b1   : > { %v3074_v53 = vadd.f32 %v2824_v43, %v2193_v23  ;;  %v476_v54 = vand.u32 15, %v404_v19  ;;  %v1041_v58 = vmul.f32 %v3475_v1, %v3993_v61  ;;  %v1113_v36 = vmul.f32 %v3477_v11, %v3997_v62  ;;  %v7204_v1 = vld [vmem:[#allocation20_spill] sm:$0xff] }
 0x1b2   : > { %v2832_v29 = vsel %vm2810_vm2, %v7201_v47, %v7199_v16  ;;  %v2196_v5 = vadd.f32 %v2132_v33, %v1377_v27  ;;  %v1314_v34 = vadd.f32 %v1250_v13, %v1174_v15  ;;  %v2133_v52 = vsel %vm6109_vm6, %v1951_v42, 0.0  ;;  %v7212_v13 = vld [vmem:[#allocation41_spill] sm:$0xff] }
 0x1b3   : > { %v1253_v25 = vmul.f32 %v3479_v45, %v4001_v63  ;;  %3138 = vst [vmem:[%s4160_s24 + $0x28] sm:$0xff] %v3074_v53  ;;  %vm6143_vm7 = vcmp.gt.s32.totalorder %v476_v54, 0  ;;  %v965_v43 = vadd.f32 %v3477_v11, %v4007_v30  ;;  %v1177_v2 = vadd.f32 %v1113_v36, %v1041_v58  ;;  %v7214_v33 = vld [vmem:[#allocation37_spill] sm:$0xff]  ;;  %v7216_v58 = vld [vmem:[#allocation14_spill] sm:$0xff] }
 0x1b4   : > { %v7205_v37 = vrot.slane %v7204_v1, 7  ;;  %v7207_v8 = vrot.slane %v7206_v46, 7  ;;  %v3077_v18 = vadd.f32 %v2830_v59, %v2196_v5  ;;  %v1378_v21 = vadd.f32 %v1314_v34, %v962_v17  ;;  %v7218_v5 = vld [vmem:[#allocation39_spill] sm:$0xff] }
 0x1b5   : > { %v7209_v55 = vrot.slane %v7208_v22, 1  ;;  %v7211_v60 = vrot.slane %v7210_v48, 1  ;;  %v1042_v40 = vmul.f32 %v3476_v26, %v4071_v41  ;;  %v1317_v35 = vadd.f32 %v1253_v25, %v1177_v2  ;;  %v7224_v2 = vld [vmem:[#allocation40_spill] sm:$0xff] }
 0x1b6   : > { %v1957_v38 = vsel %vm1929_vm0, %v7207_v8, %v7205_v37  ;;  %v1114_v10 = vmul.f32 %v3478_v7, %v4076_v24  ;;  %v1254_v49 = vmul.f32 %v3480_v14, %v4090_v28  ;;  %v7213_v23 = vrot.slane %v7212_v13, 7  ;;  %3141 = vst [vmem:[%s4160_s24 + $0x40] sm:$0xff] %v3077_v18  ;;  %v7226_v18 = vld [vmem:[#allocation17_spill] sm:$0xff]  ;;  %v7228_v22 = vld [vmem:[#allocation12_spill] sm:$0xff] }
 0x1b7   : > { %v2838_v39 = vsel %vm2810_vm2, %v7211_v60, %v7209_v55  ;;  %v7215_v0 = vrot.slane %v7214_v33, 7  ;;  %v2197_v12 = vadd.f32 %v2133_v52, %v1378_v21  ;;  %v2136_v3 = vsel %vm6143_vm7, %v1957_v38, 0.0  ;;  %v7230_v13 = vld [vmem:[#allocation44_spill] sm:$0xff]  ;;  %v7232_v33 = vld [vmem:[#allocation42_spill] sm:$0xff] }
 0x1b8   : > { %v966_v26 = vadd.f32 %v3478_v7, %v4067_v44  ;;  %v406_v31 = vadd.s32 64, %v7075_v6  ;;  %v1381_v42 = vadd.f32 %v1317_v35, %v965_v43  ;;  %v1178_v19 = vadd.f32 %v1114_v10, %v1042_v40  ;;  %v3482_v10 = vld [vmem:[#allocation2 + $0xb0] sm:$0xff] }
 0x1b9   : > { %v1959_v59 = vsel %vm1929_vm0, %v7215_v0, %v7213_v23  ;;  %v1045_v17 = vmul.f32 %v3477_v11, %v3993_v61  ;;  %v3078_v15 = vadd.f32 %v2832_v29, %v2197_v12  ;;  %v1117_v16 = vmul.f32 %v3479_v45, %v3997_v62  ;;  %v7238_v11 = vld [vmem:[#allocation46_spill] sm:$0xff] }
 0x1ba   : > { %v2137_v27 = vsel %vm6143_vm7, %v1959_v59, 0.0  ;;  %v490_v56 = vand.u32 15, %v406_v31  ;;  %v1257_v47 = vmul.f32 %v3481_v57, %v4001_v63  ;;  %v2200_v53 = vadd.f32 %v2136_v3, %v1381_v42 }
 0x1bb   : > { %v1318_v54 = vadd.f32 %v1254_v49, %v1178_v19  ;;  %v7217_v36 = vrot.slane %v7216_v58, 1  ;;  %v7219_v34 = vrot.slane %v7218_v5, 1  ;;  %v969_v25 = vadd.f32 %v3479_v45, %v4007_v30  ;;  %3142 = vst [vmem:[%s4160_s24 + $0x48] sm:$0xff] %v3078_v15  ;;  %v7234_v58 = vld [vmem:[#allocation22_spill] sm:$0xff]  ;;  %v7236_v5 = vld [vmem:[#allocation43_spill] sm:$0xff] }
 0x1bc   : > { %vm6183_vm8 = vcmp.gt.s32.totalorder %v490_v56, 0  ;;  %v1181_v29 = vadd.f32 %v1117_v16, %v1045_v17  ;;  %v7223_v43 = vrot.slane %v7222_v51, 7  ;;  %v7225_v1 = vrot.slane %v7224_v2, 7  ;;  %v3483_v16 = vld [vmem:[#allocation2 + $0x1a0] sm:$0xff]  ;;  %v7262_v2 = vld [vmem:[#allocation55_spill] sm:$0xff] }
 0x1bd   : > { %v2840_v52 = vsel %vm2810_vm2, %v7219_v34, %v7217_v36  ;;  %v1046_v46 = vmul.f32 %v3478_v7, %v4071_v41  ;;  %v3081_v8 = vadd.f32 %v2838_v39, %v2200_v53  ;;  %v1382_v38 = vadd.f32 %v1318_v54, %v966_v26 }
 0x1be   : > { %v1965_v37 = vsel %vm1929_vm0, %v7225_v1, %v7223_v43  ;;  %v7227_v21 = vrot.slane %v7226_v18, 1  ;;  %v7229_v55 = vrot.slane %v7228_v22, 1  ;;  %v1118_v60 = vmul.f32 %v3480_v14, %v4076_v24  ;;  %v7246_v18 = vld [vmem:[#allocation16_spill] sm:$0xff] }
 0x1bf   : > { %v1321_v40 = vadd.f32 %v1257_v47, %v1181_v29  ;;  %v970_v35 = vadd.f32 %v3480_v14, %v4067_v44  ;;  %v1258_v49 = vmul.f32 %v3482_v10, %v4090_v28  ;;  %v7231_v23 = vrot.slane %v7230_v13, 7  ;;  %3145 = vst [vmem:[%s4160_s24 + $0x60] sm:$0xff] %v3081_v8  ;;  %v7240_v29 = vld [vmem:[#allocation15_spill] sm:$0xff]  ;;  %v7244_v8 = vld [vmem:[#allocation48_spill] sm:$0xff] }
 0x1c0   : > { %v2846_v48 = vsel %vm2810_vm2, %v7229_v55, %v7227_v21  ;;  %v7233_v7 = vrot.slane %v7232_v33, 7  ;;  %v2201_v0 = vadd.f32 %v2137_v27, %v1382_v38  ;;  %v2140_v59 = vsel %vm6183_vm8, %v1965_v37, 0.0 }
 0x1c1   : > { %v1182_v12 = vadd.f32 %v1118_v60, %v1046_v46  ;;  %v408_v3 = vadd.s32 80, %v7075_v6  ;;  %v1385_v26 = vadd.f32 %v1321_v40, %v969_v25  ;;  %v1049_v42 = vmul.f32 %v3479_v45, %v3993_v61 }
 0x1c2   : > { %v1967_v39 = vsel %vm1929_vm0, %v7233_v7, %v7231_v23  ;;  %v1121_v19 = vmul.f32 %v3481_v57, %v3997_v62  ;;  %v3082_v17 = vadd.f32 %v2840_v52, %v2201_v0  ;;  %v1261_v27 = vmul.f32 %v3483_v16, %v4001_v63  ;;  %v7248_v23 = vld [vmem:[#allocation50_spill] sm:$0xff]  ;;  %v7250_v7 = vld [vmem:[#allocation45_spill] sm:$0xff] }
 0x1c3   : > { %v2141_v31 = vsel %vm6183_vm8, %v1967_v39, 0.0  ;;  %v1322_v15 = vadd.f32 %v1258_v49, %v1182_v12  ;;  %v504_v56 = vand.u32 15, %v408_v3  ;;  %v2204_v47 = vadd.f32 %v2140_v59, %v1385_v26  ;;  %v3484_v49 = vld [vmem:[#allocation2 + $0x1b0] sm:$0xff]  ;;  %v7252_v3 = vld [vmem:[#allocation52_spill] sm:$0xff] }
 0x1c4   : > { %v973_v53 = vadd.f32 %v3481_v57, %v4007_v30  ;;  %v1185_v54 = vadd.f32 %v1121_v19, %v1049_v42  ;;  %v7235_v36 = vrot.slane %v7234_v58, 7  ;;  %v7237_v34 = vrot.slane %v7236_v5, 7  ;;  %3146 = vst [vmem:[%s4160_s24 + $0x68] sm:$0xff] %v3082_v17 }
 0x1c5   : > { %v1386_v45 = vadd.f32 %v1322_v15, %v970_v35  ;;  %v7239_v52 = vrot.slane %v7238_v11, 1  ;;  %v7241_v51 = vrot.slane %v7240_v29, 1  ;;  %vm6227_vm9 = vcmp.gt.s32.totalorder %v504_v56, 0 }
 0x1c6   : > { %v1973_v25 = vsel %vm1929_vm0, %v7237_v34, %v7235_v36  ;;  %v1050_v1 = vmul.f32 %v3480_v14, %v4071_v41  ;;  %v3085_v37 = vadd.f32 %v2846_v48, %v2204_v47  ;;  %v1325_v46 = vadd.f32 %v1261_v27, %v1185_v54  ;;  %v7256_v34 = vld [vmem:[#allocation23_spill] sm:$0xff] }
 0x1c7   : > { %v2848_v43 = vsel %vm2810_vm2, %v7241_v51, %v7239_v52  ;;  %v7245_v38 = vrot.slane %v7244_v8, 1  ;;  %v7247_v21 = vrot.slane %v7246_v18, 1  ;;  %v1122_v55 = vmul.f32 %v3482_v10, %v4076_v24  ;;  %v7282_v51 = vld [vmem:[#allocation56_spill] sm:$0xff] }
 0x1c8   : > { %v2205_v60 = vadd.f32 %v2141_v31, %v1386_v45  ;;  %v2144_v40 = vsel %vm6227_vm9, %v1973_v25, 0.0  ;;  %v974_v35 = vadd.f32 %v3482_v10, %v4067_v44  ;;  %v1262_v14 = vmul.f32 %v3484_v49, %v4090_v28  ;;  %3149 = vst [vmem:[%s4160_s24 + $0x80] sm:$0xff] %v3085_v37  ;;  %v7254_v31 = vld [vmem:[#allocation18_spill] sm:$0xff]  ;;  %v7258_v45 = vld [vmem:[#allocation47_spill] sm:$0xff] }
 0x1c9   : > { %v2854_v22 = vsel %vm2810_vm2, %v7247_v21, %v7245_v38  ;;  %v1389_v48 = vadd.f32 %v1325_v46, %v973_v53  ;;  %v1186_v13 = vadd.f32 %v1122_v55, %v1050_v1  ;;  %v7249_v33 = vrot.slane %v7248_v23, 7  ;;  %v3485_v53 = vld [vmem:[#allocation2 + $0x248] sm:$0xff]  ;;  %v3486_v21 = vld [vmem:[#allocation2 + $0x180] sm:$0xff] }
 0x1ca   : > { %v7251_v39 = vrot.slane %v7250_v7, 7  ;;  %v410_v59 = vadd.s32 96, %v7075_v6  ;;  %v3086_v12 = vadd.f32 %v2848_v43, %v2205_v60  ;;  %v7253_v26 = vrot.slane %v7252_v3, 1  ;;  %v7264_v46 = vld [vmem:[#allocation49_spill] sm:$0xff] }
 0x1cb   : > { %v7255_v42 = vrot.slane %v7254_v31, 1  ;;  %v1053_v17 = vmul.f32 %v3481_v57, %v3993_v61  ;;  %v1125_v15 = vmul.f32 %v3483_v16, %v3997_v62  ;;  %v2208_v56 = vadd.f32 %v2144_v40, %v1389_v48  ;;  %v7266_v40 = vld [vmem:[#allocation57_spill] sm:$0xff] }
 0x1cc   : > { %v1975_v0 = vsel %vm1929_vm0, %v7251_v39, %v7249_v33  ;;  %v1326_v27 = vadd.f32 %v1262_v14, %v1186_v13  ;;  %v518_v47 = vand.u32 15, %v410_v59  ;;  %v1265_v54 = vmul.f32 %v3485_v53, %v4001_v63  ;;  %3150 = vst [vmem:[%s4160_s24 + $0x88] sm:$0xff] %v3086_v12  ;;  %v7270_v39 = vld [vmem:[#allocation19_spill] sm:$0xff]  ;;  %v7272_v59 = vld [vmem:[#allocation53_spill] sm:$0xff] }
 0x1cd   : > { %v2856_v19 = vsel %vm2810_vm2, %v7255_v42, %v7253_v26  ;;  %v2145_v58 = vsel %vm6227_vm9, %v1975_v0, 0.0  ;;  %v977_v36 = vadd.f32 %v3483_v16, %v4007_v30  ;;  %v1189_v5 = vadd.f32 %v1125_v15, %v1053_v17 }
 0x1ce   : > { %v7257_v25 = vrot.slane %v7256_v34, 7  ;;  %v7259_v57 = vrot.slane %v7258_v45, 7  ;;  %v3089_v52 = vadd.f32 %v2854_v22, %v2208_v56  ;;  %v1390_v29 = vadd.f32 %v1326_v27, %v974_v35  ;;  %v7278_v34 = vld [vmem:[#allocation54_spill] sm:$0xff] }
 0x1cf   : > { %vm6266_vm10 = vcmp.gt.s32.totalorder %v518_v47, 0  ;;  %v1054_v43 = vmul.f32 %v3482_v10, %v4071_v41  ;;  %v1329_v1 = vadd.f32 %v1265_v54, %v1189_v5  ;;  %v7263_v37 = vrot.slane %v7262_v2, 1  ;;  %v7268_v10 = vld [vmem:[#allocation51_spill] sm:$0xff]  ;;  %v3487_v47 = vld [vmem:[#allocation2 + $0xe8] sm:$0xff] }
 0x1d0   : > { %v1981_v11 = vsel %vm1929_vm0, %v7259_v57, %v7257_v25  ;;  %v7265_v8 = vrot.slane %v7264_v46, 1  ;;  %v1126_v18 = vmul.f32 %v3484_v49, %v4076_v24  ;;  %v1266_v55 = vmul.f32 %v3486_v21, %v4090_v28  ;;  %3153 = vst [vmem:[%s4160_s24 + $0xa0] sm:$0xff] %v3089_v52  ;;  %v7280_v52 = vld [vmem:[#allocation62_spill] sm:$0xff] }
 0x1d1   : > { %v2209_v22 = vadd.f32 %v2145_v58, %v1390_v29  ;;  %v2148_v60 = vsel %vm6266_vm10, %v1981_v11, 0.0  ;;  %v7267_v35 = vrot.slane %v7266_v40, 7  ;;  %v7269_v14 = vrot.slane %v7268_v10, 7  ;;  %v7294_v58 = vld [vmem:[#allocation68_spill] sm:$0xff] }
 0x1d2   : > { %v2862_v38 = vsel %vm2810_vm2, %v7265_v8, %v7263_v37  ;;  %v412_v13 = vadd.s32 112, %v7075_v6  ;;  %v1393_v23 = vadd.f32 %v1329_v1, %v977_v36  ;;  %v978_v33 = vadd.f32 %v3484_v49, %v4067_v44  ;;  %v3488_v8 = vld [vmem:[#allocation2 + $0x238] sm:$0xff] }
 0x1d3   : > { %v1983_v48 = vsel %vm1929_vm0, %v7269_v14, %v7267_v35  ;;  %v1190_v7 = vadd.f32 %v1126_v18, %v1054_v43  ;;  %v7271_v0 = vrot.slane %v7270_v39, 1  ;;  %v7273_v12 = vrot.slane %v7272_v59, 1  ;;  %v3489_v59 = vld [vmem:[#allocation2 + $0x1e8] sm:$0xff] }
 0x1d4   : > { %v3090_v26 = vadd.f32 %v2856_v19, %v2209_v22  ;;  %v532_v31 = vand.u32 15, %v412_v13  ;;  %v1057_v42 = vmul.f32 %v3483_v16, %v3993_v61  ;;  %v1129_v17 = vmul.f32 %v3485_v53, %v3997_v62  ;;  %v7276_v16 = vld [vmem:[#allocation60_spill] sm:$0xff] }
 0x1d5   : > { %v2864_v3 = vsel %vm2810_vm2, %v7273_v12, %v7271_v0  ;;  %v2212_v15 = vadd.f32 %v2148_v60, %v1393_v23  ;;  %v1330_v56 = vadd.f32 %v1266_v55, %v1190_v7  ;;  %v2149_v27 = vsel %vm6266_vm10, %v1983_v48, 0.0  ;;  %v7284_v55 = vld [vmem:[#allocation64_spill] sm:$0xff]  ;;  %v7286_v60 = vld [vmem:[#allocation58_spill] sm:$0xff] }
 0x1d6   : > { %v1269_v54 = vmul.f32 %v3487_v47, %v4001_v63  ;;  %3154 = vst [vmem:[%s4160_s24 + $0xa8] sm:$0xff] %v3090_v26  ;;  %vm6299_vm11 = vcmp.gt.s32.totalorder %v532_v31, 0  ;;  %v981_v19 = vadd.f32 %v3485_v53, %v4007_v30  ;;  %v1193_v36 = vadd.f32 %v1129_v17, %v1057_v42  ;;  %v7288_v42 = vld [vmem:[#allocation66_spill] sm:$0xff] }
 0x1d7   : > { %v7277_v5 = vrot.slane %v7276_v16, 7  ;;  %v7279_v25 = vrot.slane %v7278_v34, 7  ;;  %v3093_v57 = vadd.f32 %v2862_v38, %v2212_v15  ;;  %v1394_v11 = vadd.f32 %v1330_v56, %v978_v33  ;;  %v7290_v15 = vld [vmem:[#allocation59_spill] sm:$0xff] }
 0x1d8   : > { %v7281_v29 = vrot.slane %v7280_v52, 1  ;;  %v7283_v43 = vrot.slane %v7282_v51, 1  ;;  %v1058_v2 = vmul.f32 %v3484_v49, %v4071_v41  ;;  %v1333_v37 = vadd.f32 %v1269_v54, %v1193_v36  ;;  %v7296_v36 = vld [vmem:[#allocation61_spill] sm:$0xff]  ;;  %v7300_v52 = vld [vmem:[#allocation63_spill] sm:$0xff] }
 0x1d9   : > { %v1989_v45 = vsel %vm1929_vm0, %v7279_v25, %v7277_v5  ;;  %v1130_v46 = vmul.f32 %v3486_v21, %v4076_v24  ;;  %v1270_v18 = vmul.f32 %v3488_v8, %v4090_v28  ;;  %v7285_v22 = vrot.slane %v7284_v55, 7  ;;  %3157 = vst [vmem:[%s4160_s24 + $0xc0] sm:$0xff] %v3093_v57  ;;  %v7298_v57 = vld [vmem:[#allocation70_spill] sm:$0xff]  ;;  %v7302_v55 = vld [vmem:[#allocation72_spill] sm:$0xff] }
 0x1da   : > { %v2870_v1 = vsel %vm2810_vm2, %v7283_v43, %v7281_v29  ;;  %v7287_v40 = vrot.slane %v7286_v60, 7  ;;  %v2213_v35 = vadd.f32 %v2149_v27, %v1394_v11  ;;  %v2152_v10 = vsel %vm6299_vm11, %v1989_v45, 0.0  ;;  %v7304_v60 = vld [vmem:[#allocation65_spill] sm:$0xff] }
 0x1db   : > { %v982_v49 = vadd.f32 %v3486_v21, %v4067_v44  ;;  %v414_v14 = vadd.s32 128, %v7075_v6  ;;  %v1397_v48 = vadd.f32 %v1333_v37, %v981_v19  ;;  %v1194_v13 = vadd.f32 %v1130_v46, %v1058_v2  ;;  %v3490_v46 = vld [vmem:[#allocation2] sm:$0xff] }
 0x1dc   : > { %v1991_v38 = vsel %vm1929_vm0, %v7287_v40, %v7285_v22  ;;  %v1061_v33 = vmul.f32 %v3485_v53, %v3993_v61  ;;  %v3094_v7 = vadd.f32 %v2864_v3, %v2213_v35  ;;  %v1133_v0 = vmul.f32 %v3487_v47, %v3997_v62  ;;  %v7310_v53 = vld [vmem:[#allocation74_spill] sm:$0xff] }
 0x1dd   : > { %v2153_v23 = vsel %vm6299_vm11, %v1991_v38, 0.0  ;;  %v546_v39 = vand.u32 15, %v414_v14  ;;  %v1273_v12 = vmul.f32 %v3489_v59, %v4001_v63  ;;  %v2216_v26 = vadd.f32 %v2152_v10, %v1397_v48 }
 0x1de   : > { %v1334_v31 = vadd.f32 %v1270_v18, %v1194_v13  ;;  %v7289_v17 = vrot.slane %v7288_v42, 1  ;;  %v7291_v56 = vrot.slane %v7290_v15, 1  ;;  %v985_v54 = vadd.f32 %v3487_v47, %v4007_v30  ;;  %3158 = vst [vmem:[%s4160_s24 + $0xc8] sm:$0xff] %v3094_v7  ;;  %v7306_v42 = vld [vmem:[#allocation76_spill] sm:$0xff]  ;;  %v7308_v15 = vld [vmem:[#allocation69_spill] sm:$0xff] }
 0x1df   : > { %vm6339_vm12 = vcmp.gt.s32.totalorder %v546_v39, 0  ;;  %v1197_v3 = vadd.f32 %v1133_v0, %v1061_v33  ;;  %v7295_v19 = vrot.slane %v7294_v58, 7  ;;  %v7297_v16 = vrot.slane %v7296_v36, 7  ;;  %v3491_v0 = vld [vmem:[#allocation2 + $0x1d8] sm:$0xff]  ;;  %v7334_v36 = vld [vmem:[#allocation86_spill] sm:$0xff] }
 0x1e0   : > { %v2872_v27 = vsel %vm2810_vm2, %v7291_v56, %v7289_v17  ;;  %v1062_v34 = vmul.f32 %v3486_v21, %v4071_v41  ;;  %v3097_v25 = vadd.f32 %v2870_v1, %v2216_v26  ;;  %v1398_v45 = vadd.f32 %v1334_v31, %v982_v49 }
 0x1e1   : > { %v1997_v5 = vsel %vm1929_vm0, %v7297_v16, %v7295_v19  ;;  %v7299_v11 = vrot.slane %v7298_v57, 1  ;;  %v7301_v29 = vrot.slane %v7300_v52, 1  ;;  %v1134_v43 = vmul.f32 %v3488_v8, %v4076_v24  ;;  %v7318_v57 = vld [vmem:[#allocation71_spill] sm:$0xff] }
 0x1e2   : > { %v1337_v2 = vadd.f32 %v1273_v12, %v1197_v3  ;;  %v986_v37 = vadd.f32 %v3488_v8, %v4067_v44  ;;  %v1274_v18 = vmul.f32 %v3490_v46, %v4090_v28  ;;  %v7303_v22 = vrot.slane %v7302_v55, 7  ;;  %3161 = vst [vmem:[%s4160_s24 + $0xe0] sm:$0xff] %v3097_v25  ;;  %v7312_v3 = vld [vmem:[#allocation67_spill] sm:$0xff]  ;;  %v7316_v25 = vld [vmem:[#allocation78_spill] sm:$0xff] }
 0x1e3   : > { %v2878_v51 = vsel %vm2810_vm2, %v7301_v29, %v7299_v11  ;;  %v7305_v21 = vrot.slane %v7304_v60, 7  ;;  %v2217_v40 = vadd.f32 %v2153_v23, %v1398_v45  ;;  %v2156_v38 = vsel %vm6339_vm12, %v1997_v5, 0.0 }
 0x1e4   : > { %v1198_v35 = vadd.f32 %v1134_v43, %v1062_v34  ;;  %v416_v10 = vadd.s32 144, %v7075_v6  ;;  %v1401_v49 = vadd.f32 %v1337_v2, %v985_v54  ;;  %v1065_v48 = vmul.f32 %v3487_v47, %v3993_v61 }
 0x1e5   : > { %v1999_v1 = vsel %vm1929_vm0, %v7305_v21, %v7303_v22  ;;  %v1137_v13 = vmul.f32 %v3489_v59, %v3997_v62  ;;  %v3098_v33 = vadd.f32 %v2872_v27, %v2217_v40  ;;  %v1277_v23 = vmul.f32 %v3491_v0, %v4001_v63  ;;  %v7320_v22 = vld [vmem:[#allocation80_spill] sm:$0xff]  ;;  %v7322_v21 = vld [vmem:[#allocation73_spill] sm:$0xff] }
 0x1e6   : > { %v2157_v14 = vsel %vm6339_vm12, %v1999_v1, 0.0  ;;  %v1338_v7 = vadd.f32 %v1274_v18, %v1198_v35  ;;  %v560_v39 = vand.u32 15, %v416_v10  ;;  %v2220_v12 = vadd.f32 %v2156_v38, %v1401_v49  ;;  %v3492_v18 = vld [vmem:[#allocation2 + $0x1c0] sm:$0xff]  ;;  %v7324_v10 = vld [vmem:[#allocation82_spill] sm:$0xff] }
 0x1e7   : > { %v989_v26 = vadd.f32 %v3489_v59, %v4007_v30  ;;  %v1201_v31 = vadd.f32 %v1137_v13, %v1065_v48  ;;  %v7307_v17 = vrot.slane %v7306_v42, 7  ;;  %v7309_v56 = vrot.slane %v7308_v15, 7  ;;  %3162 = vst [vmem:[%s4160_s24 + $0xe8] sm:$0xff] %v3098_v33 }
 0x1e8   : > { %v1402_v47 = vadd.f32 %v1338_v7, %v986_v37  ;;  %v7311_v27 = vrot.slane %v7310_v53, 1  ;;  %v7313_v58 = vrot.slane %v7312_v3, 1  ;;  %vm6383_vm13 = vcmp.gt.s32.totalorder %v560_v39, 0 }
 0x1e9   : > { %v2005_v54 = vsel %vm1929_vm0, %v7309_v56, %v7307_v17  ;;  %v1066_v16 = vmul.f32 %v3488_v8, %v4071_v41  ;;  %v3101_v5 = vadd.f32 %v2878_v51, %v2220_v12  ;;  %v1341_v34 = vadd.f32 %v1277_v23, %v1201_v31  ;;  %v7328_v56 = vld [vmem:[#allocation84_spill] sm:$0xff] }
 0x1ea   : > { %v2880_v19 = vsel %vm2810_vm2, %v7313_v58, %v7311_v27  ;;  %v7317_v45 = vrot.slane %v7316_v25, 1  ;;  %v7319_v11 = vrot.slane %v7318_v57, 1  ;;  %v1138_v29 = vmul.f32 %v3490_v46, %v4076_v24  ;;  %v7354_v58 = vld [vmem:[#allocation87_spill] sm:$0xff] }
 0x1eb   : > { %v2221_v43 = vadd.f32 %v2157_v14, %v1402_v47  ;;  %v2160_v2 = vsel %vm6383_vm13, %v2005_v54, 0.0  ;;  %v990_v37 = vadd.f32 %v3490_v46, %v4067_v44  ;;  %v1278_v8 = vmul.f32 %v3492_v18, %v4090_v28  ;;  %3165 = vst [vmem:[%s4160_s24 + $0x100] sm:$0xff] %v3101_v5  ;;  %v7326_v14 = vld [vmem:[#allocation75_spill] sm:$0xff]  ;;  %v7330_v47 = vld [vmem:[#allocation77_spill] sm:$0xff] }
 0x1ec   : > { %v2886_v52 = vsel %vm2810_vm2, %v7319_v11, %v7317_v45  ;;  %v1405_v51 = vadd.f32 %v1341_v34, %v989_v26  ;;  %v1202_v55 = vadd.f32 %v1138_v29, %v1066_v16  ;;  %v7321_v60 = vrot.slane %v7320_v22, 7  ;;  %v3493_v26 = vld [vmem:[#allocation2 + $0x140] sm:$0xff]  ;;  %v7336_v34 = vld [vmem:[#allocation79_spill] sm:$0xff] }
 0x1ed   : > { %v7323_v1 = vrot.slane %v7322_v21, 7  ;;  %v418_v38 = vadd.s32 160, %v7075_v6  ;;  %v3102_v35 = vadd.f32 %v2880_v19, %v2221_v43  ;;  %v7325_v49 = vrot.slane %v7324_v10, 1  ;;  %v3494_v11 = vld [vmem:[#allocation2 + $0x138] sm:$0xff] }
 0x1ee   : > { %v7327_v48 = vrot.slane %v7326_v14, 1  ;;  %v1069_v33 = vmul.f32 %v3489_v59, %v3993_v61  ;;  %v1141_v7 = vmul.f32 %v3491_v0, %v3997_v62  ;;  %v2224_v39 = vadd.f32 %v2160_v2, %v1405_v51  ;;  %v7338_v2 = vld [vmem:[#allocation88_spill] sm:$0xff] }
 0x1ef   : > { %v2007_v40 = vsel %vm1929_vm0, %v7323_v1, %v7321_v60  ;;  %v1342_v23 = vadd.f32 %v1278_v8, %v1202_v55  ;;  %v574_v12 = vand.u32 15, %v418_v38  ;;  %v1281_v31 = vmul.f32 %v3493_v26, %v4001_v63  ;;  %3166 = vst [vmem:[%s4160_s24 + $0x108] sm:$0xff] %v3102_v35  ;;  %v7342_v1 = vld [vmem:[#allocation90_spill] sm:$0xff]  ;;  %v7344_v38 = vld [vmem:[#allocation83_spill] sm:$0xff] }
 0x1f0   : > { %v2888_v13 = vsel %vm2810_vm2, %v7327_v48, %v7325_v49  ;;  %v2161_v42 = vsel %vm6383_vm13, %v2007_v40, 0.0  ;;  %v993_v17 = vadd.f32 %v3491_v0, %v4007_v30  ;;  %v1205_v15 = vadd.f32 %v1141_v7, %v1069_v33 }
 0x1f1   : > { %v7329_v54 = vrot.slane %v7328_v56, 7  ;;  %v7331_v59 = vrot.slane %v7330_v47, 7  ;;  %v3105_v27 = vadd.f32 %v2886_v52, %v2224_v39  ;;  %v1406_v3 = vadd.f32 %v1342_v23, %v990_v37  ;;  %v7350_v56 = vld [vmem:[#allocation85_spill] sm:$0xff] }
 0x1f2   : > { %vm6422_vm14 = vcmp.gt.s32.totalorder %v574_v12, 0  ;;  %v1070_v19 = vmul.f32 %v3490_v46, %v4071_v41  ;;  %v1345_v16 = vadd.f32 %v1281_v31, %v1205_v15  ;;  %v7335_v5 = vrot.slane %v7334_v36, 1  ;;  %v7340_v46 = vld [vmem:[#allocation81_spill] sm:$0xff]  ;;  %v3495_v12 = vld [vmem:[#allocation2 + $0x218] sm:$0xff] }
 0x1f3   : > { %v2013_v53 = vsel %vm1929_vm0, %v7331_v59, %v7329_v54  ;;  %v7337_v25 = vrot.slane %v7336_v34, 1  ;;  %v1142_v57 = vmul.f32 %v3492_v18, %v4076_v24  ;;  %v1282_v29 = vmul.f32 %v3494_v11, %v4090_v28  ;;  %3169 = vst [vmem:[%s4160_s24 + $0x120] sm:$0xff] %v3105_v27  ;;  %v7352_v27 = vld [vmem:[#allocation94_spill] sm:$0xff] }
 0x1f4   : > { %v2225_v52 = vadd.f32 %v2161_v42, %v1406_v3  ;;  %v2164_v43 = vsel %vm6422_vm14, %v2013_v53, 0.0  ;;  %v7339_v37 = vrot.slane %v7338_v2, 7  ;;  %v7341_v8 = vrot.slane %v7340_v46, 7  ;;  %v7366_v42 = vld [vmem:[#allocation100_spill] sm:$0xff] }
 0x1f5   : > { %v2894_v45 = vsel %vm2810_vm2, %v7337_v25, %v7335_v5  ;;  %v420_v55 = vadd.s32 176, %v7075_v6  ;;  %v1409_v22 = vadd.f32 %v1345_v16, %v993_v17  ;;  %v994_v60 = vadd.f32 %v3492_v18, %v4067_v44  ;;  %v3496_v25 = vld [vmem:[#allocation2 + $0x250] sm:$0xff] }
 0x1f6   : > { %v2015_v51 = vsel %vm1929_vm0, %v7341_v8, %v7339_v37  ;;  %v1206_v21 = vadd.f32 %v1142_v57, %v1070_v19  ;;  %v7343_v40 = vrot.slane %v7342_v1, 1  ;;  %v7345_v35 = vrot.slane %v7344_v38, 1  ;;  %v3497_v38 = vld [vmem:[#allocation2 + $0x48] sm:$0xff] }
 0x1f7   : > { %v3106_v49 = vadd.f32 %v2888_v13, %v2225_v52  ;;  %v588_v14 = vand.u32 15, %v420_v55  ;;  %v1073_v48 = vmul.f32 %v3491_v0, %v3993_v61  ;;  %v1145_v33 = vmul.f32 %v3493_v26, %v3997_v62  ;;  %v7348_v0 = vld [vmem:[#allocation92_spill] sm:$0xff] }
 0x1f8   : > { %v2896_v10 = vsel %vm2810_vm2, %v7345_v35, %v7343_v40  ;;  %v2228_v7 = vadd.f32 %v2164_v43, %v1409_v22  ;;  %v1346_v39 = vadd.f32 %v1282_v29, %v1206_v21  ;;  %v2165_v23 = vsel %vm6422_vm14, %v2015_v51, 0.0  ;;  %v7356_v29 = vld [vmem:[#allocation96_spill] sm:$0xff]  ;;  %v7358_v43 = vld [vmem:[#allocation89_spill] sm:$0xff] }
 0x1f9   : > { %v1285_v31 = vmul.f32 %v3495_v12, %v4001_v63  ;;  %3170 = vst [vmem:[%s4160_s24 + $0x128] sm:$0xff] %v3106_v49  ;;  %vm6455_vm15 = vcmp.gt.s32.totalorder %v588_v14, 0  ;;  %v997_v13 = vadd.f32 %v3493_v26, %v4007_v30  ;;  %v1209_v17 = vadd.f32 %v1145_v33, %v1073_v48  ;;  %v7360_v48 = vld [vmem:[#allocation98_spill] sm:$0xff] }
 0x1fa   : > { %v7349_v15 = vrot.slane %v7348_v0, 7  ;;  %v7351_v54 = vrot.slane %v7350_v56, 7  ;;  %v3109_v59 = vadd.f32 %v2894_v45, %v2228_v7  ;;  %v1410_v53 = vadd.f32 %v1346_v39, %v994_v60  ;;  %v7362_v7 = vld [vmem:[#allocation91_spill] sm:$0xff] }
 0x1fb   : > { %v7353_v3 = vrot.slane %v7352_v27, 1  ;;  %v7355_v19 = vrot.slane %v7354_v58, 1  ;;  %v1074_v36 = vmul.f32 %v3492_v18, %v4071_v41  ;;  %v1349_v5 = vadd.f32 %v1285_v31, %v1209_v17  ;;  %v7368_v17 = vld [vmem:[#allocation93_spill] sm:$0xff]  ;;  %v7372_v27 = vld [vmem:[#allocation95_spill] sm:$0xff] }
 0x1fc   : > { %v2021_v47 = vsel %vm1929_vm0, %v7351_v54, %v7349_v15  ;;  %v1146_v34 = vmul.f32 %v3494_v11, %v4076_v24  ;;  %v1286_v57 = vmul.f32 %v3496_v25, %v4090_v28  ;;  %v7357_v52 = vrot.slane %v7356_v29, 7  ;;  %3173 = vst [vmem:[%s4160_s24 + $0x140] sm:$0xff] %v3109_v59  ;;  %v7370_v59 = vld [vmem:[#allocation102_spill] sm:$0xff]  ;;  %v7374_v29 = vld [vmem:[#allocation104_spill] sm:$0xff] }
 0x1fd   : > { %v2902_v16 = vsel %vm2810_vm2, %v7355_v19, %v7353_v3  ;;  %v7359_v2 = vrot.slane %v7358_v43, 7  ;;  %v2229_v37 = vadd.f32 %v2165_v23, %v1410_v53  ;;  %v2168_v46 = vsel %vm6455_vm15, %v2021_v47, 0.0  ;;  %v7376_v43 = vld [vmem:[#allocation97_spill] sm:$0xff] }
 0x1fe   : > { %v998_v18 = vadd.f32 %v3494_v11, %v4067_v44  ;;  %v422_v8 = vadd.s32 192, %v7075_v6  ;;  %v1413_v51 = vadd.f32 %v1349_v5, %v997_v13  ;;  %v1210_v55 = vadd.f32 %v1146_v34, %v1074_v36  ;;  %v3498_v34 = vld [vmem:[#allocation2 + $0x90] sm:$0xff] }
 0x1ff   : > { %v2023_v45 = vsel %vm1929_vm0, %v7359_v2, %v7357_v52  ;;  %v1077_v60 = vmul.f32 %v3493_v26, %v3993_v61  ;;  %v3110_v21 = vadd.f32 %v2896_v10, %v2229_v37  ;;  %v1149_v40 = vmul.f32 %v3495_v12, %v3997_v62 }
 0x200   : > { %v2169_v22 = vsel %vm6455_vm15, %v2023_v45, 0.0  ;;  %v602_v1 = vand.u32 15, %v422_v8  ;;  %v1289_v35 = vmul.f32 %v3497_v38, %v4001_v63  ;;  %v2232_v49 = vadd.f32 %v2168_v46, %v1413_v51 }
 0x201   : > { %v1350_v14 = vadd.f32 %v1286_v57, %v1210_v55  ;;  %v7361_v33 = vrot.slane %v7360_v48, 1  ;;  %v7363_v39 = vrot.slane %v7362_v7, 1  ;;  %v1001_v31 = vadd.f32 %v3495_v12, %v4007_v30  ;;  %3174 = vst [vmem:[%s4160_s24 + $0x148] sm:$0xff] %v3110_v21  ;;  %v7378_v48 = vld [vmem:[#allocation108_spill] sm:$0xff]  ;;  %v7380_v7 = vld [vmem:[#allocation101_spill] sm:$0xff] }
 0x202   : > { %vm6495_vm1 = vcmp.gt.s32.totalorder %v602_v1, 0  ;;  %v1213_v10 = vadd.f32 %v1149_v40, %v1077_v60  ;;  %v7367_v13 = vrot.slane %v7366_v42, 7  ;;  %v7369_v0 = vrot.slane %v7368_v17, 7  ;;  %v3499_v40 = vld [vmem:[#allocation2 + $0x1b8] sm:$0xff]  ;;  %v7384_v42 = vld [vmem:[#allocation106_spill] sm:$0xff] }
 0x203   : > { %v2904_v23 = vsel %vm2810_vm2, %v7363_v39, %v7361_v33  ;;  %v1078_v56 = vmul.f32 %v3494_v11, %v4071_v41  ;;  %v3113_v54 = vadd.f32 %v2902_v16, %v2232_v49  ;;  %v1414_v47 = vadd.f32 %v1350_v14, %v998_v18  ;;  %v7386_v17 = vld [vmem:[#allocation99_spill] sm:$0xff] }
 0x204   : > { %v2029_v15 = vsel %vm1929_vm0, %v7369_v0, %v7367_v13  ;;  %v7371_v53 = vrot.slane %v7370_v59, 1  ;;  %v7373_v3 = vrot.slane %v7372_v27, 1  ;;  %v1150_v19 = vmul.f32 %v3496_v25, %v4076_v24  ;;  %v3500_v27 = vld [vmem:[#allocation2 + $0x120] sm:$0xff] }
 0x205   : > { %v1353_v36 = vadd.f32 %v1289_v35, %v1213_v10  ;;  %v1002_v5 = vadd.f32 %v3496_v25, %v4067_v44  ;;  %v1290_v57 = vmul.f32 %v3498_v34, %v4090_v28  ;;  %v7375_v52 = vrot.slane %v7374_v29, 7  ;;  %3177 = vst [vmem:[%s4160_s24 + $0x160] sm:$0xff] %v3113_v54 }
 0x206   : > { %v2910_v58 = vsel %vm2810_vm2, %v7373_v3, %v7371_v53  ;;  %v7377_v11 = vrot.slane %v7376_v43, 7  ;;  %v2233_v2 = vadd.f32 %v2169_v22, %v1414_v47  ;;  %v2172_v45 = vsel %vm6495_vm1, %v2029_v15, 0.0 }
 0x207   : > { %v1214_v37 = vadd.f32 %v1150_v19, %v1078_v56  ;;  %v424_v46 = vadd.s32 208, %v7075_v6  ;;  %v1417_v18 = vadd.f32 %v1353_v36, %v1001_v31  ;;  %v1081_v51 = vmul.f32 %v3495_v12, %v3993_v61  ;;  %v7388_v19 = vld [vmem:[#allocation112_spill] sm:$0xff] }
 0x208   : > { %v2031_v16 = vsel %vm1929_vm0, %v7377_v11, %v7375_v52  ;;  %v1153_v55 = vmul.f32 %v3497_v38, %v3997_v62  ;;  %v3114_v60 = vadd.f32 %v2904_v23, %v2233_v2  ;;  %v1293_v22 = vmul.f32 %v3499_v40, %v4001_v63  ;;  %v7392_v11 = vld [vmem:[#allocation110_spill] sm:$0xff]  ;;  %v7394_v2 = vld [vmem:[#allocation103_spill] sm:$0xff] }
 0x209   : > { %v2173_v8 = vsel %vm6495_vm1, %v2031_v16, 0.0  ;;  %v1354_v21 = vadd.f32 %v1290_v57, %v1214_v37  ;;  %v616_v1 = vand.u32 15, %v424_v46  ;;  %v2236_v35 = vadd.f32 %v2172_v45, %v1417_v18 }
 0x20a   : > { %v1005_v49 = vadd.f32 %v3497_v38, %v4007_v30  ;;  %v1217_v14 = vadd.f32 %v1153_v55, %v1081_v51  ;;  %v7379_v33 = vrot.slane %v7378_v48, 7  ;;  %v7381_v39 = vrot.slane %v7380_v7, 7  ;;  %3178 = vst [vmem:[%s4160_s24 + $0x168] sm:$0xff] %v3114_v60  ;;  %v3501_v60 = vld [vmem:[#allocation2 + $0x108] sm:$0xff] }
 0x20b   : > { %v1418_v12 = vadd.f32 %v1354_v21, %v1002_v5  ;;  %vm6534_vm3 = vcmp.gt.s32.totalorder %v616_v1, 0  ;;  %v1082_v26 = vmul.f32 %v3496_v25, %v4071_v41  ;;  %v3117_v10 = vadd.f32 %v2910_v58, %v2236_v35  ;;  %v7390_v5 = vld [vmem:[#allocation105_spill] sm:$0xff] }
 0x20c   : > { %v2037_v31 = vsel %vm1929_vm0, %v7381_v39, %v7379_v33  ;;  %v7385_v13 = vrot.slane %v7384_v42, 1  ;;  %v7387_v0 = vrot.slane %v7386_v17, 1  ;;  %v1357_v56 = vadd.f32 %v1293_v22, %v1217_v14  ;;  %v7398_v48 = vld [vmem:[#allocation109_spill] sm:$0xff] }
 0x20d   : > { %v1154_v54 = vmul.f32 %v3498_v34, %v4076_v24  ;;  %v2237_v47 = vadd.f32 %v2173_v8, %v1418_v12  ;;  %v2176_v59 = vsel %vm6534_vm3, %v2037_v31, 0.0  ;;  %v1006_v53 = vadd.f32 %v3498_v34, %v4067_v44  ;;  %3181 = vst [vmem:[%s4160_s24 + $0x180] sm:$0xff] %v3117_v10  ;;  %v7404_v10 = vld [vmem:[#allocation107_spill] sm:$0xff] }
 0x20e   : > { %v2912_v15 = vsel %vm2810_vm2, %v7387_v0, %v7385_v13  ;;  %v1294_v25 = vmul.f32 %v3500_v27, %v4090_v28  ;;  %v1421_v3 = vadd.f32 %v1357_v56, %v1005_v49  ;;  %v7389_v36 = vrot.slane %v7388_v19, 7  ;;  %v7396_v49 = vld [vmem:[#allocation116_spill] sm:$0xff] }
 0x20f   : > { %v1218_v58 = vadd.f32 %v1154_v54, %v1082_v26  ;;  %v7391_v57 = vrot.slane %v7390_v5, 7  ;;  %v426_v52 = vadd.s32 224, %v7075_v6  ;;  %v3118_v43 = vadd.f32 %v2912_v15, %v2237_v47  ;;  %v7402_v26 = vld [vmem:[#allocation114_spill] sm:$0xff]  ;;  %v3502_v15 = vld [vmem:[#allocation2 + $0xe0] sm:$0xff] }
 0x210   : > { %v7393_v16 = vrot.slane %v7392_v11, 1  ;;  %v7395_v45 = vrot.slane %v7394_v2, 1  ;;  %v1085_v46 = vmul.f32 %v3497_v38, %v3993_v61  ;;  %v1157_v18 = vmul.f32 %v3499_v40, %v3997_v62 }
 0x211   : > { %v2039_v29 = vsel %vm1929_vm0, %v7391_v57, %v7389_v36  ;;  %v2240_v8 = vadd.f32 %v2176_v59, %v1421_v3  ;;  %v1358_v51 = vadd.f32 %v1294_v25, %v1218_v58  ;;  %v630_v55 = vand.u32 15, %v426_v52  ;;  %3182 = vst [vmem:[%s4160_s24 + $0x188] sm:$0xff] %v3118_v43  ;;  %v7406_v59 = vld [vmem:[#allocation118_spill] sm:$0xff]  ;;  %v7410_v57 = vld [vmem:[#allocation120_spill] sm:$0xff]  ;;  %v7412_v52 = vld [vmem:[#allocation113_spill] sm:$0xff] }
 0x212   : > { %v2918_v37 = vsel %vm2810_vm2, %v7395_v45, %v7393_v16  ;;  %v1297_v21 = vmul.f32 %v3501_v60, %v4001_v63  ;;  %v2177_v1 = vsel %vm6534_vm3, %v2039_v29, 0.0  ;;  %v1009_v22 = vadd.f32 %v3499_v40, %v4007_v30 }
 0x213   : > { %v1221_v35 = vadd.f32 %v1157_v18, %v1085_v46  ;;  %v7397_v14 = vrot.slane %v7396_v49, 7  ;;  %v7399_v38 = vrot.slane %v7398_v48, 7  ;;  %v3121_v7 = vadd.f32 %v2918_v37, %v2240_v8  ;;  %v7419_v49 = vld [vmem:[#allocation122_spill] sm:$0xff] }
 0x214   : > { %v1422_v39 = vadd.f32 %v1358_v51, %v1006_v53  ;;  %vm6573_vm4 = vcmp.gt.s32.totalorder %v630_v55, 0  ;;  %v1086_v12 = vmul.f32 %v3498_v34, %v4071_v41  ;;  %v7403_v23 = vrot.slane %v7402_v26, 1  ;;  %v7408_v53 = vld [vmem:[#allocation111_spill] sm:$0xff] }
 0x215   : > { %v2045_v33 = vsel %vm1929_vm0, %v7399_v38, %v7397_v14  ;;  %v7405_v42 = vrot.slane %v7404_v10, 1  ;;  %v1361_v17 = vadd.f32 %v1297_v21, %v1221_v35  ;;  %v1158_v0 = vmul.f32 %v3500_v27, %v4076_v24  ;;  %3185 = vst [vmem:[%s4160_s24 + $0x1a0] sm:$0xff] %v3121_v7 }
 0x216   : > { %v1298_v56 = vmul.f32 %v3502_v15, %v4090_v28  ;;  %v2241_v54 = vadd.f32 %v2177_v1, %v1422_v39  ;;  %v2180_v47 = vsel %vm6573_vm4, %v2045_v33, 0.0  ;;  %v7407_v34 = vrot.slane %v7406_v59, 1 }
 0x217   : > { %v2920_v13 = vsel %vm2810_vm2, %v7405_v42, %v7403_v23  ;;  %v7409_v25 = vrot.slane %v7408_v53, 1  ;;  %v428_v58 = vadd.s32 240, %v7075_v6  ;;  %v1425_v19 = vadd.f32 %v1361_v17, %v1009_v22  ;;  %v3503_v6 = vld [vmem:[#allocation2 + $0x98] sm:$0xff] }
 0x218   : > { %v1010_v36 = vadd.f32 %v3500_v27, %v4067_v44  ;;  %v1222_v5 = vadd.f32 %v1158_v0, %v1086_v12  ;;  %v7411_v29 = vrot.slane %v7410_v57, 7  ;;  %v7413_v43 = vrot.slane %v7412_v52, 7  ;;  %v7427_v0 = vld [vmem:[#allocation119_spill] sm:$0xff] }
 0x219   : > { %v2926_v3 = vsel %vm2810_vm2, %v7409_v25, %v7407_v34  ;;  %v3122_v16 = vadd.f32 %v2920_v13, %v2241_v54  ;;  %v644_v2 = vand.u32 15, %v428_v58  ;;  %v1089_v45 = vmul.f32 %v3499_v40, %v3993_v61  ;;  %v7417_v61 = vld [vmem:[#allocation117_spill] sm:$0xff]  ;;  %v7425_v13 = vld [vmem:[#allocation124_spill] sm:$0xff] }
 0x21a   : > { %v2047_v11 = vsel %vm1929_vm0, %v7413_v43, %v7411_v29  ;;  %v1161_v37 = vmul.f32 %v3501_v60, %v3997_v62  ;;  %v2244_v46 = vadd.f32 %v2180_v47, %v1425_v19  ;;  %v1362_v18 = vadd.f32 %v1298_v56, %v1222_v5 }
 0x21b   : > { %v1301_v8 = vmul.f32 %v3503_v6, %v4001_v63  ;;  %3186 = vst [vmem:[%s4160_s24 + $0x1a8] sm:$0xff] %v3122_v16  ;;  %v2181_v51 = vsel %vm6573_vm4, %v2047_v11, 0.0  ;;  %vm6606_vm5 = vcmp.gt.s32.totalorder %v644_v2, 0  ;;  %v7416_v1 = vrot.slane %v5942_v20, 7  ;;  %v7421_v63 = vld [vmem:[#allocation115_spill] sm:$0xff] }
 0x21c   : > { %v1225_v21 = vadd.f32 %v1161_v37, %v1089_v45  ;;  %v7418_v40 = vrot.slane %v7417_v61, 7  ;;  %v3125_v22 = vadd.f32 %v2926_v3, %v2244_v46  ;;  %v1426_v35 = vadd.f32 %v1362_v18, %v1010_v36 }
 0x21d   : > { %v7420_v14 = vrot.slane %v7419_v49, 1  ;;  %v7422_v48 = vrot.slane %v7421_v63, 1  ;;  %v1090_v33 = vmul.f32 %v3500_v27, %v4071_v41  ;;  %v1013_v7 = vadd.f32 %v3501_v60, %v4007_v30  ;;  %v7423_v41 = vld [vmem:[#allocation121_spill] sm:$0xff] }
 0x21e   : > { %v2053_v62 = vsel %vm1929_vm0, %v7418_v40, %v7416_v1  ;;  %v1365_v39 = vadd.f32 %v1301_v8, %v1225_v21  ;;  %v1162_v20 = vmul.f32 %v3502_v15, %v4076_v24  ;;  %v1302_v31 = vmul.f32 %v3503_v6, %v4090_v28  ;;  %3189 = vst [vmem:[%s4160_s24 + $0x1c0] sm:$0xff] %v3125_v22 }
 0x21f   : > { %v2928_v38 = vsel %vm2810_vm2, %v7422_v48, %v7420_v14  ;;  %v2245_v12 = vadd.f32 %v2181_v51, %v1426_v35  ;;  %v2184_v26 = vsel %vm6606_vm5, %v2053_v62, 0.0  ;;  %v7424_v27 = vrot.slane %v7423_v41, 7 }
 0x220   : > { %v1429_v23 = vadd.f32 %v1365_v39, %v1013_v7  ;;  %v1226_v10 = vadd.f32 %v1162_v20, %v1090_v33  ;;  %v1014_v28 = vadd.f32 %v3502_v15, %v4067_v44  ;;  %v7426_v17 = vrot.slane %v7425_v13, 1  ;;  %v7429_v44 = vld [vmem:[#allocation123_spill] sm:$0xff] }
 0x221   : > { %v2055_v30 = vsel %vm1929_vm0, %v7424_v27, %v2054_v32  ;;  %v3126_v60 = vadd.f32 %v2928_v38, %v2245_v12  ;;  %v7428_v56 = vrot.slane %v7427_v0, 1  ;;  %v7430_v15 = vrot.slane %v7429_v44, 1 }
 0x222   : > { %v2248_v24 = vadd.f32 %v2184_v26, %v1429_v23  ;;  %v1366_v42 = vadd.f32 %v1302_v31, %v1226_v10  ;;  %v2185_v9 = vsel %vm6606_vm5, %v2055_v30, 0.0 }
 0x223   : > { %3190 = vst [vmem:[%s4160_s24 + $0x1c8] sm:$0xff] %v3126_v60  ;;  %v2934_v54 = vsel %vm2810_vm2, %v7428_v56, %v7426_v17  ;;  %v2936_v34 = vsel %vm2810_vm2, %v7430_v15, %v2935_v50 }
 0x224   : > { %v3129_v47 = vadd.f32 %v2934_v54, %v2248_v24  ;;  %v1430_v32 = vadd.f32 %v1366_v42, %v1014_v28 }
 0x226   : > { %3193 = vst [vmem:[%s4160_s24 + $0x1e0] sm:$0xff] %v3129_v47  ;;  %v2249_v59 = vadd.f32 %v2185_v9, %v1430_v32 }
 0x228   : > { %v3130_v53 = vadd.f32 %v2936_v34, %v2249_v59 }
 0x22a   : > { %3194 = vst [vmem:[%s4160_s24 + $0x1e8] sm:$0xff] %v3130_v53 }
 0x22b   : > { %3571 = shalt.err (!%p3568_p5)
}
 0x22c   : > { %s3572_s18 = scalar_lea.hbm %s6652_s21, 8192  ;;  %s3576_s27 = scalar_lea.hbm %s6706_s3, 16384 }
 0x22d   : > { %p3573_p7 = scmp.ne.s32.totalorder %s6652_s21, %s3572_s18  ;;  %p3577_p9 = scmp.lt.s32.totalorder %s6652_s21, %s6706_s3 }
 0x22e   : > { %p3578_p11 = scmp.lt.s32.totalorder %s3576_s27, %s3572_s18 }
 0x22f   : > { %p3574_p4 = pnand %p3573_p7, %p3762_p13 }
 0x230   : > { %p3579_p10 = por %p3578_p11, %p3577_p9 }
 0x231   : > { %p3575_p6 = pneg %p3574_p4 }
 0x233   : > { %p3580_p1 = pnand %p3579_p10, %p3575_p6 }
 0x235   : > { %3583 = shalt.err (!%p3580_p1)
}
 0x236   : > { %s3650_s24 = smov 256   ;;  %s3651_s30 = smov 16  }
 0x237   : > { %3352 = dma.vmem_to_hbm [thread:$0]  (%p3762_p13), %s6654_s29, 8192, %s6652_s21, %s3198_s15, %s3650_s24, %s3650_s24, %s3651_s30  }
 0x238 PF: > { %s3228_s5 = sand.u32 1, %s3622_s12   ;;  %p7431_p8 = scmp.ne.s32.totalorder %s6970_s23, 0 }
 0x239   : > { %p7432_p12 = scmp.ge.s32.totalorder %s3642_s17, 2  ;;  %s3229_s6 = scalar_lea.sflag [#allocation5], %s3228_s5 }
 0x23b   : > { %p3363_p0 = pnand %p7432_p12, %p7431_p8 }
 0x23d   : > { %p3364_p2 = pneg %p3363_p0 }
 0x23f   : > { %3617 = dma.done.wait (%p3364_p2), %s3229_s6, 8192  }
 0x240   : > { %3619 = vsyncadd (%p3364_p2), %s3229_s6, 4294959104  ;;  %s20_s17 = sadd.s32 1, %s3642_s17   ;;  %s7433_s12 = smov %s3626_s13 }
 0x241   : > { %p17_p3 = scmp.ge.s32.totalorder %s20_s17, 4   ;;  %s7434_s13 = smov %s3630_s14 }
 0x242   : > { %s7435_s14 = smov %s3771_s19  ;;  %s7436_s15 = smov %s3638_s16 }
 0x243   : > { %s7437_s16 = smov %s7439_s28  ;;  %19 = sbr.rel (!%p17_p3) target bundleno = 7 (0x7), region = 85 }
 0x248   :  { %3234 = vsyncpa [#allocation4], 1 }
 0x249   :  { %3236 = vsyncpa [#allocation4 + $0x1], 1 }
 0x24a   :  { %3237 = vsyncpa [#allocation7], 1 }
 0x24b   :  { %3238 = vsyncpa [#allocation5], 1 }
 0x24c   :  { %3240 = vsyncpa [#allocation5 + $0x1], 1 }

</bundles_post_ra>
